<compile_context>
chip_gen: v5e
topology: v5e:2x2
jax: 0.10.0
libtpu: 0.0.40
codegen_flags: <defaults>
</compile_context>

<pallas_src>
import functools

import jax
import jax.numpy as jnp
from jax.experimental import pallas as pl
from jax.experimental.pallas import tpu as pltpu

NEG_SLOPE = 0.2
BN_EPS = 1e-5


def _round_up(x, m):
    return (x + m - 1) // m * m


def _pick_divisor_tile(m, target):
    """Largest multiple-of-8 divisor of m that is <= target (else m itself)."""
    if m <= target:
        return m
    t = (target // 8) * 8
    while t >= 8:
        if m % t == 0:
            return t
        t -= 8
    return m


def _tpu_info():
    """(num_tensorcores, max_lane_tile, vmem_capacity_bytes) with safe fallbacks."""
    ncores, lane_tile, vmem_cap = 1, 128, 32 << 20
    try:
        info = pltpu.get_tpu_info()
        vmem_cap = int(getattr(info, "vmem_capacity_bytes", vmem_cap))
        ncores = int(getattr(info, "num_cores",
                             getattr(info, "tensorcore_count", ncores)))
        mxu = getattr(info, "mxu_column_count", None)
        if mxu is not None and int(mxu) >= 256:
            lane_tile = 256   # v6e / v7x: 256-wide RHS feeds the 2x256^2 MXU
    except Exception:         # conservative defaults if the query is unavailable
        pass
    return max(1, ncores), lane_tile, vmem_cap


def _leaky(z):
    return jnp.where(z > 0, z, NEG_SLOPE * z)


def _sigmoid(y):
    # numerically stable sigmoid; exp goes to the EUP slot.
    e = jnp.exp(-jnp.abs(y))
    return jnp.where(y >= 0, 1.0 / (1.0 + e), e / (1.0 + e))


# ----------------------------------------------------------------------------
# Kernel 1: conv-as-matmul (patch tile @ flattened weights) + bias + activation
# ----------------------------------------------------------------------------
def _conv_act_kernel(x_ref, w_ref, b_ref, o_ref, *, act):
    # (tm, K) bf16 @ (K, tn) bf16 -> f32 on the MXU.
    y = jnp.dot(x_ref[...], w_ref[...], preferred_element_type=jnp.float32)
    y = y + b_ref[...]
    if act == "leaky":
        y = _leaky(y)
    elif act == "sigmoid":
        y = _sigmoid(y)
    o_ref[...] = y.astype(o_ref.dtype)


# ----------------------------------------------------------------------------
# Kernel 2: fused conv + bias + BatchNorm2d (batch stats) + LeakyReLU,
# two-phase & M-tiled so it never needs whole-M residency.
#   grid = (n_tiles, phase, m_tiles);  phase 0: accumulate sum / sumsq,
#   phase 1: recompute the conv tile and normalize + LeakyReLU.
# ----------------------------------------------------------------------------
def _conv_bn_leaky_kernel(x_ref, w_ref, b_ref, g_ref, be_ref, o_ref,
                          sum_ref, sq_ref, *, inv_m):
    phase = pl.program_id(1)
    m_i = pl.program_id(2)

    # Conv tile (recomputed in phase 1: MXU work is tiny vs. storing pre-BN y to HBM).
    y = jnp.dot(x_ref[...], w_ref[...], preferred_element_type=jnp.float32)
    y = y + b_ref[...]

    @pl.when((phase == 0) & (m_i == 0))
    def _init():
        sum_ref[...] = jnp.zeros_like(sum_ref)
        sq_ref[...] = jnp.zeros_like(sq_ref)

    @pl.when(phase == 0)
    def _stats():
        # Single sweep over y: per-channel sum and sum-of-squares.
        sum_ref[...] += jnp.sum(y, axis=0, keepdims=True)
        sq_ref[...] += jnp.sum(y * y, axis=0, keepdims=True)

    @pl.when(phase == 1)
    def _normalize():
        mean = sum_ref[...] * inv_m
        var = jnp.maximum(sq_ref[...] * inv_m - mean * mean, 0.0)  # biased var (PyTorch BN)
        scale = jax.lax.rsqrt(var + BN_EPS) * g_ref[...]
        shift = be_ref[...] - mean * scale
        o_ref[...] = _leaky(y * scale + shift).astype(o_ref.dtype)


# ----------------------------------------------------------------------------
# Wrapper: one pallas_call per conv layer
# ----------------------------------------------------------------------------
def conv_layer(x_col, w_col, b, *, act=None, bn=None, out_dtype=jnp.bfloat16):
    """x_col: (M, K) bf16 patch rows.  w_col: (K, cout) f32.  Returns (M, cout)."""
    M, K = x_col.shape
    cout = w_col.shape[1]
    ncores, lane_tile, _ = _tpu_info()

    # Output-channel padding: modest (multiple of 8) for small cout so HBM writeback is
    # not inflated 16-32x; full 128/256-wide lane tiles (and an N grid axis) once cout
    # is wide enough.  Works for any cout (no negative-pad crash).
    if cout >= 128:
        cpad = _round_up(cout, 128)
        tn = lane_tile if cpad % lane_tile == 0 else 128
    else:
        cpad = _round_up(cout, 8)
        tn = cpad
    n_tiles = cpad // tn

    w_p = jnp.pad(w_col, ((0, 0), (0, cpad - cout))).astype(jnp.bfloat16)
    b_p = jnp.pad(b, (0, cpad - cout)).reshape(1, cpad).astype(jnp.float32)

    Mp = _round_up(M, 8)
    if Mp != M:
        assert bn is None, "row padding would corrupt batch statistics"
        x_col = jnp.pad(x_col, ((0, Mp - M), (0, 0)))

    def _vmem_limit(buffered_bytes):
        # Explicit scoped-VMEM budget sized from the real block footprint (default
        # scoped limits: 16 MiB v5e / 32 MiB v6e+); capped at v7x's 64 MiB physical.
        return int(min(64 << 20, max(32 << 20, buffered_bytes * 3)))

    if bn is None:
        # Split M across the available TensorCores ("parallel"); single big tile on
        # 1-TC chips (each extra grid step costs ~0.35us and buys nothing there).
        target = max(256, Mp // ncores)
        target = min(target, max(256, (8 << 20) // max(1, K * 2)))   # keep x block <= ~8 MiB
        tm = _pick_divisor_tile(Mp, target)
        grid = (Mp // tm, n_tiles)
        buffered = 2 * (tm * K * x_col.dtype.itemsize + K * tn * 2 + tn * 4
                        + tm * tn * jnp.dtype(out_dtype).itemsize)
        cost = pl.CostEstimate(
            flops=2 * Mp * K * cpad,
            transcendentals=Mp * cpad if act == "sigmoid" else 0,
            bytes_accessed=Mp * K * 2 + K * cpad * 2 + Mp * cpad * jnp.dtype(out_dtype).itemsize)
        out = pl.pallas_call(
            functools.partial(_conv_act_kernel, act=act),
            out_shape=jax.ShapeDtypeStruct((Mp, cpad), out_dtype),
            grid=grid,
            in_specs=[
                pl.BlockSpec((tm, K), lambda i, j: (i, 0)),
                pl.BlockSpec((K, tn), lambda i, j: (0, j)),
                pl.BlockSpec((1, tn), lambda i, j: (0, j)),
            ],
            out_specs=pl.BlockSpec((tm, tn), lambda i, j: (i, j)),
            compiler_params=pltpu.CompilerParams(
                dimension_semantics=("parallel", "parallel"),
                vmem_limit_bytes=_vmem_limit(buffered)),
            cost_estimate=cost,
        )(x_col, w_p, b_p)
    else:
        gamma, beta = bn
        assert Mp == M, "BN layers must not need row padding (stats would be biased)"
        g_p = jnp.pad(gamma, (0, cpad - cout)).reshape(1, cpad).astype(jnp.float32)
        be_p = jnp.pad(beta, (0, cpad - cout)).reshape(1, cpad).astype(jnp.float32)

        tm = _pick_divisor_tile(M, 256)
        m_tiles = M // tm
        grid = (n_tiles, 2, m_tiles)    # n-tiles are independent -> "parallel" outermost
        buffered = 2 * (tm * K * x_col.dtype.itemsize + K * tn * 2 + 3 * tn * 4
                        + tm * tn * jnp.dtype(out_dtype).itemsize)
        cost = pl.CostEstimate(
            flops=4 * M * K * cpad,                 # conv recomputed in both phases
            transcendentals=2 * cpad,               # rsqrt
            bytes_accessed=2 * M * K * 2 + K * cpad * 2
                           + M * cpad * jnp.dtype(out_dtype).itemsize)
        out = pl.pallas_call(
            functools.partial(_conv_bn_leaky_kernel, inv_m=1.0 / M),
            out_shape=jax.ShapeDtypeStruct((M, cpad), out_dtype),
            grid=grid,
            in_specs=[
                pl.BlockSpec((tm, K), lambda n, p, m: (m, 0)),
                pl.BlockSpec((K, tn), lambda n, p, m: (0, n)),
                pl.BlockSpec((1, tn), lambda n, p, m: (0, n)),
                pl.BlockSpec((1, tn), lambda n, p, m: (0, n)),
                pl.BlockSpec((1, tn), lambda n, p, m: (0, n)),
            ],
            # During phase 0 the output index is pinned to block (0, n) and the kernel
            # never writes o_ref, so the stats phase causes no HBM writeback; phase 1
            # then writes each (m, n) block exactly once.
            out_specs=pl.BlockSpec((tm, tn), lambda n, p, m: (m * p, n)),
            scratch_shapes=[pltpu.VMEM((1, tn), jnp.float32),
                            pltpu.VMEM((1, tn), jnp.float32)],
            compiler_params=pltpu.CompilerParams(
                dimension_semantics=("parallel", "arbitrary", "arbitrary"),
                vmem_limit_bytes=_vmem_limit(buffered)),
            cost_estimate=cost,
        )(x_col, w_p, b_p, g_p, be_p)

    return out[:M, :cout]


# ----------------------------------------------------------------------------
# Glue: im2col patch extraction (strided slicing / stack only, XLA side)
# ----------------------------------------------------------------------------
def im2col(x_nhwc, kh, kw, stride, pad):
    if pad:
        x_nhwc = jnp.pad(x_nhwc, ((0, 0), (pad, pad), (pad, pad), (0, 0)))
    n, h, w, _ = x_nhwc.shape
    oh = (h - kh) // stride + 1
    ow = (w - kw) // stride + 1
    cols = []
    for i in range(kh):
        for j in range(kw):
            cols.append(x_nhwc[:, i:i + stride * oh:stride, j:j + stride * ow:stride, :])
    p = jnp.stack(cols, axis=3)           # (n, oh, ow, kh*kw, cin)
    return p.reshape(n * oh * ow, -1), n, oh, ow


# ----------------------------------------------------------------------------
# Deterministic parameter construction (shapes from the PyTorch __init__)
# ----------------------------------------------------------------------------
def init_params(key, img_channels, img_size, num_filters, num_classes):
    nf = num_filters
    chan_pairs = [(img_channels + 1, nf), (nf, 2 * nf), (2 * nf, 4 * nf),
                  (4 * nf, 8 * nf), (8 * nf, 1)]
    keys = jax.random.split(key, len(chan_pairs) + 1)
    params = {"convs": [], "bns": []}
    for k, (cin, cout) in zip(keys[:-1], chan_pairs):
        w = 0.02 * jax.random.normal(k, (4, 4, cin, cout), jnp.float32)  # (KH,KW,Cin,Cout)
        b = jnp.zeros((cout,), jnp.float32)
        params["convs"].append((w, b))
    for c in (2 * nf, 4 * nf, 8 * nf):
        params["bns"].append((jnp.ones((c,), jnp.float32), jnp.zeros((c,), jnp.float32)))
    params["emb"] = 0.02 * jax.random.normal(
        keys[-1], (num_classes, img_size * img_size), jnp.float32)
    return params


# ----------------------------------------------------------------------------
# Forward pass (matches Discriminator.forward, training-mode BatchNorm)
# ----------------------------------------------------------------------------
def discriminator_forward(params, x_nchw, labels, img_size):
    n = x_nchw.shape[0]
    # NOTE: the PyTorch code does .view(labels[0], 1, H, W); that only type-checks when
    # labels[0] == batch size, which we enforce in __main__ and reproduce here with n.
    emb = params["emb"][labels]                                   # (n, H*W) gather (glue)
    label_img = emb.reshape(n, 1, img_size, img_size)             # (n, 1, H, W)
    xin = jnp.concatenate([x_nchw, label_img], axis=1)            # channel concat (NCHW)
    h = jnp.transpose(xin, (0, 2, 3, 1)).astype(jnp.bfloat16)     # NHWC, bf16 MXU input

    strides = [2, 2, 2, 2, 1]
    pads = [1, 1, 1, 1, 0]
    acts = ["leaky", None, None, None, "sigmoid"]
    bn_i = 0
    for li in range(5):
        w, b = params["convs"][li]
        kh, kw, cin, cout = w.shape
        if li == 4:
            # 4x4 conv on a 4x4 map -> 1x1 output: the patch matrix is just a reshape.
            nb, oh, ow = h.shape[0], 1, 1
            x_col = h.reshape(nb, kh * kw * cin)
        else:
            x_col, nb, oh, ow = im2col(h, kh, kw, strides[li], pads[li])
        bn = None
        if li in (1, 2, 3):
            bn = params["bns"][bn_i]
            bn_i += 1
        out_dtype = jnp.float32 if li == 4 else jnp.bfloat16
        y = conv_layer(x_col, w.reshape(kh * kw * cin, cout), b,
                       act=acts[li], bn=bn, out_dtype=out_dtype)
        h = y.reshape(nb, oh, ow, cout)
    return jnp.transpose(h, (0, 3, 1, 2)).astype(jnp.float32)     # NCHW, (n, 1, 1, 1)


if __name__ == "__main__":
    img_channels, img_size, num_filters, num_classes = 1, 64, 4, 10
    batch = 2

    key = jax.random.PRNGKey(0)
    kp, kx = jax.random.split(key)
    params = init_params(kp, img_channels, img_size, num_filters, num_classes)
    x = jax.random.normal(kx, (batch, img_channels, img_size, img_size), jnp.float32)
    # labels[0] must equal the batch size due to the .view(labels[0], ...) quirk upstream.
    labels = jnp.array([batch, 5], dtype=jnp.int32)
    assert int(labels[0]) == batch

    fwd = jax.jit(functools.partial(discriminator_forward, img_size=img_size))
    out = jax.block_until_ready(fwd(params, x, labels))
    assert out.shape == (batch, 1, 1, 1)
    assert bool(jnp.all(jnp.isfinite(out)))
    assert bool(jnp.all((out >= 0.0) & (out <= 1.0)))
    print("KERNEL_OK")
</pallas_src>

<mosaic_0001>
module attributes {stable_mosaic.version = 11 : i64} {
  func.func @_conv_act_kernel(%arg0: i32, %arg1: i32, %arg2: memref<2048x32xbf16, #tpu.memory_space<vmem>>, %arg3: memref<32x8xbf16, #tpu.memory_space<vmem>>, %arg4: memref<1x8xf32, #tpu.memory_space<vmem>>, %arg5: memref<2048x8xbf16, #tpu.memory_space<vmem>>) attributes {dimension_semantics = [#tpu.dimension_semantics<parallel>, #tpu.dimension_semantics<parallel>], iteration_bounds = array<i64: 1, 1>, scalar_prefetch = 0 : i64, scratch_operands = 0 : i64, tpu.core_type = #tpu.core_type<tc>, window_params = [{transform_indices = @transform_0, window_bounds = array<i64: 2048, 32>}, {transform_indices = @transform_1, window_bounds = array<i64: 32, 8>}, {transform_indices = @transform_2, window_bounds = array<i64: 1, 8>}, {transform_indices = @transform_3, window_bounds = array<i64: 2048, 8>}]} {
    %c0 = arith.constant 0 : index
    %c0_0 = arith.constant 0 : index
    %0 = vector.load %arg2[%c0, %c0_0] : memref<2048x32xbf16, #tpu.memory_space<vmem>>, vector<2048x32xbf16>
    %c0_1 = arith.constant 0 : index
    %c0_2 = arith.constant 0 : index
    %1 = vector.load %arg3[%c0_1, %c0_2] : memref<32x8xbf16, #tpu.memory_space<vmem>>, vector<32x8xbf16>
    %cst = arith.constant dense<0.000000e+00> : vector<2048x8xf32>
    %2 = tpu.matmul %0, %1, %cst {dimension_numbers = #tpu.dot_dimension_numbers<[1], [0], [0], [1], [0, 0, 1, 1], [], []>} : vector<2048x32xbf16>, vector<32x8xbf16>, vector<2048x8xf32> -> vector<2048x8xf32>
    %c0_3 = arith.constant 0 : index
    %c0_4 = arith.constant 0 : index
    %3 = vector.load %arg4[%c0_3, %c0_4] : memref<1x8xf32, #tpu.memory_space<vmem>>, vector<1x8xf32>
    %4 = vector.broadcast %3 : vector<1x8xf32> to vector<2048x8xf32>
    %5 = arith.addf %2, %4 : vector<2048x8xf32>
    %cst_5 = arith.constant 0.000000e+00 : f32
    %6 = vector.broadcast %cst_5 : f32 to vector<2048x8xf32>
    %7 = arith.cmpf ogt, %5, %6 : vector<2048x8xf32>
    %cst_6 = arith.constant 2.000000e-01 : f32
    %8 = vector.broadcast %cst_6 : f32 to vector<2048x8xf32>
    %9 = arith.mulf %8, %5 : vector<2048x8xf32>
    %10 = arith.select %7, %5, %9 : vector<2048x8xi1>, vector<2048x8xf32>
    %11 = arith.truncf %10 : vector<2048x8xf32> to vector<2048x8xbf16>
    %c0_7 = arith.constant 0 : index
    %c0_8 = arith.constant 0 : index
    %12 = vector.load %arg5[%c0_7, %c0_8] : memref<2048x8xbf16, #tpu.memory_space<vmem>>, vector<2048x8xbf16>
    tpu.vector_store %arg5[%c0_7, %c0_8], %11 {strides = array<i32>} : memref<2048x8xbf16, #tpu.memory_space<vmem>>, vector<2048x8xbf16>,
    return
  }
  func.func @transform_0(%arg0: i32, %arg1: i32) -> (i32, i32) {
    %c0_i32 = arith.constant 0 : i32
    %c0_i32_0 = arith.constant 0 : i32
    return %arg0, %c0_i32 : i32, i32
  }
  func.func @transform_1(%arg0: i32, %arg1: i32) -> (i32, i32) {
    %c0_i32 = arith.constant 0 : i32
    %c0_i32_0 = arith.constant 0 : i32
    return %c0_i32, %arg1 : i32, i32
  }
  func.func @transform_2(%arg0: i32, %arg1: i32) -> (i32, i32) {
    %c0_i32 = arith.constant 0 : i32
    %c0_i32_0 = arith.constant 0 : i32
    return %c0_i32, %arg1 : i32, i32
  }
  func.func @transform_3(%arg0: i32, %arg1: i32) -> (i32, i32) {
    %c0_i32 = arith.constant 0 : i32
    return %arg0, %arg1 : i32, i32
  }
}

module attributes {stable_mosaic.version = 11 : i64} {
  func.func @_conv_bn_leaky_kernel(%arg0: i32, %arg1: i32, %arg2: i32, %arg3: memref<256x64xbf16, #tpu.memory_space<vmem>>, %arg4: memref<64x8xbf16, #tpu.memory_space<vmem>>, %arg5: memref<1x8xf32, #tpu.memory_space<vmem>>, %arg6: memref<1x8xf32, #tpu.memory_space<vmem>>, %arg7: memref<1x8xf32, #tpu.memory_space<vmem>>, %arg8: memref<256x8xbf16, #tpu.memory_space<vmem>>, %arg9: memref<1x8xf32, #tpu.memory_space<vmem>>, %arg10: memref<1x8xf32, #tpu.memory_space<vmem>>) attributes {dimension_semantics = [#tpu.dimension_semantics<parallel>, #tpu.dimension_semantics<arbitrary>, #tpu.dimension_semantics<arbitrary>], iteration_bounds = array<i64: 1, 2, 2>, scalar_prefetch = 0 : i64, scratch_operands = 2 : i64, tpu.core_type = #tpu.core_type<tc>, window_params = [{transform_indices = @transform_0, window_bounds = array<i64: 256, 64>}, {transform_indices = @transform_1, window_bounds = array<i64: 64, 8>}, {transform_indices = @transform_2, window_bounds = array<i64: 1, 8>}, {transform_indices = @transform_3, window_bounds = array<i64: 1, 8>}, {transform_indices = @transform_4, window_bounds = array<i64: 1, 8>}, {transform_indices = @transform_5, window_bounds = array<i64: 256, 8>}]} {
    %c0 = arith.constant 0 : index
    %c0_0 = arith.constant 0 : index
    %0 = vector.load %arg3[%c0, %c0_0] : memref<256x64xbf16, #tpu.memory_space<vmem>>, vector<256x64xbf16>
    %c0_1 = arith.constant 0 : index
    %c0_2 = arith.constant 0 : index
    %1 = vector.load %arg4[%c0_1, %c0_2] : memref<64x8xbf16, #tpu.memory_space<vmem>>, vector<64x8xbf16>
    %cst = arith.constant dense<0.000000e+00> : vector<256x8xf32>
    %2 = tpu.matmul %0, %1, %cst {dimension_numbers = #tpu.dot_dimension_numbers<[1], [0], [0], [1], [0, 0, 1, 1], [], []>} : vector<256x64xbf16>, vector<64x8xbf16>, vector<256x8xf32> -> vector<256x8xf32>
    %c0_3 = arith.constant 0 : index
    %c0_4 = arith.constant 0 : index
    %3 = vector.load %arg5[%c0_3, %c0_4] : memref<1x8xf32, #tpu.memory_space<vmem>>, vector<1x8xf32>
    %4 = vector.broadcast %3 : vector<1x8xf32> to vector<256x8xf32>
    %5 = arith.addf %2, %4 : vector<256x8xf32>
    %c0_i32 = arith.constant 0 : i32
    %6 = arith.cmpi eq, %arg1, %c0_i32 : i32
    %c0_i32_5 = arith.constant 0 : i32
    %7 = arith.cmpi eq, %arg2, %c0_i32_5 : i32
    %8 = arith.andi %6, %7 : i1
    %9 = arith.extui %8 : i1 to i32
    %c0_i32_6 = arith.constant 0 : i32
    %10 = arith.cmpi ne, %9, %c0_i32_6 : i32
    scf.if %10 {
      %cst_10 = arith.constant 0.000000e+00 : f32
      %17 = vector.broadcast %cst_10 : f32 to vector<1x8xf32>
      %c0_11 = arith.constant 0 : index
      %c0_12 = arith.constant 0 : index
      %18 = vector.load %arg9[%c0_11, %c0_12] : memref<1x8xf32, #tpu.memory_space<vmem>>, vector<1x8xf32>
      tpu.vector_store %arg9[%c0_11, %c0_12], %17 {strides = array<i32>} : memref<1x8xf32, #tpu.memory_space<vmem>>, vector<1x8xf32>,
      %cst_13 = arith.constant 0.000000e+00 : f32
      %19 = vector.broadcast %cst_13 : f32 to vector<1x8xf32>
      %c0_14 = arith.constant 0 : index
      %c0_15 = arith.constant 0 : index
      %20 = vector.load %arg10[%c0_14, %c0_15] : memref<1x8xf32, #tpu.memory_space<vmem>>, vector<1x8xf32>
      tpu.vector_store %arg10[%c0_14, %c0_15], %19 {strides = array<i32>} : memref<1x8xf32, #tpu.memory_space<vmem>>, vector<1x8xf32>,
    } else {
    }
    %c0_i32_7 = arith.constant 0 : i32
    %11 = arith.cmpi eq, %arg1, %c0_i32_7 : i32
    %12 = arith.extui %11 : i1 to i32
    %c0_i32_8 = arith.constant 0 : i32
    %13 = arith.cmpi ne, %12, %c0_i32_8 : i32
    scf.if %13 {
      %c0_10 = arith.constant 0 : index
      %c0_11 = arith.constant 0 : index
      %17 = vector.load %arg9[%c0_10, %c0_11] : memref<1x8xf32, #tpu.memory_space<vmem>>, vector<1x8xf32>
      %cst_12 = arith.constant dense<0.000000e+00> : vector<8xf32>
      %18 = vector.multi_reduction <add>, %5, %cst_12 [0] : vector<256x8xf32> to vector<8xf32>
      %19 = vector.shape_cast %18 : vector<8xf32> to vector<1x8xf32>
      %20 = arith.addf %17, %19 : vector<1x8xf32>
      %c0_13 = arith.constant 0 : index
      %c0_14 = arith.constant 0 : index
      %21 = vector.load %arg9[%c0_13, %c0_14] : memref<1x8xf32, #tpu.memory_space<vmem>>, vector<1x8xf32>
      tpu.vector_store %arg9[%c0_13, %c0_14], %20 {strides = array<i32>} : memref<1x8xf32, #tpu.memory_space<vmem>>, vector<1x8xf32>,
      %c0_15 = arith.constant 0 : index
      %c0_16 = arith.constant 0 : index
      %22 = vector.load %arg10[%c0_15, %c0_16] : memref<1x8xf32, #tpu.memory_space<vmem>>, vector<1x8xf32>
      %23 = arith.mulf %5, %5 : vector<256x8xf32>
      %cst_17 = arith.constant dense<0.000000e+00> : vector<8xf32>
      %24 = vector.multi_reduction <add>, %23, %cst_17 [0] : vector<256x8xf32> to vector<8xf32>
      %25 = vector.shape_cast %24 : vector<8xf32> to vector<1x8xf32>
      %26 = arith.addf %22, %25 : vector<1x8xf32>
      %c0_18 = arith.constant 0 : index
      %c0_19 = arith.constant 0 : index
      %27 = vector.load %arg10[%c0_18, %c0_19] : memref<1x8xf32, #tpu.memory_space<vmem>>, vector<1x8xf32>
      tpu.vector_store %arg10[%c0_18, %c0_19], %26 {strides = array<i32>} : memref<1x8xf32, #tpu.memory_space<vmem>>, vector<1x8xf32>,
    } else {
    }
    %c1_i32 = arith.constant 1 : i32
    %14 = arith.cmpi eq, %arg1, %c1_i32 : i32
    %15 = arith.extui %14 : i1 to i32
    %c0_i32_9 = arith.constant 0 : i32
    %16 = arith.cmpi ne, %15, %c0_i32_9 : i32
    scf.if %16 {
      %c0_10 = arith.constant 0 : index
      %c0_11 = arith.constant 0 : index
      %17 = vector.load %arg9[%c0_10, %c0_11] : memref<1x8xf32, #tpu.memory_space<vmem>>, vector<1x8xf32>
      %cst_12 = arith.constant 0.001953125 : f32
      %18 = vector.broadcast %cst_12 : f32 to vector<1x8xf32>
      %19 = arith.mulf %17, %18 : vector<1x8xf32>
      %c0_13 = arith.constant 0 : index
      %c0_14 = arith.constant 0 : index
      %20 = vector.load %arg10[%c0_13, %c0_14] : memref<1x8xf32, #tpu.memory_space<vmem>>, vector<1x8xf32>
      %cst_15 = arith.constant 0.001953125 : f32
      %21 = vector.broadcast %cst_15 : f32 to vector<1x8xf32>
      %22 = arith.mulf %20, %21 : vector<1x8xf32>
      %23 = arith.mulf %19, %19 : vector<1x8xf32>
      %24 = arith.subf %22, %23 : vector<1x8xf32>
      %cst_16 = arith.constant 0.000000e+00 : f32
      %25 = vector.broadcast %cst_16 : f32 to vector<1x8xf32>
      %26 = arith.maximumf %24, %25 : vector<1x8xf32>
      %cst_17 = arith.constant 9.99999974E-6 : f32
      %27 = vector.broadcast %cst_17 : f32 to vector<1x8xf32>
      %28 = arith.addf %26, %27 : vector<1x8xf32>
      %29 = math.rsqrt %28 : vector<1x8xf32>
      %c0_18 = arith.constant 0 : index
      %c0_19 = arith.constant 0 : index
      %30 = vector.load %arg6[%c0_18, %c0_19] : memref<1x8xf32, #tpu.memory_space<vmem>>, vector<1x8xf32>
      %31 = arith.mulf %29, %30 : vector<1x8xf32>
      %c0_20 = arith.constant 0 : index
      %c0_21 = arith.constant 0 : index
      %32 = vector.load %arg7[%c0_20, %c0_21] : memref<1x8xf32, #tpu.memory_space<vmem>>, vector<1x8xf32>
      %33 = arith.mulf %19, %31 : vector<1x8xf32>
      %34 = arith.subf %32, %33 : vector<1x8xf32>
      %35 = vector.broadcast %31 : vector<1x8xf32> to vector<256x8xf32>
      %36 = arith.mulf %5, %35 : vector<256x8xf32>
      %37 = vector.broadcast %34 : vector<1x8xf32> to vector<256x8xf32>
      %38 = arith.addf %36, %37 : vector<256x8xf32>
      %cst_22 = arith.constant 0.000000e+00 : f32
      %39 = vector.broadcast %cst_22 : f32 to vector<256x8xf32>
      %40 = arith.cmpf ogt, %38, %39 : vector<256x8xf32>
      %cst_23 = arith.constant 2.000000e-01 : f32
      %41 = vector.broadcast %cst_23 : f32 to vector<256x8xf32>
      %42 = arith.mulf %41, %38 : vector<256x8xf32>
      %43 = arith.select %40, %38, %42 : vector<256x8xi1>, vector<256x8xf32>
      %44 = arith.truncf %43 : vector<256x8xf32> to vector<256x8xbf16>
      %c0_24 = arith.constant 0 : index
      %c0_25 = arith.constant 0 : index
      %45 = vector.load %arg8[%c0_24, %c0_25] : memref<256x8xbf16, #tpu.memory_space<vmem>>, vector<256x8xbf16>
      tpu.vector_store %arg8[%c0_24, %c0_25], %44 {strides = array<i32>} : memref<256x8xbf16, #tpu.memory_space<vmem>>, vector<256x8xbf16>,
    } else {
    }
    return
  }
  func.func @transform_0(%arg0: i32, %arg1: i32, %arg2: i32) -> (i32, i32) {
    %c0_i32 = arith.constant 0 : i32
    %c0_i32_0 = arith.constant 0 : i32
    return %arg2, %c0_i32 : i32, i32
  }
  func.func @transform_1(%arg0: i32, %arg1: i32, %arg2: i32) -> (i32, i32) {
    %c0_i32 = arith.constant 0 : i32
    %c0_i32_0 = arith.constant 0 : i32
    return %c0_i32, %arg0 : i32, i32
  }
  func.func @transform_2(%arg0: i32, %arg1: i32, %arg2: i32) -> (i32, i32) {
    %c0_i32 = arith.constant 0 : i32
    %c0_i32_0 = arith.constant 0 : i32
    return %c0_i32, %arg0 : i32, i32
  }
  func.func @transform_3(%arg0: i32, %arg1: i32, %arg2: i32) -> (i32, i32) {
    %c0_i32 = arith.constant 0 : i32
    %c0_i32_0 = arith.constant 0 : i32
    return %c0_i32, %arg0 : i32, i32
  }
  func.func @transform_4(%arg0: i32, %arg1: i32, %arg2: i32) -> (i32, i32) {
    %c0_i32 = arith.constant 0 : i32
    %c0_i32_0 = arith.constant 0 : i32
    return %c0_i32, %arg0 : i32, i32
  }
  func.func @transform_5(%arg0: i32, %arg1: i32, %arg2: i32) -> (i32, i32) {
    %0 = arith.muli %arg2, %arg1 : i32
    %c0_i32 = arith.constant 0 : i32
    return %0, %arg0 : i32, i32
  }
}

module attributes {stable_mosaic.version = 11 : i64} {
  func.func @_conv_bn_leaky_kernel(%arg0: i32, %arg1: i32, %arg2: i32, %arg3: memref<128x128xbf16, #tpu.memory_space<vmem>>, %arg4: memref<128x16xbf16, #tpu.memory_space<vmem>>, %arg5: memref<1x16xf32, #tpu.memory_space<vmem>>, %arg6: memref<1x16xf32, #tpu.memory_space<vmem>>, %arg7: memref<1x16xf32, #tpu.memory_space<vmem>>, %arg8: memref<128x16xbf16, #tpu.memory_space<vmem>>, %arg9: memref<1x16xf32, #tpu.memory_space<vmem>>, %arg10: memref<1x16xf32, #tpu.memory_space<vmem>>) attributes {dimension_semantics = [#tpu.dimension_semantics<parallel>, #tpu.dimension_semantics<arbitrary>, #tpu.dimension_semantics<arbitrary>], iteration_bounds = array<i64: 1, 2, 1>, scalar_prefetch = 0 : i64, scratch_operands = 2 : i64, tpu.core_type = #tpu.core_type<tc>, window_params = [{transform_indices = @transform_0, window_bounds = array<i64: 128, 128>}, {transform_indices = @transform_1, window_bounds = array<i64: 128, 16>}, {transform_indices = @transform_2, window_bounds = array<i64: 1, 16>}, {transform_indices = @transform_3, window_bounds = array<i64: 1, 16>}, {transform_indices = @transform_4, window_bounds = array<i64: 1, 16>}, {transform_indices = @transform_5, window_bounds = array<i64: 128, 16>}]} {
    %c0 = arith.constant 0 : index
    %c0_0 = arith.constant 0 : index
    %0 = vector.load %arg3[%c0, %c0_0] : memref<128x128xbf16, #tpu.memory_space<vmem>>, vector<128x128xbf16>
    %c0_1 = arith.constant 0 : index
    %c0_2 = arith.constant 0 : index
    %1 = vector.load %arg4[%c0_1, %c0_2] : memref<128x16xbf16, #tpu.memory_space<vmem>>, vector<128x16xbf16>
    %cst = arith.constant dense<0.000000e+00> : vector<128x16xf32>
    %2 = tpu.matmul %0, %1, %cst {dimension_numbers = #tpu.dot_dimension_numbers<[1], [0], [0], [1], [0, 0, 1, 1], [], []>} : vector<128x128xbf16>, vector<128x16xbf16>, vector<128x16xf32> -> vector<128x16xf32>
    %c0_3 = arith.constant 0 : index
    %c0_4 = arith.constant 0 : index
    %3 = vector.load %arg5[%c0_3, %c0_4] : memref<1x16xf32, #tpu.memory_space<vmem>>, vector<1x16xf32>
    %4 = vector.broadcast %3 : vector<1x16xf32> to vector<128x16xf32>
    %5 = arith.addf %2, %4 : vector<128x16xf32>
    %c0_i32 = arith.constant 0 : i32
    %6 = arith.cmpi eq, %arg1, %c0_i32 : i32
    %c0_i32_5 = arith.constant 0 : i32
    %7 = arith.cmpi eq, %arg2, %c0_i32_5 : i32
    %8 = arith.andi %6, %7 : i1
    %9 = arith.extui %8 : i1 to i32
    %c0_i32_6 = arith.constant 0 : i32
    %10 = arith.cmpi ne, %9, %c0_i32_6 : i32
    scf.if %10 {
      %cst_10 = arith.constant 0.000000e+00 : f32
      %17 = vector.broadcast %cst_10 : f32 to vector<1x16xf32>
      %c0_11 = arith.constant 0 : index
      %c0_12 = arith.constant 0 : index
      %18 = vector.load %arg9[%c0_11, %c0_12] : memref<1x16xf32, #tpu.memory_space<vmem>>, vector<1x16xf32>
      tpu.vector_store %arg9[%c0_11, %c0_12], %17 {strides = array<i32>} : memref<1x16xf32, #tpu.memory_space<vmem>>, vector<1x16xf32>,
      %cst_13 = arith.constant 0.000000e+00 : f32
      %19 = vector.broadcast %cst_13 : f32 to vector<1x16xf32>
      %c0_14 = arith.constant 0 : index
      %c0_15 = arith.constant 0 : index
      %20 = vector.load %arg10[%c0_14, %c0_15] : memref<1x16xf32, #tpu.memory_space<vmem>>, vector<1x16xf32>
      tpu.vector_store %arg10[%c0_14, %c0_15], %19 {strides = array<i32>} : memref<1x16xf32, #tpu.memory_space<vmem>>, vector<1x16xf32>,
    } else {
    }
    %c0_i32_7 = arith.constant 0 : i32
    %11 = arith.cmpi eq, %arg1, %c0_i32_7 : i32
    %12 = arith.extui %11 : i1 to i32
    %c0_i32_8 = arith.constant 0 : i32
    %13 = arith.cmpi ne, %12, %c0_i32_8 : i32
    scf.if %13 {
      %c0_10 = arith.constant 0 : index
      %c0_11 = arith.constant 0 : index
      %17 = vector.load %arg9[%c0_10, %c0_11] : memref<1x16xf32, #tpu.memory_space<vmem>>, vector<1x16xf32>
      %cst_12 = arith.constant dense<0.000000e+00> : vector<16xf32>
      %18 = vector.multi_reduction <add>, %5, %cst_12 [0] : vector<128x16xf32> to vector<16xf32>
      %19 = vector.shape_cast %18 : vector<16xf32> to vector<1x16xf32>
      %20 = arith.addf %17, %19 : vector<1x16xf32>
      %c0_13 = arith.constant 0 : index
      %c0_14 = arith.constant 0 : index
      %21 = vector.load %arg9[%c0_13, %c0_14] : memref<1x16xf32, #tpu.memory_space<vmem>>, vector<1x16xf32>
      tpu.vector_store %arg9[%c0_13, %c0_14], %20 {strides = array<i32>} : memref<1x16xf32, #tpu.memory_space<vmem>>, vector<1x16xf32>,
      %c0_15 = arith.constant 0 : index
      %c0_16 = arith.constant 0 : index
      %22 = vector.load %arg10[%c0_15, %c0_16] : memref<1x16xf32, #tpu.memory_space<vmem>>, vector<1x16xf32>
      %23 = arith.mulf %5, %5 : vector<128x16xf32>
      %cst_17 = arith.constant dense<0.000000e+00> : vector<16xf32>
      %24 = vector.multi_reduction <add>, %23, %cst_17 [0] : vector<128x16xf32> to vector<16xf32>
      %25 = vector.shape_cast %24 : vector<16xf32> to vector<1x16xf32>
      %26 = arith.addf %22, %25 : vector<1x16xf32>
      %c0_18 = arith.constant 0 : index
      %c0_19 = arith.constant 0 : index
      %27 = vector.load %arg10[%c0_18, %c0_19] : memref<1x16xf32, #tpu.memory_space<vmem>>, vector<1x16xf32>
      tpu.vector_store %arg10[%c0_18, %c0_19], %26 {strides = array<i32>} : memref<1x16xf32, #tpu.memory_space<vmem>>, vector<1x16xf32>,
    } else {
    }
    %c1_i32 = arith.constant 1 : i32
    %14 = arith.cmpi eq, %arg1, %c1_i32 : i32
    %15 = arith.extui %14 : i1 to i32
    %c0_i32_9 = arith.constant 0 : i32
    %16 = arith.cmpi ne, %15, %c0_i32_9 : i32
    scf.if %16 {
      %c0_10 = arith.constant 0 : index
      %c0_11 = arith.constant 0 : index
      %17 = vector.load %arg9[%c0_10, %c0_11] : memref<1x16xf32, #tpu.memory_space<vmem>>, vector<1x16xf32>
      %cst_12 = arith.constant 7.812500e-03 : f32
      %18 = vector.broadcast %cst_12 : f32 to vector<1x16xf32>
      %19 = arith.mulf %17, %18 : vector<1x16xf32>
      %c0_13 = arith.constant 0 : index
      %c0_14 = arith.constant 0 : index
      %20 = vector.load %arg10[%c0_13, %c0_14] : memref<1x16xf32, #tpu.memory_space<vmem>>, vector<1x16xf32>
      %cst_15 = arith.constant 7.812500e-03 : f32
      %21 = vector.broadcast %cst_15 : f32 to vector<1x16xf32>
      %22 = arith.mulf %20, %21 : vector<1x16xf32>
      %23 = arith.mulf %19, %19 : vector<1x16xf32>
      %24 = arith.subf %22, %23 : vector<1x16xf32>
      %cst_16 = arith.constant 0.000000e+00 : f32
      %25 = vector.broadcast %cst_16 : f32 to vector<1x16xf32>
      %26 = arith.maximumf %24, %25 : vector<1x16xf32>
      %cst_17 = arith.constant 9.99999974E-6 : f32
      %27 = vector.broadcast %cst_17 : f32 to vector<1x16xf32>
      %28 = arith.addf %26, %27 : vector<1x16xf32>
      %29 = math.rsqrt %28 : vector<1x16xf32>
      %c0_18 = arith.constant 0 : index
      %c0_19 = arith.constant 0 : index
      %30 = vector.load %arg6[%c0_18, %c0_19] : memref<1x16xf32, #tpu.memory_space<vmem>>, vector<1x16xf32>
      %31 = arith.mulf %29, %30 : vector<1x16xf32>
      %c0_20 = arith.constant 0 : index
      %c0_21 = arith.constant 0 : index
      %32 = vector.load %arg7[%c0_20, %c0_21] : memref<1x16xf32, #tpu.memory_space<vmem>>, vector<1x16xf32>
      %33 = arith.mulf %19, %31 : vector<1x16xf32>
      %34 = arith.subf %32, %33 : vector<1x16xf32>
      %35 = vector.broadcast %31 : vector<1x16xf32> to vector<128x16xf32>
      %36 = arith.mulf %5, %35 : vector<128x16xf32>
      %37 = vector.broadcast %34 : vector<1x16xf32> to vector<128x16xf32>
      %38 = arith.addf %36, %37 : vector<128x16xf32>
      %cst_22 = arith.constant 0.000000e+00 : f32
      %39 = vector.broadcast %cst_22 : f32 to vector<128x16xf32>
      %40 = arith.cmpf ogt, %38, %39 : vector<128x16xf32>
      %cst_23 = arith.constant 2.000000e-01 : f32
      %41 = vector.broadcast %cst_23 : f32 to vector<128x16xf32>
      %42 = arith.mulf %41, %38 : vector<128x16xf32>
      %43 = arith.select %40, %38, %42 : vector<128x16xi1>, vector<128x16xf32>
      %44 = arith.truncf %43 : vector<128x16xf32> to vector<128x16xbf16>
      %c0_24 = arith.constant 0 : index
      %c0_25 = arith.constant 0 : index
      %45 = vector.load %arg8[%c0_24, %c0_25] : memref<128x16xbf16, #tpu.memory_space<vmem>>, vector<128x16xbf16>
      tpu.vector_store %arg8[%c0_24, %c0_25], %44 {strides = array<i32>} : memref<128x16xbf16, #tpu.memory_space<vmem>>, vector<128x16xbf16>,
    } else {
    }
    return
  }
  func.func @transform_0(%arg0: i32, %arg1: i32, %arg2: i32) -> (i32, i32) {
    %c0_i32 = arith.constant 0 : i32
    %c0_i32_0 = arith.constant 0 : i32
    return %arg2, %c0_i32 : i32, i32
  }
  func.func @transform_1(%arg0: i32, %arg1: i32, %arg2: i32) -> (i32, i32) {
    %c0_i32 = arith.constant 0 : i32
    %c0_i32_0 = arith.constant 0 : i32
    return %c0_i32, %arg0 : i32, i32
  }
  func.func @transform_2(%arg0: i32, %arg1: i32, %arg2: i32) -> (i32, i32) {
    %c0_i32 = arith.constant 0 : i32
    %c0_i32_0 = arith.constant 0 : i32
    return %c0_i32, %arg0 : i32, i32
  }
  func.func @transform_3(%arg0: i32, %arg1: i32, %arg2: i32) -> (i32, i32) {
    %c0_i32 = arith.constant 0 : i32
    %c0_i32_0 = arith.constant 0 : i32
    return %c0_i32, %arg0 : i32, i32
  }
  func.func @transform_4(%arg0: i32, %arg1: i32, %arg2: i32) -> (i32, i32) {
    %c0_i32 = arith.constant 0 : i32
    %c0_i32_0 = arith.constant 0 : i32
    return %c0_i32, %arg0 : i32, i32
  }
  func.func @transform_5(%arg0: i32, %arg1: i32, %arg2: i32) -> (i32, i32) {
    %0 = arith.muli %arg2, %arg1 : i32
    %c0_i32 = arith.constant 0 : i32
    return %0, %arg0 : i32, i32
  }
}

module attributes {stable_mosaic.version = 11 : i64} {
  func.func @_conv_bn_leaky_kernel(%arg0: i32, %arg1: i32, %arg2: i32, %arg3: memref<32x256xbf16, #tpu.memory_space<vmem>>, %arg4: memref<256x32xbf16, #tpu.memory_space<vmem>>, %arg5: memref<1x32xf32, #tpu.memory_space<vmem>>, %arg6: memref<1x32xf32, #tpu.memory_space<vmem>>, %arg7: memref<1x32xf32, #tpu.memory_space<vmem>>, %arg8: memref<32x32xbf16, #tpu.memory_space<vmem>>, %arg9: memref<1x32xf32, #tpu.memory_space<vmem>>, %arg10: memref<1x32xf32, #tpu.memory_space<vmem>>) attributes {dimension_semantics = [#tpu.dimension_semantics<parallel>, #tpu.dimension_semantics<arbitrary>, #tpu.dimension_semantics<arbitrary>], iteration_bounds = array<i64: 1, 2, 1>, scalar_prefetch = 0 : i64, scratch_operands = 2 : i64, tpu.core_type = #tpu.core_type<tc>, window_params = [{transform_indices = @transform_0, window_bounds = array<i64: 32, 256>}, {transform_indices = @transform_1, window_bounds = array<i64: 256, 32>}, {transform_indices = @transform_2, window_bounds = array<i64: 1, 32>}, {transform_indices = @transform_3, window_bounds = array<i64: 1, 32>}, {transform_indices = @transform_4, window_bounds = array<i64: 1, 32>}, {transform_indices = @transform_5, window_bounds = array<i64: 32, 32>}]} {
    %c0 = arith.constant 0 : index
    %c0_0 = arith.constant 0 : index
    %0 = vector.load %arg3[%c0, %c0_0] : memref<32x256xbf16, #tpu.memory_space<vmem>>, vector<32x256xbf16>
    %c0_1 = arith.constant 0 : index
    %c0_2 = arith.constant 0 : index
    %1 = vector.load %arg4[%c0_1, %c0_2] : memref<256x32xbf16, #tpu.memory_space<vmem>>, vector<256x32xbf16>
    %cst = arith.constant dense<0.000000e+00> : vector<32x32xf32>
    %2 = tpu.matmul %0, %1, %cst {dimension_numbers = #tpu.dot_dimension_numbers<[1], [0], [0], [1], [0, 0, 1, 1], [], []>} : vector<32x256xbf16>, vector<256x32xbf16>, vector<32x32xf32> -> vector<32x32xf32>
    %c0_3 = arith.constant 0 : index
    %c0_4 = arith.constant 0 : index
    %3 = vector.load %arg5[%c0_3, %c0_4] : memref<1x32xf32, #tpu.memory_space<vmem>>, vector<1x32xf32>
    %4 = vector.broadcast %3 : vector<1x32xf32> to vector<32x32xf32>
    %5 = arith.addf %2, %4 : vector<32x32xf32>
    %c0_i32 = arith.constant 0 : i32
    %6 = arith.cmpi eq, %arg1, %c0_i32 : i32
    %c0_i32_5 = arith.constant 0 : i32
    %7 = arith.cmpi eq, %arg2, %c0_i32_5 : i32
    %8 = arith.andi %6, %7 : i1
    %9 = arith.extui %8 : i1 to i32
    %c0_i32_6 = arith.constant 0 : i32
    %10 = arith.cmpi ne, %9, %c0_i32_6 : i32
    scf.if %10 {
      %cst_10 = arith.constant 0.000000e+00 : f32
      %17 = vector.broadcast %cst_10 : f32 to vector<1x32xf32>
      %c0_11 = arith.constant 0 : index
      %c0_12 = arith.constant 0 : index
      %18 = vector.load %arg9[%c0_11, %c0_12] : memref<1x32xf32, #tpu.memory_space<vmem>>, vector<1x32xf32>
      tpu.vector_store %arg9[%c0_11, %c0_12], %17 {strides = array<i32>} : memref<1x32xf32, #tpu.memory_space<vmem>>, vector<1x32xf32>,
      %cst_13 = arith.constant 0.000000e+00 : f32
      %19 = vector.broadcast %cst_13 : f32 to vector<1x32xf32>
      %c0_14 = arith.constant 0 : index
      %c0_15 = arith.constant 0 : index
      %20 = vector.load %arg10[%c0_14, %c0_15] : memref<1x32xf32, #tpu.memory_space<vmem>>, vector<1x32xf32>
      tpu.vector_store %arg10[%c0_14, %c0_15], %19 {strides = array<i32>} : memref<1x32xf32, #tpu.memory_space<vmem>>, vector<1x32xf32>,
    } else {
    }
    %c0_i32_7 = arith.constant 0 : i32
    %11 = arith.cmpi eq, %arg1, %c0_i32_7 : i32
    %12 = arith.extui %11 : i1 to i32
    %c0_i32_8 = arith.constant 0 : i32
    %13 = arith.cmpi ne, %12, %c0_i32_8 : i32
    scf.if %13 {
      %c0_10 = arith.constant 0 : index
      %c0_11 = arith.constant 0 : index
      %17 = vector.load %arg9[%c0_10, %c0_11] : memref<1x32xf32, #tpu.memory_space<vmem>>, vector<1x32xf32>
      %cst_12 = arith.constant dense<0.000000e+00> : vector<32xf32>
      %18 = vector.multi_reduction <add>, %5, %cst_12 [0] : vector<32x32xf32> to vector<32xf32>
      %19 = vector.shape_cast %18 : vector<32xf32> to vector<1x32xf32>
      %20 = arith.addf %17, %19 : vector<1x32xf32>
      %c0_13 = arith.constant 0 : index
      %c0_14 = arith.constant 0 : index
      %21 = vector.load %arg9[%c0_13, %c0_14] : memref<1x32xf32, #tpu.memory_space<vmem>>, vector<1x32xf32>
      tpu.vector_store %arg9[%c0_13, %c0_14], %20 {strides = array<i32>} : memref<1x32xf32, #tpu.memory_space<vmem>>, vector<1x32xf32>,
      %c0_15 = arith.constant 0 : index
      %c0_16 = arith.constant 0 : index
      %22 = vector.load %arg10[%c0_15, %c0_16] : memref<1x32xf32, #tpu.memory_space<vmem>>, vector<1x32xf32>
      %23 = arith.mulf %5, %5 : vector<32x32xf32>
      %cst_17 = arith.constant dense<0.000000e+00> : vector<32xf32>
      %24 = vector.multi_reduction <add>, %23, %cst_17 [0] : vector<32x32xf32> to vector<32xf32>
      %25 = vector.shape_cast %24 : vector<32xf32> to vector<1x32xf32>
      %26 = arith.addf %22, %25 : vector<1x32xf32>
      %c0_18 = arith.constant 0 : index
      %c0_19 = arith.constant 0 : index
      %27 = vector.load %arg10[%c0_18, %c0_19] : memref<1x32xf32, #tpu.memory_space<vmem>>, vector<1x32xf32>
      tpu.vector_store %arg10[%c0_18, %c0_19], %26 {strides = array<i32>} : memref<1x32xf32, #tpu.memory_space<vmem>>, vector<1x32xf32>,
    } else {
    }
    %c1_i32 = arith.constant 1 : i32
    %14 = arith.cmpi eq, %arg1, %c1_i32 : i32
    %15 = arith.extui %14 : i1 to i32
    %c0_i32_9 = arith.constant 0 : i32
    %16 = arith.cmpi ne, %15, %c0_i32_9 : i32
    scf.if %16 {
      %c0_10 = arith.constant 0 : index
      %c0_11 = arith.constant 0 : index
      %17 = vector.load %arg9[%c0_10, %c0_11] : memref<1x32xf32, #tpu.memory_space<vmem>>, vector<1x32xf32>
      %cst_12 = arith.constant 3.125000e-02 : f32
      %18 = vector.broadcast %cst_12 : f32 to vector<1x32xf32>
      %19 = arith.mulf %17, %18 : vector<1x32xf32>
      %c0_13 = arith.constant 0 : index
      %c0_14 = arith.constant 0 : index
      %20 = vector.load %arg10[%c0_13, %c0_14] : memref<1x32xf32, #tpu.memory_space<vmem>>, vector<1x32xf32>
      %cst_15 = arith.constant 3.125000e-02 : f32
      %21 = vector.broadcast %cst_15 : f32 to vector<1x32xf32>
      %22 = arith.mulf %20, %21 : vector<1x32xf32>
      %23 = arith.mulf %19, %19 : vector<1x32xf32>
      %24 = arith.subf %22, %23 : vector<1x32xf32>
      %cst_16 = arith.constant 0.000000e+00 : f32
      %25 = vector.broadcast %cst_16 : f32 to vector<1x32xf32>
      %26 = arith.maximumf %24, %25 : vector<1x32xf32>
      %cst_17 = arith.constant 9.99999974E-6 : f32
      %27 = vector.broadcast %cst_17 : f32 to vector<1x32xf32>
      %28 = arith.addf %26, %27 : vector<1x32xf32>
      %29 = math.rsqrt %28 : vector<1x32xf32>
      %c0_18 = arith.constant 0 : index
      %c0_19 = arith.constant 0 : index
      %30 = vector.load %arg6[%c0_18, %c0_19] : memref<1x32xf32, #tpu.memory_space<vmem>>, vector<1x32xf32>
      %31 = arith.mulf %29, %30 : vector<1x32xf32>
      %c0_20 = arith.constant 0 : index
      %c0_21 = arith.constant 0 : index
      %32 = vector.load %arg7[%c0_20, %c0_21] : memref<1x32xf32, #tpu.memory_space<vmem>>, vector<1x32xf32>
      %33 = arith.mulf %19, %31 : vector<1x32xf32>
      %34 = arith.subf %32, %33 : vector<1x32xf32>
      %35 = vector.broadcast %31 : vector<1x32xf32> to vector<32x32xf32>
      %36 = arith.mulf %5, %35 : vector<32x32xf32>
      %37 = vector.broadcast %34 : vector<1x32xf32> to vector<32x32xf32>
      %38 = arith.addf %36, %37 : vector<32x32xf32>
      %cst_22 = arith.constant 0.000000e+00 : f32
      %39 = vector.broadcast %cst_22 : f32 to vector<32x32xf32>
      %40 = arith.cmpf ogt, %38, %39 : vector<32x32xf32>
      %cst_23 = arith.constant 2.000000e-01 : f32
      %41 = vector.broadcast %cst_23 : f32 to vector<32x32xf32>
      %42 = arith.mulf %41, %38 : vector<32x32xf32>
      %43 = arith.select %40, %38, %42 : vector<32x32xi1>, vector<32x32xf32>
      %44 = arith.truncf %43 : vector<32x32xf32> to vector<32x32xbf16>
      %c0_24 = arith.constant 0 : index
      %c0_25 = arith.constant 0 : index
      %45 = vector.load %arg8[%c0_24, %c0_25] : memref<32x32xbf16, #tpu.memory_space<vmem>>, vector<32x32xbf16>
      tpu.vector_store %arg8[%c0_24, %c0_25], %44 {strides = array<i32>} : memref<32x32xbf16, #tpu.memory_space<vmem>>, vector<32x32xbf16>,
    } else {
    }
    return
  }
  func.func @transform_0(%arg0: i32, %arg1: i32, %arg2: i32) -> (i32, i32) {
    %c0_i32 = arith.constant 0 : i32
    %c0_i32_0 = arith.constant 0 : i32
    return %arg2, %c0_i32 : i32, i32
  }
  func.func @transform_1(%arg0: i32, %arg1: i32, %arg2: i32) -> (i32, i32) {
    %c0_i32 = arith.constant 0 : i32
    %c0_i32_0 = arith.constant 0 : i32
    return %c0_i32, %arg0 : i32, i32
  }
  func.func @transform_2(%arg0: i32, %arg1: i32, %arg2: i32) -> (i32, i32) {
    %c0_i32 = arith.constant 0 : i32
    %c0_i32_0 = arith.constant 0 : i32
    return %c0_i32, %arg0 : i32, i32
  }
  func.func @transform_3(%arg0: i32, %arg1: i32, %arg2: i32) -> (i32, i32) {
    %c0_i32 = arith.constant 0 : i32
    %c0_i32_0 = arith.constant 0 : i32
    return %c0_i32, %arg0 : i32, i32
  }
  func.func @transform_4(%arg0: i32, %arg1: i32, %arg2: i32) -> (i32, i32) {
    %c0_i32 = arith.constant 0 : i32
    %c0_i32_0 = arith.constant 0 : i32
    return %c0_i32, %arg0 : i32, i32
  }
  func.func @transform_5(%arg0: i32, %arg1: i32, %arg2: i32) -> (i32, i32) {
    %0 = arith.muli %arg2, %arg1 : i32
    %c0_i32 = arith.constant 0 : i32
    return %0, %arg0 : i32, i32
  }
}

module attributes {stable_mosaic.version = 11 : i64} {
  func.func @_conv_act_kernel(%arg0: i32, %arg1: i32, %arg2: memref<8x512xbf16, #tpu.memory_space<vmem>>, %arg3: memref<512x8xbf16, #tpu.memory_space<vmem>>, %arg4: memref<1x8xf32, #tpu.memory_space<vmem>>, %arg5: memref<8x8xf32, #tpu.memory_space<vmem>>) attributes {dimension_semantics = [#tpu.dimension_semantics<parallel>, #tpu.dimension_semantics<parallel>], iteration_bounds = array<i64: 1, 1>, scalar_prefetch = 0 : i64, scratch_operands = 0 : i64, tpu.core_type = #tpu.core_type<tc>, window_params = [{transform_indices = @transform_0, window_bounds = array<i64: 8, 512>}, {transform_indices = @transform_1, window_bounds = array<i64: 512, 8>}, {transform_indices = @transform_2, window_bounds = array<i64: 1, 8>}, {transform_indices = @transform_3, window_bounds = array<i64: 8, 8>}]} {
    %c0 = arith.constant 0 : index
    %c0_0 = arith.constant 0 : index
    %0 = vector.load %arg2[%c0, %c0_0] : memref<8x512xbf16, #tpu.memory_space<vmem>>, vector<8x512xbf16>
    %c0_1 = arith.constant 0 : index
    %c0_2 = arith.constant 0 : index
    %1 = vector.load %arg3[%c0_1, %c0_2] : memref<512x8xbf16, #tpu.memory_space<vmem>>, vector<512x8xbf16>
    %cst = arith.constant dense<0.000000e+00> : vector<8x8xf32>
    %2 = tpu.matmul %0, %1, %cst {dimension_numbers = #tpu.dot_dimension_numbers<[1], [0], [0], [1], [0, 0, 1, 1], [], []>} : vector<8x512xbf16>, vector<512x8xbf16>, vector<8x8xf32> -> vector<8x8xf32>
    %c0_3 = arith.constant 0 : index
    %c0_4 = arith.constant 0 : index
    %3 = vector.load %arg4[%c0_3, %c0_4] : memref<1x8xf32, #tpu.memory_space<vmem>>, vector<1x8xf32>
    %4 = vector.broadcast %3 : vector<1x8xf32> to vector<8x8xf32>
    %5 = arith.addf %2, %4 : vector<8x8xf32>
    %6 = math.absf %5 : vector<8x8xf32>
    %cst_5 = arith.constant 0.000000e+00 : f32
    %7 = vector.broadcast %cst_5 : f32 to vector<8x8xf32>
    %8 = arith.subf %7, %6 : vector<8x8xf32>
    %9 = math.exp %8 : vector<8x8xf32>
    %cst_6 = arith.constant 0.000000e+00 : f32
    %10 = vector.broadcast %cst_6 : f32 to vector<8x8xf32>
    %11 = arith.cmpf oge, %5, %10 : vector<8x8xf32>
    %cst_7 = arith.constant 1.000000e+00 : f32
    %12 = vector.broadcast %cst_7 : f32 to vector<8x8xf32>
    %13 = arith.addf %12, %9 : vector<8x8xf32>
    %cst_8 = arith.constant 1.000000e+00 : f32
    %14 = vector.broadcast %cst_8 : f32 to vector<8x8xf32>
    %15 = arith.divf %14, %13 : vector<8x8xf32>
    %cst_9 = arith.constant 1.000000e+00 : f32
    %16 = vector.broadcast %cst_9 : f32 to vector<8x8xf32>
    %17 = arith.addf %16, %9 : vector<8x8xf32>
    %18 = arith.divf %9, %17 : vector<8x8xf32>
    %19 = arith.select %11, %15, %18 : vector<8x8xi1>, vector<8x8xf32>
    %c0_10 = arith.constant 0 : index
    %c0_11 = arith.constant 0 : index
    %20 = vector.load %arg5[%c0_10, %c0_11] : memref<8x8xf32, #tpu.memory_space<vmem>>, vector<8x8xf32>
    tpu.vector_store %arg5[%c0_10, %c0_11], %19 {strides = array<i32>} : memref<8x8xf32, #tpu.memory_space<vmem>>, vector<8x8xf32>,
    return
  }
  func.func @transform_0(%arg0: i32, %arg1: i32) -> (i32, i32) {
    %c0_i32 = arith.constant 0 : i32
    %c0_i32_0 = arith.constant 0 : i32
    return %arg0, %c0_i32 : i32, i32
  }
  func.func @transform_1(%arg0: i32, %arg1: i32) -> (i32, i32) {
    %c0_i32 = arith.constant 0 : i32
    %c0_i32_0 = arith.constant 0 : i32
    return %c0_i32, %arg1 : i32, i32
  }
  func.func @transform_2(%arg0: i32, %arg1: i32) -> (i32, i32) {
    %c0_i32 = arith.constant 0 : i32
    %c0_i32_0 = arith.constant 0 : i32
    return %c0_i32, %arg1 : i32, i32
  }
  func.func @transform_3(%arg0: i32, %arg1: i32) -> (i32, i32) {
    %c0_i32 = arith.constant 0 : i32
    return %arg0, %arg1 : i32, i32
  }
}

</mosaic_0001>

<bundles_post_ra>
// kernel: discriminator_forward.5
= control target key start
LH: loop header
LB: loop body
LE: loop exit
PB: predicated region body
PF: predicated region fallthrough
CT: control target
= control target key end

     0   :  { %vm931_vm0 = vcmask 261120   ;;  %vm2989_vm3 = vcmask 60416   ;;  %s5876_s1 = inlined_call_operand.vmem [shape: bf16[32,8], index: 1, kind: input, shape index: {}]   ;;  %s5877_s0 = inlined_call_operand.vmem [shape: bf16[2048,32], index: 0, kind: input, shape index: {}]   ;;  %s5878_s2 = inlined_call_operand.vmem [shape: f32[1,8], index: 2, kind: input, shape index: {}]   ;;  %s5879_s3 = inlined_call_operand.vmem [shape: bf16[2048,8], index: 3, kind: output, shape index: {}]  }
   0x1   :  { %v4027_v0 = vld [vmem:[%s5876_s1 + $0x8] sm:$0xff]  ;;  %v4026_v1 = vld [vmem:[%s5876_s1] sm:$0xff]  ;;  %v3900_v10 = vld [vmem:[%s5877_s0 + $0x10] sm:$0xff] }
   0x2   :  { %1322 = vmatpush.bf16.msra.mxu0 %v4027_v0  ;;  %4028 = vmatpush.bf16.msra.mxu1 %v4027_v0  ;;  %v3898_v2 = vld [vmem:[%s5877_s0] sm:$0xff]  ;;  %v3899_v6 = vld [vmem:[%s5877_s0 + $0x8] sm:$0xff]  ;;  %v3932_v11 = vld [vmem:[%s5877_s0 + $0x110] sm:$0xff] }
   0x3   :  { %4029 = vmatpush.bf16.msra.mxu2 %v4027_v0  ;;  %4030 = vmatpush.bf16.msra.mxu3 %v4027_v0  ;;  %v3930_v3 = vld [vmem:[%s5877_s0 + $0x100] sm:$0xff]  ;;  %v3931_v7 = vld [vmem:[%s5877_s0 + $0x108] sm:$0xff]  ;;  %v3964_v12 = vld [vmem:[%s5877_s0 + $0x210] sm:$0xff] }
   0x4   :  { %v3962_v4 = vld [vmem:[%s5877_s0 + $0x200] sm:$0xff]  ;;  %v3963_v8 = vld [vmem:[%s5877_s0 + $0x208] sm:$0xff]  ;;  %v3996_v13 = vld [vmem:[%s5877_s0 + $0x310] sm:$0xff] }
   0x5   :  { %v3994_v5 = vld [vmem:[%s5877_s0 + $0x300] sm:$0xff]  ;;  %v3995_v9 = vld [vmem:[%s5877_s0 + $0x308] sm:$0xff]  ;;  %v3901_v14 = vld [vmem:[%s5877_s0 + $0x18] sm:$0xff] }
   0x6   :  { %1323 = vmatpush.bf16.msra.mxu0 %v4026_v1  ;;  %4031 = vmatpush.bf16.msra.mxu1 %v4026_v1  ;;  %v3933_v15 = vld [vmem:[%s5877_s0 + $0x118] sm:$0xff]  ;;  %v3902_v18 = vld [vmem:[%s5877_s0 + $0x20] sm:$0xff]  ;;  %v3903_v22 = vld [vmem:[%s5877_s0 + $0x28] sm:$0xff] }
   0x7   :  { %4032 = vmatpush.bf16.msra.mxu2 %v4026_v1  ;;  %4033 = vmatpush.bf16.msra.mxu3 %v4026_v1  ;;  %v3965_v16 = vld [vmem:[%s5877_s0 + $0x218] sm:$0xff]  ;;  %v3934_v19 = vld [vmem:[%s5877_s0 + $0x120] sm:$0xff]  ;;  %v3935_v23 = vld [vmem:[%s5877_s0 + $0x128] sm:$0xff] }
   0x8   :  { %v3997_v17 = vld [vmem:[%s5877_s0 + $0x318] sm:$0xff]  ;;  %v3966_v20 = vld [vmem:[%s5877_s0 + $0x220] sm:$0xff]  ;;  %v3967_v24 = vld [vmem:[%s5877_s0 + $0x228] sm:$0xff] }
   0x9   :  { %3770 = vmatmul.msk.bf16.vlgmr.msra.gmra.mxu0 %vm931_vm0, %v3898_v2  ;;  %3802 = vmatmul.msk.bf16.vlgmr.msra.gmra.mxu1 %vm931_vm0, %v3930_v3  ;;  %v3998_v21 = vld [vmem:[%s5877_s0 + $0x320] sm:$0xff]  ;;  %v3999_v25 = vld [vmem:[%s5877_s0 + $0x328] sm:$0xff]  ;;  %v3904_v26 = vld [vmem:[%s5877_s0 + $0x30] sm:$0xff] }
   0xa   :  { %3834 = vmatmul.msk.bf16.vlgmr.msra.gmra.mxu2 %vm931_vm0, %v3962_v4  ;;  %3866 = vmatmul.msk.bf16.vlgmr.msra.gmra.mxu3 %vm931_vm0, %v3994_v5  ;;  %v3936_v27 = vld [vmem:[%s5877_s0 + $0x130] sm:$0xff]  ;;  %v3905_v30 = vld [vmem:[%s5877_s0 + $0x38] sm:$0xff]  ;;  %v4195_v34 = vld [vmem:[%s5878_s2] ss:$0 sm:$0xff] }
   0xb   :  { %v3968_v28 = vld [vmem:[%s5877_s0 + $0x230] sm:$0xff]  ;;  %v3937_v31 = vld [vmem:[%s5877_s0 + $0x138] sm:$0xff]  ;;  %v3906_v35 = vld [vmem:[%s5877_s0 + $0x40] sm:$0xff] }
   0xc   :  { %v4000_v29 = vld [vmem:[%s5877_s0 + $0x330] sm:$0xff]  ;;  %v3969_v32 = vld [vmem:[%s5877_s0 + $0x238] sm:$0xff]  ;;  %v3938_v36 = vld [vmem:[%s5877_s0 + $0x140] sm:$0xff] }
   0xd   :  { %v4001_v33 = vld [vmem:[%s5877_s0 + $0x338] sm:$0xff]  ;;  %v3970_v39 = vld [vmem:[%s5877_s0 + $0x240] sm:$0xff] }
   0xe   :  { %v4002_v40 = vld [vmem:[%s5877_s0 + $0x340] sm:$0xff] }
  0x19   :  { %3771 = vmatmul.msk.bf16.gmra.mxu0 %vm931_vm0, %v3899_v6  ;;  %3803 = vmatmul.msk.bf16.gmra.mxu1 %vm931_vm0, %v3931_v7  ;;  %v3907_v7 = vld [vmem:[%s5877_s0 + $0x48] sm:$0xff] }
  0x1a   :  { %3835 = vmatmul.msk.bf16.gmra.mxu2 %vm931_vm0, %v3963_v8  ;;  %3867 = vmatmul.msk.bf16.gmra.mxu3 %vm931_vm0, %v3995_v9  ;;  %v3939_v8 = vld [vmem:[%s5877_s0 + $0x148] sm:$0xff] }
  0x29   :  { %3772 = vmatmul.msk.bf16.gmra.mxu0 %vm931_vm0, %v3900_v10  ;;  %3804 = vmatmul.msk.bf16.gmra.mxu1 %vm931_vm0, %v3932_v11 }
  0x2a   :  { %3836 = vmatmul.msk.bf16.gmra.mxu2 %vm931_vm0, %v3964_v12  ;;  %3868 = vmatmul.msk.bf16.gmra.mxu3 %vm931_vm0, %v3996_v13  ;;  %v3971_v13 = vld [vmem:[%s5877_s0 + $0x248] sm:$0xff] }
  0x39   :  { %3773 = vmatmul.msk.bf16.gmra.mxu0 %vm931_vm0, %v3901_v14  ;;  %3805 = vmatmul.msk.bf16.gmra.mxu1 %vm931_vm0, %v3933_v15  ;;  %v4003_v14 = vld [vmem:[%s5877_s0 + $0x348] sm:$0xff] }
  0x3a   :  { %3837 = vmatmul.msk.bf16.gmra.mxu2 %vm931_vm0, %v3965_v16  ;;  %3869 = vmatmul.msk.bf16.gmra.mxu3 %vm931_vm0, %v3997_v17 }
  0x49   :  { %3774 = vmatmul.msk.bf16.gmra.mxu0 %vm931_vm0, %v3902_v18  ;;  %3806 = vmatmul.msk.bf16.gmra.mxu1 %vm931_vm0, %v3934_v19 }
  0x4a   :  { %3838 = vmatmul.msk.bf16.gmra.mxu2 %vm931_vm0, %v3966_v20  ;;  %3870 = vmatmul.msk.bf16.gmra.mxu3 %vm931_vm0, %v3998_v21 }
  0x59   :  { %3775 = vmatmul.msk.bf16.gmra.mxu0 %vm931_vm0, %v3903_v22  ;;  %3807 = vmatmul.msk.bf16.gmra.mxu1 %vm931_vm0, %v3935_v23 }
  0x5a   :  { %3839 = vmatmul.msk.bf16.gmra.mxu2 %vm931_vm0, %v3967_v24  ;;  %3871 = vmatmul.msk.bf16.gmra.mxu3 %vm931_vm0, %v3999_v25 }
  0x69   :  { %3776 = vmatmul.msk.bf16.gmra.mxu0 %vm931_vm0, %v3904_v26  ;;  %3808 = vmatmul.msk.bf16.gmra.mxu1 %vm931_vm0, %v3936_v27 }
  0x6a   :  { %3840 = vmatmul.msk.bf16.gmra.mxu2 %vm931_vm0, %v3968_v28  ;;  %3872 = vmatmul.msk.bf16.gmra.mxu3 %vm931_vm0, %v4000_v29 }
  0x79   :  { %3777 = vmatmul.msk.bf16.gmra.mxu0 %vm931_vm0, %v3905_v30  ;;  %3809 = vmatmul.msk.bf16.gmra.mxu1 %vm931_vm0, %v3937_v31 }
  0x7a   :  { %3841 = vmatmul.msk.bf16.gmra.mxu2 %vm931_vm0, %v3969_v32  ;;  %3873 = vmatmul.msk.bf16.gmra.mxu3 %vm931_vm0, %v4001_v33 }
  0x86   :  { %v1325_v37 = vpop.f32.mrf.mxu0  ;;  %v1485_v38 = vpop.f32.mrf.mxu1 }
  0x87   :  { %v1326_v41 = vadd.f32 %v4195_v34, %v1325_v37  ;;  %v1486_v42 = vadd.f32 %v4195_v34, %v1485_v38 }
  0x89   :  { %vm1965_vm1 = vcmp.gt.f32.partialorder %v1326_v41, 0.0  ;;  %v2221_v43 = vmul.f32 0.2, %v1326_v41  ;;  %vm2029_vm2 = vcmp.gt.f32.partialorder %v1486_v42, 0.0  ;;  %v2285_v44 = vmul.f32 0.2, %v1486_v42  ;;  %3778 = vmatmul.msk.bf16.gmra.mxu0 %vm931_vm0, %v3906_v35  ;;  %3810 = vmatmul.msk.bf16.gmra.mxu1 %vm931_vm0, %v3938_v36 }
  0x8a   :  { %3842 = vmatmul.msk.bf16.gmra.mxu2 %vm931_vm0, %v3970_v39  ;;  %3874 = vmatmul.msk.bf16.gmra.mxu3 %vm931_vm0, %v4002_v40 }
  0x8b   :  { %v2477_v45 = vsel %vm1965_vm1, %v1326_v41, %v2221_v43  ;;  %v2541_v46 = vsel %vm2029_vm2, %v1486_v42, %v2285_v44 }
  0x8c   :  { %v2733_v47 = vpack.c.bf16 %v2477_v45, %v2477_v45  ;;  %v2797_v48 = vpack.c.bf16 %v2541_v46, %v2541_v46 }
  0x8d   :  { %v1645_v49 = vpop.f32.mrf.mxu2  ;;  %v1805_v50 = vpop.f32.mrf.mxu3 }
  0x8e   :  { %2990 = vst.msk [vmem:[%s5879_s3] sm:$0xf] %vm2989_vm3, %v2733_v47  ;;  %v1646_v51 = vadd.f32 %v4195_v34, %v1645_v49  ;;  %v1806_v52 = vadd.f32 %v4195_v34, %v1805_v50  ;;  %v1327_v53 = vpop.f32.mrf.mxu0  ;;  %v1487_v54 = vpop.f32.mrf.mxu1 }
  0x8f   :  { %3054 = vst.msk [vmem:[%s5879_s3 + $0x100] sm:$0xf] %vm2989_vm3, %v2797_v48  ;;  %v1328_v55 = vadd.f32 %v4195_v34, %v1327_v53  ;;  %v1488_v56 = vadd.f32 %v4195_v34, %v1487_v54  ;;  %v3940_v53 = vld [vmem:[%s5877_s0 + $0x150] sm:$0xff] }
  0x90   :  { %vm2093_vm4 = vcmp.gt.f32.partialorder %v1646_v51, 0.0  ;;  %v2349_v57 = vmul.f32 0.2, %v1646_v51  ;;  %vm2157_vm5 = vcmp.gt.f32.partialorder %v1806_v52, 0.0  ;;  %v2413_v58 = vmul.f32 0.2, %v1806_v52 }
  0x91   :  { %vm1966_vm6 = vcmp.gt.f32.partialorder %v1328_v55, 0.0  ;;  %v2222_v59 = vmul.f32 0.2, %v1328_v55  ;;  %vm2030_vm7 = vcmp.gt.f32.partialorder %v1488_v56, 0.0  ;;  %v2286_v60 = vmul.f32 0.2, %v1488_v56 }
  0x92   :  { %v2605_v61 = vsel %vm2093_vm4, %v1646_v51, %v2349_v57  ;;  %v2669_v62 = vsel %vm2157_vm5, %v1806_v52, %v2413_v58  ;;  %v3908_v52 = vld [vmem:[%s5877_s0 + $0x50] sm:$0xff] }
  0x93   :  { %v2861_v63 = vpack.c.bf16 %v2605_v61, %v2605_v61  ;;  %v2925_v0 = vpack.c.bf16 %v2669_v62, %v2669_v62  ;;  %v2478_v1 = vsel %vm1966_vm6, %v1328_v55, %v2222_v59  ;;  %v2542_v2 = vsel %vm2030_vm7, %v1488_v56, %v2286_v60  ;;  %v3972_v58 = vld [vmem:[%s5877_s0 + $0x250] sm:$0xff] }
  0x94   :  { %v2734_v3 = vpack.c.bf16 %v2478_v1, %v2478_v1  ;;  %v2798_v4 = vpack.c.bf16 %v2542_v2, %v2542_v2  ;;  %v4004_v59 = vld [vmem:[%s5877_s0 + $0x350] sm:$0xff] }
  0x95   :  { %3118 = vst.msk [vmem:[%s5879_s3 + $0x200] sm:$0xf] %vm2989_vm3, %v2861_v63  ;;  %v1647_v5 = vpop.f32.mrf.mxu2  ;;  %v1807_v6 = vpop.f32.mrf.mxu3 }
  0x96   :  { %3182 = vst.msk [vmem:[%s5879_s3 + $0x300] sm:$0xf] %vm2989_vm3, %v2925_v0  ;;  %v1648_v9 = vadd.f32 %v4195_v34, %v1647_v5  ;;  %v1808_v10 = vadd.f32 %v4195_v34, %v1807_v6  ;;  %v1330_v11 = vpop.f32.mrf.mxu0  ;;  %v1490_v12 = vpop.f32.mrf.mxu1 }
  0x97   :  { %2991 = vst.msk [vmem:[%s5879_s3 + $0x4] sm:$0xf] %vm2989_vm3, %v2734_v3  ;;  %v1331_v15 = vadd.f32 %v4195_v34, %v1330_v11  ;;  %v1491_v16 = vadd.f32 %v4195_v34, %v1490_v12 }
  0x98   :  { %3055 = vst.msk [vmem:[%s5879_s3 + $0x104] sm:$0xf] %vm2989_vm3, %v2798_v4  ;;  %vm2094_vm8 = vcmp.gt.f32.partialorder %v1648_v9, 0.0  ;;  %v2350_v17 = vmul.f32 0.2, %v1648_v9  ;;  %vm2158_vm9 = vcmp.gt.f32.partialorder %v1808_v10, 0.0 }
  0x99   :  { %v2414_v18 = vmul.f32 0.2, %v1808_v10  ;;  %vm1967_vm10 = vcmp.gt.f32.partialorder %v1331_v15, 0.0  ;;  %v2223_v19 = vmul.f32 0.2, %v1331_v15  ;;  %vm2031_vm11 = vcmp.gt.f32.partialorder %v1491_v16, 0.0  ;;  %3779 = vmatmul.msk.bf16.gmra.mxu0 %vm931_vm0, %v3907_v7  ;;  %3811 = vmatmul.msk.bf16.gmra.mxu1 %vm931_vm0, %v3939_v8 }
  0x9a   :  { %v2606_v20 = vsel %vm2094_vm8, %v1648_v9, %v2350_v17  ;;  %v2287_v21 = vmul.f32 0.2, %v1491_v16  ;;  %3843 = vmatmul.msk.bf16.gmra.mxu2 %vm931_vm0, %v3971_v13  ;;  %3875 = vmatmul.msk.bf16.gmra.mxu3 %vm931_vm0, %v4003_v14 }
  0x9b   :  { %v2862_v22 = vpack.c.bf16 %v2606_v20, %v2606_v20  ;;  %v2670_v23 = vsel %vm2158_vm9, %v1808_v10, %v2414_v18  ;;  %v2479_v24 = vsel %vm1967_vm10, %v1331_v15, %v2223_v19 }
  0x9c   :  { %v2926_v25 = vpack.c.bf16 %v2670_v23, %v2670_v23  ;;  %v2735_v26 = vpack.c.bf16 %v2479_v24, %v2479_v24  ;;  %v2543_v27 = vsel %vm2031_vm11, %v1491_v16, %v2287_v21 }
  0x9d   :  { %3119 = vst.msk [vmem:[%s5879_s3 + $0x204] sm:$0xf] %vm2989_vm3, %v2862_v22  ;;  %v2799_v28 = vpack.c.bf16 %v2543_v27, %v2543_v27  ;;  %v1650_v29 = vpop.f32.mrf.mxu2  ;;  %v1810_v30 = vpop.f32.mrf.mxu3 }
  0x9e   :  { %3183 = vst.msk [vmem:[%s5879_s3 + $0x304] sm:$0xf] %vm2989_vm3, %v2926_v25  ;;  %v1651_v31 = vadd.f32 %v4195_v34, %v1650_v29  ;;  %v1811_v32 = vadd.f32 %v4195_v34, %v1810_v30  ;;  %v1332_v33 = vpop.f32.mrf.mxu0  ;;  %v1492_v35 = vpop.f32.mrf.mxu1 }
  0x9f   :  { %2992 = vst.msk [vmem:[%s5879_s3 + $0x8] sm:$0xf] %vm2989_vm3, %v2735_v26  ;;  %v1333_v36 = vadd.f32 %v4195_v34, %v1332_v33  ;;  %v1493_v37 = vadd.f32 %v4195_v34, %v1492_v35  ;;  %v3941_v33 = vld [vmem:[%s5877_s0 + $0x158] sm:$0xff] }
  0xa0   :  { %3056 = vst.msk [vmem:[%s5879_s3 + $0x108] sm:$0xf] %vm2989_vm3, %v2799_v28  ;;  %vm2095_vm12 = vcmp.gt.f32.partialorder %v1651_v31, 0.0  ;;  %v2351_v38 = vmul.f32 0.2, %v1651_v31  ;;  %vm2159_vm13 = vcmp.gt.f32.partialorder %v1811_v32, 0.0 }
  0xa1   :  { %v2415_v39 = vmul.f32 0.2, %v1811_v32  ;;  %vm1968_vm14 = vcmp.gt.f32.partialorder %v1333_v36, 0.0  ;;  %v2224_v40 = vmul.f32 0.2, %v1333_v36  ;;  %vm2032_vm15 = vcmp.gt.f32.partialorder %v1493_v37, 0.0 }
  0xa2   :  { %v2607_v41 = vsel %vm2095_vm12, %v1651_v31, %v2351_v38  ;;  %v2288_v42 = vmul.f32 0.2, %v1493_v37 }
  0xa3   :  { %v2863_v43 = vpack.c.bf16 %v2607_v41, %v2607_v41  ;;  %v2671_v44 = vsel %vm2159_vm13, %v1811_v32, %v2415_v39  ;;  %v2480_v45 = vsel %vm1968_vm14, %v1333_v36, %v2224_v40  ;;  %v3909_v32 = vld [vmem:[%s5877_s0 + $0x58] sm:$0xff] }
  0xa4   :  { %v2927_v46 = vpack.c.bf16 %v2671_v44, %v2671_v44  ;;  %v2736_v47 = vpack.c.bf16 %v2480_v45, %v2480_v45  ;;  %v2544_v48 = vsel %vm2032_vm15, %v1493_v37, %v2288_v42  ;;  %v3973_v39 = vld [vmem:[%s5877_s0 + $0x258] sm:$0xff] }
  0xa5   :  { %3120 = vst.msk [vmem:[%s5879_s3 + $0x208] sm:$0xf] %vm2989_vm3, %v2863_v43  ;;  %v2800_v49 = vpack.c.bf16 %v2544_v48, %v2544_v48  ;;  %v1652_v50 = vpop.f32.mrf.mxu2  ;;  %v1812_v51 = vpop.f32.mrf.mxu3  ;;  %v4005_v40 = vld [vmem:[%s5877_s0 + $0x358] sm:$0xff] }
  0xa6   :  { %3184 = vst.msk [vmem:[%s5879_s3 + $0x308] sm:$0xf] %vm2989_vm3, %v2927_v46  ;;  %v1653_v54 = vadd.f32 %v4195_v34, %v1652_v50  ;;  %v1813_v55 = vadd.f32 %v4195_v34, %v1812_v51  ;;  %v1335_v56 = vpop.f32.mrf.mxu0  ;;  %v1495_v57 = vpop.f32.mrf.mxu1 }
  0xa7   :  { %2993 = vst.msk [vmem:[%s5879_s3 + $0xc] sm:$0xf] %vm2989_vm3, %v2736_v47  ;;  %v1336_v60 = vadd.f32 %v4195_v34, %v1335_v56  ;;  %v1496_v61 = vadd.f32 %v4195_v34, %v1495_v57 }
  0xa8   :  { %3057 = vst.msk [vmem:[%s5879_s3 + $0x10c] sm:$0xf] %vm2989_vm3, %v2800_v49  ;;  %vm2096_vm1 = vcmp.gt.f32.partialorder %v1653_v54, 0.0  ;;  %v2352_v62 = vmul.f32 0.2, %v1653_v54  ;;  %vm2160_vm2 = vcmp.gt.f32.partialorder %v1813_v55, 0.0 }
  0xa9   :  { %v2416_v63 = vmul.f32 0.2, %v1813_v55  ;;  %vm1969_vm4 = vcmp.gt.f32.partialorder %v1336_v60, 0.0  ;;  %v2225_v0 = vmul.f32 0.2, %v1336_v60  ;;  %vm2033_vm5 = vcmp.gt.f32.partialorder %v1496_v61, 0.0  ;;  %3780 = vmatmul.msk.bf16.gmra.mxu0 %vm931_vm0, %v3908_v52  ;;  %3812 = vmatmul.msk.bf16.gmra.mxu1 %vm931_vm0, %v3940_v53 }
  0xaa   :  { %v2608_v1 = vsel %vm2096_vm1, %v1653_v54, %v2352_v62  ;;  %v2289_v2 = vmul.f32 0.2, %v1496_v61  ;;  %3844 = vmatmul.msk.bf16.gmra.mxu2 %vm931_vm0, %v3972_v58  ;;  %3876 = vmatmul.msk.bf16.gmra.mxu3 %vm931_vm0, %v4004_v59 }
  0xab   :  { %v2864_v3 = vpack.c.bf16 %v2608_v1, %v2608_v1  ;;  %v2672_v4 = vsel %vm2160_vm2, %v1813_v55, %v2416_v63  ;;  %v2481_v5 = vsel %vm1969_vm4, %v1336_v60, %v2225_v0 }
  0xac   :  { %v2928_v6 = vpack.c.bf16 %v2672_v4, %v2672_v4  ;;  %v2737_v7 = vpack.c.bf16 %v2481_v5, %v2481_v5  ;;  %v2545_v8 = vsel %vm2033_vm5, %v1496_v61, %v2289_v2 }
  0xad   :  { %3121 = vst.msk [vmem:[%s5879_s3 + $0x20c] sm:$0xf] %vm2989_vm3, %v2864_v3  ;;  %v2801_v9 = vpack.c.bf16 %v2545_v8, %v2545_v8  ;;  %v1655_v10 = vpop.f32.mrf.mxu2  ;;  %v1815_v11 = vpop.f32.mrf.mxu3 }
  0xae   :  { %3185 = vst.msk [vmem:[%s5879_s3 + $0x30c] sm:$0xf] %vm2989_vm3, %v2928_v6  ;;  %v1656_v12 = vadd.f32 %v4195_v34, %v1655_v10  ;;  %v1816_v13 = vadd.f32 %v4195_v34, %v1815_v11  ;;  %v1337_v14 = vpop.f32.mrf.mxu0  ;;  %v1497_v15 = vpop.f32.mrf.mxu1 }
  0xaf   :  { %2994 = vst.msk [vmem:[%s5879_s3 + $0x10] sm:$0xf] %vm2989_vm3, %v2737_v7  ;;  %v1338_v16 = vadd.f32 %v4195_v34, %v1337_v14  ;;  %v1498_v17 = vadd.f32 %v4195_v34, %v1497_v15  ;;  %v3942_v14 = vld [vmem:[%s5877_s0 + $0x160] sm:$0xff] }
  0xb0   :  { %3058 = vst.msk [vmem:[%s5879_s3 + $0x110] sm:$0xf] %vm2989_vm3, %v2801_v9  ;;  %vm2097_vm6 = vcmp.gt.f32.partialorder %v1656_v12, 0.0  ;;  %v2353_v18 = vmul.f32 0.2, %v1656_v12  ;;  %vm2161_vm7 = vcmp.gt.f32.partialorder %v1816_v13, 0.0 }
  0xb1   :  { %v2417_v19 = vmul.f32 0.2, %v1816_v13  ;;  %vm1970_vm8 = vcmp.gt.f32.partialorder %v1338_v16, 0.0  ;;  %v2226_v20 = vmul.f32 0.2, %v1338_v16  ;;  %vm2034_vm9 = vcmp.gt.f32.partialorder %v1498_v17, 0.0 }
  0xb2   :  { %v2609_v21 = vsel %vm2097_vm6, %v1656_v12, %v2353_v18  ;;  %v2290_v22 = vmul.f32 0.2, %v1498_v17 }
  0xb3   :  { %v2865_v23 = vpack.c.bf16 %v2609_v21, %v2609_v21  ;;  %v2673_v24 = vsel %vm2161_vm7, %v1816_v13, %v2417_v19  ;;  %v2482_v25 = vsel %vm1970_vm8, %v1338_v16, %v2226_v20  ;;  %v3910_v13 = vld [vmem:[%s5877_s0 + $0x60] sm:$0xff] }
  0xb4   :  { %v2929_v26 = vpack.c.bf16 %v2673_v24, %v2673_v24  ;;  %v2738_v27 = vpack.c.bf16 %v2482_v25, %v2482_v25  ;;  %v2546_v28 = vsel %vm2034_vm9, %v1498_v17, %v2290_v22  ;;  %v3974_v19 = vld [vmem:[%s5877_s0 + $0x260] sm:$0xff] }
  0xb5   :  { %3122 = vst.msk [vmem:[%s5879_s3 + $0x210] sm:$0xf] %vm2989_vm3, %v2865_v23  ;;  %v2802_v29 = vpack.c.bf16 %v2546_v28, %v2546_v28  ;;  %v1657_v30 = vpop.f32.mrf.mxu2  ;;  %v1817_v31 = vpop.f32.mrf.mxu3  ;;  %v4006_v20 = vld [vmem:[%s5877_s0 + $0x360] sm:$0xff] }
  0xb6   :  { %3186 = vst.msk [vmem:[%s5879_s3 + $0x310] sm:$0xf] %vm2989_vm3, %v2929_v26  ;;  %v1658_v35 = vadd.f32 %v4195_v34, %v1657_v30  ;;  %v1818_v36 = vadd.f32 %v4195_v34, %v1817_v31  ;;  %v1340_v37 = vpop.f32.mrf.mxu0  ;;  %v1500_v38 = vpop.f32.mrf.mxu1 }
  0xb7   :  { %2995 = vst.msk [vmem:[%s5879_s3 + $0x14] sm:$0xf] %vm2989_vm3, %v2738_v27  ;;  %v1341_v41 = vadd.f32 %v4195_v34, %v1340_v37  ;;  %v1501_v42 = vadd.f32 %v4195_v34, %v1500_v38 }
  0xb8   :  { %3059 = vst.msk [vmem:[%s5879_s3 + $0x114] sm:$0xf] %vm2989_vm3, %v2802_v29  ;;  %vm2098_vm10 = vcmp.gt.f32.partialorder %v1658_v35, 0.0  ;;  %v2354_v43 = vmul.f32 0.2, %v1658_v35  ;;  %vm2162_vm11 = vcmp.gt.f32.partialorder %v1818_v36, 0.0 }
  0xb9   :  { %v2418_v44 = vmul.f32 0.2, %v1818_v36  ;;  %vm1971_vm12 = vcmp.gt.f32.partialorder %v1341_v41, 0.0  ;;  %v2227_v45 = vmul.f32 0.2, %v1341_v41  ;;  %vm2035_vm13 = vcmp.gt.f32.partialorder %v1501_v42, 0.0  ;;  %3781 = vmatmul.msk.bf16.gmra.mxu0 %vm931_vm0, %v3909_v32  ;;  %3813 = vmatmul.msk.bf16.gmra.mxu1 %vm931_vm0, %v3941_v33 }
  0xba   :  { %v2610_v46 = vsel %vm2098_vm10, %v1658_v35, %v2354_v43  ;;  %v2291_v47 = vmul.f32 0.2, %v1501_v42  ;;  %3845 = vmatmul.msk.bf16.gmra.mxu2 %vm931_vm0, %v3973_v39  ;;  %3877 = vmatmul.msk.bf16.gmra.mxu3 %vm931_vm0, %v4005_v40 }
  0xbb   :  { %v2866_v48 = vpack.c.bf16 %v2610_v46, %v2610_v46  ;;  %v2674_v49 = vsel %vm2162_vm11, %v1818_v36, %v2418_v44  ;;  %v2483_v50 = vsel %vm1971_vm12, %v1341_v41, %v2227_v45 }
  0xbc   :  { %v2930_v51 = vpack.c.bf16 %v2674_v49, %v2674_v49  ;;  %v2739_v52 = vpack.c.bf16 %v2483_v50, %v2483_v50  ;;  %v2547_v53 = vsel %vm2035_vm13, %v1501_v42, %v2291_v47 }
  0xbd   :  { %3123 = vst.msk [vmem:[%s5879_s3 + $0x214] sm:$0xf] %vm2989_vm3, %v2866_v48  ;;  %v2803_v54 = vpack.c.bf16 %v2547_v53, %v2547_v53  ;;  %v1660_v55 = vpop.f32.mrf.mxu2  ;;  %v1820_v56 = vpop.f32.mrf.mxu3 }
  0xbe   :  { %3187 = vst.msk [vmem:[%s5879_s3 + $0x314] sm:$0xf] %vm2989_vm3, %v2930_v51  ;;  %v1661_v57 = vadd.f32 %v4195_v34, %v1660_v55  ;;  %v1821_v58 = vadd.f32 %v4195_v34, %v1820_v56  ;;  %v1342_v59 = vpop.f32.mrf.mxu0  ;;  %v1502_v60 = vpop.f32.mrf.mxu1 }
  0xbf   :  { %2996 = vst.msk [vmem:[%s5879_s3 + $0x18] sm:$0xf] %vm2989_vm3, %v2739_v52  ;;  %v1343_v61 = vadd.f32 %v4195_v34, %v1342_v59  ;;  %v1503_v62 = vadd.f32 %v4195_v34, %v1502_v60  ;;  %v3943_v59 = vld [vmem:[%s5877_s0 + $0x168] sm:$0xff] }
  0xc0   :  { %3060 = vst.msk [vmem:[%s5879_s3 + $0x118] sm:$0xf] %vm2989_vm3, %v2803_v54  ;;  %vm2099_vm14 = vcmp.gt.f32.partialorder %v1661_v57, 0.0  ;;  %v2355_v63 = vmul.f32 0.2, %v1661_v57  ;;  %vm2163_vm15 = vcmp.gt.f32.partialorder %v1821_v58, 0.0 }
  0xc1   :  { %v2419_v0 = vmul.f32 0.2, %v1821_v58  ;;  %vm1972_vm1 = vcmp.gt.f32.partialorder %v1343_v61, 0.0  ;;  %v2228_v1 = vmul.f32 0.2, %v1343_v61  ;;  %vm2036_vm2 = vcmp.gt.f32.partialorder %v1503_v62, 0.0 }
  0xc2   :  { %v2611_v2 = vsel %vm2099_vm14, %v1661_v57, %v2355_v63  ;;  %v2292_v3 = vmul.f32 0.2, %v1503_v62 }
  0xc3   :  { %v2867_v4 = vpack.c.bf16 %v2611_v2, %v2611_v2  ;;  %v2675_v5 = vsel %vm2163_vm15, %v1821_v58, %v2419_v0  ;;  %v2484_v6 = vsel %vm1972_vm1, %v1343_v61, %v2228_v1  ;;  %v3911_v58 = vld [vmem:[%s5877_s0 + $0x68] sm:$0xff] }
  0xc4   :  { %v2931_v7 = vpack.c.bf16 %v2675_v5, %v2675_v5  ;;  %v2740_v8 = vpack.c.bf16 %v2484_v6, %v2484_v6  ;;  %v2548_v9 = vsel %vm2036_vm2, %v1503_v62, %v2292_v3  ;;  %v3975_v0 = vld [vmem:[%s5877_s0 + $0x268] sm:$0xff] }
  0xc5   :  { %3124 = vst.msk [vmem:[%s5879_s3 + $0x218] sm:$0xf] %vm2989_vm3, %v2867_v4  ;;  %v2804_v10 = vpack.c.bf16 %v2548_v9, %v2548_v9  ;;  %v1662_v11 = vpop.f32.mrf.mxu2  ;;  %v1822_v12 = vpop.f32.mrf.mxu3  ;;  %v4007_v1 = vld [vmem:[%s5877_s0 + $0x368] sm:$0xff] }
  0xc6   :  { %3188 = vst.msk [vmem:[%s5879_s3 + $0x318] sm:$0xf] %vm2989_vm3, %v2931_v7  ;;  %v1663_v15 = vadd.f32 %v4195_v34, %v1662_v11  ;;  %v1823_v16 = vadd.f32 %v4195_v34, %v1822_v12  ;;  %v1345_v17 = vpop.f32.mrf.mxu0  ;;  %v1505_v18 = vpop.f32.mrf.mxu1 }
  0xc7   :  { %2997 = vst.msk [vmem:[%s5879_s3 + $0x1c] sm:$0xf] %vm2989_vm3, %v2740_v8  ;;  %v1346_v21 = vadd.f32 %v4195_v34, %v1345_v17  ;;  %v1506_v22 = vadd.f32 %v4195_v34, %v1505_v18 }
  0xc8   :  { %3061 = vst.msk [vmem:[%s5879_s3 + $0x11c] sm:$0xf] %vm2989_vm3, %v2804_v10  ;;  %vm2100_vm4 = vcmp.gt.f32.partialorder %v1663_v15, 0.0  ;;  %v2356_v23 = vmul.f32 0.2, %v1663_v15  ;;  %vm2164_vm5 = vcmp.gt.f32.partialorder %v1823_v16, 0.0 }
  0xc9   :  { %v2420_v24 = vmul.f32 0.2, %v1823_v16  ;;  %vm1973_vm6 = vcmp.gt.f32.partialorder %v1346_v21, 0.0  ;;  %v2229_v25 = vmul.f32 0.2, %v1346_v21  ;;  %vm2037_vm7 = vcmp.gt.f32.partialorder %v1506_v22, 0.0  ;;  %3782 = vmatmul.msk.bf16.gmra.mxu0 %vm931_vm0, %v3910_v13  ;;  %3814 = vmatmul.msk.bf16.gmra.mxu1 %vm931_vm0, %v3942_v14 }
  0xca   :  { %v2612_v26 = vsel %vm2100_vm4, %v1663_v15, %v2356_v23  ;;  %v2293_v27 = vmul.f32 0.2, %v1506_v22  ;;  %3846 = vmatmul.msk.bf16.gmra.mxu2 %vm931_vm0, %v3974_v19  ;;  %3878 = vmatmul.msk.bf16.gmra.mxu3 %vm931_vm0, %v4006_v20 }
  0xcb   :  { %v2868_v28 = vpack.c.bf16 %v2612_v26, %v2612_v26  ;;  %v2676_v29 = vsel %vm2164_vm5, %v1823_v16, %v2420_v24  ;;  %v2485_v30 = vsel %vm1973_vm6, %v1346_v21, %v2229_v25 }
  0xcc   :  { %v2932_v31 = vpack.c.bf16 %v2676_v29, %v2676_v29  ;;  %v2741_v32 = vpack.c.bf16 %v2485_v30, %v2485_v30  ;;  %v2549_v33 = vsel %vm2037_vm7, %v1506_v22, %v2293_v27 }
  0xcd   :  { %3125 = vst.msk [vmem:[%s5879_s3 + $0x21c] sm:$0xf] %vm2989_vm3, %v2868_v28  ;;  %v2805_v35 = vpack.c.bf16 %v2549_v33, %v2549_v33  ;;  %v1665_v36 = vpop.f32.mrf.mxu2  ;;  %v1825_v37 = vpop.f32.mrf.mxu3 }
  0xce   :  { %3189 = vst.msk [vmem:[%s5879_s3 + $0x31c] sm:$0xf] %vm2989_vm3, %v2932_v31  ;;  %v1666_v38 = vadd.f32 %v4195_v34, %v1665_v36  ;;  %v1826_v39 = vadd.f32 %v4195_v34, %v1825_v37  ;;  %v1347_v40 = vpop.f32.mrf.mxu0  ;;  %v1507_v41 = vpop.f32.mrf.mxu1 }
  0xcf   :  { %2998 = vst.msk [vmem:[%s5879_s3 + $0x20] sm:$0xf] %vm2989_vm3, %v2741_v32  ;;  %v1348_v42 = vadd.f32 %v4195_v34, %v1347_v40  ;;  %v1508_v43 = vadd.f32 %v4195_v34, %v1507_v41  ;;  %v3944_v40 = vld [vmem:[%s5877_s0 + $0x170] sm:$0xff] }
  0xd0   :  { %3062 = vst.msk [vmem:[%s5879_s3 + $0x120] sm:$0xf] %vm2989_vm3, %v2805_v35  ;;  %vm2101_vm8 = vcmp.gt.f32.partialorder %v1666_v38, 0.0  ;;  %v2357_v44 = vmul.f32 0.2, %v1666_v38  ;;  %vm2165_vm9 = vcmp.gt.f32.partialorder %v1826_v39, 0.0 }
  0xd1   :  { %v2421_v45 = vmul.f32 0.2, %v1826_v39  ;;  %vm1974_vm10 = vcmp.gt.f32.partialorder %v1348_v42, 0.0  ;;  %v2230_v46 = vmul.f32 0.2, %v1348_v42  ;;  %vm2038_vm11 = vcmp.gt.f32.partialorder %v1508_v43, 0.0 }
  0xd2   :  { %v2613_v47 = vsel %vm2101_vm8, %v1666_v38, %v2357_v44  ;;  %v2294_v48 = vmul.f32 0.2, %v1508_v43 }
  0xd3   :  { %v2869_v49 = vpack.c.bf16 %v2613_v47, %v2613_v47  ;;  %v2677_v50 = vsel %vm2165_vm9, %v1826_v39, %v2421_v45  ;;  %v2486_v51 = vsel %vm1974_vm10, %v1348_v42, %v2230_v46  ;;  %v3912_v39 = vld [vmem:[%s5877_s0 + $0x70] sm:$0xff] }
  0xd4   :  { %v2933_v52 = vpack.c.bf16 %v2677_v50, %v2677_v50  ;;  %v2742_v53 = vpack.c.bf16 %v2486_v51, %v2486_v51  ;;  %v2550_v54 = vsel %vm2038_vm11, %v1508_v43, %v2294_v48  ;;  %v3976_v45 = vld [vmem:[%s5877_s0 + $0x270] sm:$0xff] }
  0xd5   :  { %3126 = vst.msk [vmem:[%s5879_s3 + $0x220] sm:$0xf] %vm2989_vm3, %v2869_v49  ;;  %v2806_v55 = vpack.c.bf16 %v2550_v54, %v2550_v54  ;;  %v1667_v56 = vpop.f32.mrf.mxu2  ;;  %v1827_v57 = vpop.f32.mrf.mxu3  ;;  %v4008_v46 = vld [vmem:[%s5877_s0 + $0x370] sm:$0xff] }
  0xd6   :  { %3190 = vst.msk [vmem:[%s5879_s3 + $0x320] sm:$0xf] %vm2989_vm3, %v2933_v52  ;;  %v1668_v60 = vadd.f32 %v4195_v34, %v1667_v56  ;;  %v1828_v61 = vadd.f32 %v4195_v34, %v1827_v57  ;;  %v1350_v62 = vpop.f32.mrf.mxu0  ;;  %v1510_v63 = vpop.f32.mrf.mxu1 }
  0xd7   :  { %2999 = vst.msk [vmem:[%s5879_s3 + $0x24] sm:$0xf] %vm2989_vm3, %v2742_v53  ;;  %v1351_v2 = vadd.f32 %v4195_v34, %v1350_v62  ;;  %v1511_v3 = vadd.f32 %v4195_v34, %v1510_v63 }
  0xd8   :  { %3063 = vst.msk [vmem:[%s5879_s3 + $0x124] sm:$0xf] %vm2989_vm3, %v2806_v55  ;;  %vm2102_vm12 = vcmp.gt.f32.partialorder %v1668_v60, 0.0  ;;  %v2358_v4 = vmul.f32 0.2, %v1668_v60  ;;  %vm2166_vm13 = vcmp.gt.f32.partialorder %v1828_v61, 0.0 }
  0xd9   :  { %v2422_v5 = vmul.f32 0.2, %v1828_v61  ;;  %vm1975_vm14 = vcmp.gt.f32.partialorder %v1351_v2, 0.0  ;;  %v2231_v6 = vmul.f32 0.2, %v1351_v2  ;;  %vm2039_vm15 = vcmp.gt.f32.partialorder %v1511_v3, 0.0  ;;  %3783 = vmatmul.msk.bf16.gmra.mxu0 %vm931_vm0, %v3911_v58  ;;  %3815 = vmatmul.msk.bf16.gmra.mxu1 %vm931_vm0, %v3943_v59 }
  0xda   :  { %v2614_v7 = vsel %vm2102_vm12, %v1668_v60, %v2358_v4  ;;  %v2295_v8 = vmul.f32 0.2, %v1511_v3  ;;  %3847 = vmatmul.msk.bf16.gmra.mxu2 %vm931_vm0, %v3975_v0  ;;  %3879 = vmatmul.msk.bf16.gmra.mxu3 %vm931_vm0, %v4007_v1 }
  0xdb   :  { %v2870_v9 = vpack.c.bf16 %v2614_v7, %v2614_v7  ;;  %v2678_v10 = vsel %vm2166_vm13, %v1828_v61, %v2422_v5  ;;  %v2487_v11 = vsel %vm1975_vm14, %v1351_v2, %v2231_v6 }
  0xdc   :  { %v2934_v12 = vpack.c.bf16 %v2678_v10, %v2678_v10  ;;  %v2743_v13 = vpack.c.bf16 %v2487_v11, %v2487_v11  ;;  %v2551_v14 = vsel %vm2039_vm15, %v1511_v3, %v2295_v8 }
  0xdd   :  { %3127 = vst.msk [vmem:[%s5879_s3 + $0x224] sm:$0xf] %vm2989_vm3, %v2870_v9  ;;  %v2807_v15 = vpack.c.bf16 %v2551_v14, %v2551_v14  ;;  %v1670_v16 = vpop.f32.mrf.mxu2  ;;  %v1830_v17 = vpop.f32.mrf.mxu3 }
  0xde   :  { %3191 = vst.msk [vmem:[%s5879_s3 + $0x324] sm:$0xf] %vm2989_vm3, %v2934_v12  ;;  %v1671_v18 = vadd.f32 %v4195_v34, %v1670_v16  ;;  %v1831_v19 = vadd.f32 %v4195_v34, %v1830_v17  ;;  %v1352_v20 = vpop.f32.mrf.mxu0  ;;  %v1512_v21 = vpop.f32.mrf.mxu1 }
  0xdf   :  { %3000 = vst.msk [vmem:[%s5879_s3 + $0x28] sm:$0xf] %vm2989_vm3, %v2743_v13  ;;  %v1353_v22 = vadd.f32 %v4195_v34, %v1352_v20  ;;  %v1513_v23 = vadd.f32 %v4195_v34, %v1512_v21  ;;  %v3945_v20 = vld [vmem:[%s5877_s0 + $0x178] sm:$0xff] }
  0xe0   :  { %3064 = vst.msk [vmem:[%s5879_s3 + $0x128] sm:$0xf] %vm2989_vm3, %v2807_v15  ;;  %vm2103_vm1 = vcmp.gt.f32.partialorder %v1671_v18, 0.0  ;;  %v2359_v24 = vmul.f32 0.2, %v1671_v18  ;;  %vm2167_vm2 = vcmp.gt.f32.partialorder %v1831_v19, 0.0 }
  0xe1   :  { %v2423_v25 = vmul.f32 0.2, %v1831_v19  ;;  %vm1976_vm4 = vcmp.gt.f32.partialorder %v1353_v22, 0.0  ;;  %v2232_v26 = vmul.f32 0.2, %v1353_v22  ;;  %vm2040_vm5 = vcmp.gt.f32.partialorder %v1513_v23, 0.0 }
  0xe2   :  { %v2615_v27 = vsel %vm2103_vm1, %v1671_v18, %v2359_v24  ;;  %v2296_v28 = vmul.f32 0.2, %v1513_v23 }
  0xe3   :  { %v2871_v29 = vpack.c.bf16 %v2615_v27, %v2615_v27  ;;  %v2679_v30 = vsel %vm2167_vm2, %v1831_v19, %v2423_v25  ;;  %v2488_v31 = vsel %vm1976_vm4, %v1353_v22, %v2232_v26  ;;  %v3913_v19 = vld [vmem:[%s5877_s0 + $0x78] sm:$0xff] }
  0xe4   :  { %v2935_v32 = vpack.c.bf16 %v2679_v30, %v2679_v30  ;;  %v2744_v33 = vpack.c.bf16 %v2488_v31, %v2488_v31  ;;  %v2552_v35 = vsel %vm2040_vm5, %v1513_v23, %v2296_v28  ;;  %v3977_v25 = vld [vmem:[%s5877_s0 + $0x278] sm:$0xff] }
  0xe5   :  { %3128 = vst.msk [vmem:[%s5879_s3 + $0x228] sm:$0xf] %vm2989_vm3, %v2871_v29  ;;  %v2808_v36 = vpack.c.bf16 %v2552_v35, %v2552_v35  ;;  %v1672_v37 = vpop.f32.mrf.mxu2  ;;  %v1832_v38 = vpop.f32.mrf.mxu3  ;;  %v4009_v26 = vld [vmem:[%s5877_s0 + $0x378] sm:$0xff] }
  0xe6   :  { %3192 = vst.msk [vmem:[%s5879_s3 + $0x328] sm:$0xf] %vm2989_vm3, %v2935_v32  ;;  %v1673_v41 = vadd.f32 %v4195_v34, %v1672_v37  ;;  %v1833_v42 = vadd.f32 %v4195_v34, %v1832_v38  ;;  %v1355_v43 = vpop.f32.mrf.mxu0  ;;  %v1515_v44 = vpop.f32.mrf.mxu1 }
  0xe7   :  { %3001 = vst.msk [vmem:[%s5879_s3 + $0x2c] sm:$0xf] %vm2989_vm3, %v2744_v33  ;;  %v1356_v47 = vadd.f32 %v4195_v34, %v1355_v43  ;;  %v1516_v48 = vadd.f32 %v4195_v34, %v1515_v44 }
  0xe8   :  { %3065 = vst.msk [vmem:[%s5879_s3 + $0x12c] sm:$0xf] %vm2989_vm3, %v2808_v36  ;;  %vm2104_vm6 = vcmp.gt.f32.partialorder %v1673_v41, 0.0  ;;  %v2360_v49 = vmul.f32 0.2, %v1673_v41  ;;  %vm2168_vm7 = vcmp.gt.f32.partialorder %v1833_v42, 0.0 }
  0xe9   :  { %v2424_v50 = vmul.f32 0.2, %v1833_v42  ;;  %vm1977_vm8 = vcmp.gt.f32.partialorder %v1356_v47, 0.0  ;;  %v2233_v51 = vmul.f32 0.2, %v1356_v47  ;;  %vm2041_vm9 = vcmp.gt.f32.partialorder %v1516_v48, 0.0  ;;  %3784 = vmatmul.msk.bf16.gmra.mxu0 %vm931_vm0, %v3912_v39  ;;  %3816 = vmatmul.msk.bf16.gmra.mxu1 %vm931_vm0, %v3944_v40 }
  0xea   :  { %v2616_v52 = vsel %vm2104_vm6, %v1673_v41, %v2360_v49  ;;  %v2297_v53 = vmul.f32 0.2, %v1516_v48  ;;  %3848 = vmatmul.msk.bf16.gmra.mxu2 %vm931_vm0, %v3976_v45  ;;  %3880 = vmatmul.msk.bf16.gmra.mxu3 %vm931_vm0, %v4008_v46 }
  0xeb   :  { %v2872_v54 = vpack.c.bf16 %v2616_v52, %v2616_v52  ;;  %v2680_v55 = vsel %vm2168_vm7, %v1833_v42, %v2424_v50  ;;  %v2489_v56 = vsel %vm1977_vm8, %v1356_v47, %v2233_v51 }
  0xec   :  { %v2936_v57 = vpack.c.bf16 %v2680_v55, %v2680_v55  ;;  %v2745_v58 = vpack.c.bf16 %v2489_v56, %v2489_v56  ;;  %v2553_v59 = vsel %vm2041_vm9, %v1516_v48, %v2297_v53 }
  0xed   :  { %3129 = vst.msk [vmem:[%s5879_s3 + $0x22c] sm:$0xf] %vm2989_vm3, %v2872_v54  ;;  %v2809_v60 = vpack.c.bf16 %v2553_v59, %v2553_v59  ;;  %v1675_v61 = vpop.f32.mrf.mxu2  ;;  %v1835_v62 = vpop.f32.mrf.mxu3 }
  0xee   :  { %3193 = vst.msk [vmem:[%s5879_s3 + $0x32c] sm:$0xf] %vm2989_vm3, %v2936_v57  ;;  %v1676_v63 = vadd.f32 %v4195_v34, %v1675_v61  ;;  %v1836_v0 = vadd.f32 %v4195_v34, %v1835_v62  ;;  %v1357_v1 = vpop.f32.mrf.mxu0  ;;  %v1517_v2 = vpop.f32.mrf.mxu1 }
  0xef   :  { %3002 = vst.msk [vmem:[%s5879_s3 + $0x30] sm:$0xf] %vm2989_vm3, %v2745_v58  ;;  %v1358_v3 = vadd.f32 %v4195_v34, %v1357_v1  ;;  %v1518_v4 = vadd.f32 %v4195_v34, %v1517_v2  ;;  %v3946_v1 = vld [vmem:[%s5877_s0 + $0x180] sm:$0xff] }
  0xf0   :  { %3066 = vst.msk [vmem:[%s5879_s3 + $0x130] sm:$0xf] %vm2989_vm3, %v2809_v60  ;;  %vm2105_vm10 = vcmp.gt.f32.partialorder %v1676_v63, 0.0  ;;  %v2361_v5 = vmul.f32 0.2, %v1676_v63  ;;  %vm2169_vm11 = vcmp.gt.f32.partialorder %v1836_v0, 0.0 }
  0xf1   :  { %v2425_v6 = vmul.f32 0.2, %v1836_v0  ;;  %vm1978_vm12 = vcmp.gt.f32.partialorder %v1358_v3, 0.0  ;;  %v2234_v7 = vmul.f32 0.2, %v1358_v3  ;;  %vm2042_vm13 = vcmp.gt.f32.partialorder %v1518_v4, 0.0 }
  0xf2   :  { %v2617_v8 = vsel %vm2105_vm10, %v1676_v63, %v2361_v5  ;;  %v2298_v9 = vmul.f32 0.2, %v1518_v4 }
  0xf3   :  { %v2873_v10 = vpack.c.bf16 %v2617_v8, %v2617_v8  ;;  %v2681_v11 = vsel %vm2169_vm11, %v1836_v0, %v2425_v6  ;;  %v2490_v12 = vsel %vm1978_vm12, %v1358_v3, %v2234_v7  ;;  %v3914_v0 = vld [vmem:[%s5877_s0 + $0x80] sm:$0xff] }
  0xf4   :  { %v2937_v13 = vpack.c.bf16 %v2681_v11, %v2681_v11  ;;  %v2746_v14 = vpack.c.bf16 %v2490_v12, %v2490_v12  ;;  %v2554_v15 = vsel %vm2042_vm13, %v1518_v4, %v2298_v9  ;;  %v3978_v6 = vld [vmem:[%s5877_s0 + $0x280] sm:$0xff] }
  0xf5   :  { %3130 = vst.msk [vmem:[%s5879_s3 + $0x230] sm:$0xf] %vm2989_vm3, %v2873_v10  ;;  %v2810_v16 = vpack.c.bf16 %v2554_v15, %v2554_v15  ;;  %v1677_v17 = vpop.f32.mrf.mxu2  ;;  %v1837_v18 = vpop.f32.mrf.mxu3  ;;  %v4010_v7 = vld [vmem:[%s5877_s0 + $0x380] sm:$0xff] }
  0xf6   :  { %3194 = vst.msk [vmem:[%s5879_s3 + $0x330] sm:$0xf] %vm2989_vm3, %v2937_v13  ;;  %v1678_v21 = vadd.f32 %v4195_v34, %v1677_v17  ;;  %v1838_v22 = vadd.f32 %v4195_v34, %v1837_v18  ;;  %v1360_v23 = vpop.f32.mrf.mxu0  ;;  %v1520_v24 = vpop.f32.mrf.mxu1 }
  0xf7   :  { %3003 = vst.msk [vmem:[%s5879_s3 + $0x34] sm:$0xf] %vm2989_vm3, %v2746_v14  ;;  %v1361_v27 = vadd.f32 %v4195_v34, %v1360_v23  ;;  %v1521_v28 = vadd.f32 %v4195_v34, %v1520_v24  ;;  %v4666_v23 = vld [vmem:[%s5878_s2] ss:$0 sm:$0xff] }
  0xf8   :  { %3067 = vst.msk [vmem:[%s5879_s3 + $0x134] sm:$0xf] %vm2989_vm3, %v2810_v16  ;;  %vm2106_vm14 = vcmp.gt.f32.partialorder %v1678_v21, 0.0  ;;  %v2362_v29 = vmul.f32 0.2, %v1678_v21  ;;  %vm2170_vm15 = vcmp.gt.f32.partialorder %v1838_v22, 0.0 }
  0xf9   :  { %v2426_v30 = vmul.f32 0.2, %v1838_v22  ;;  %vm1979_vm1 = vcmp.gt.f32.partialorder %v1361_v27, 0.0  ;;  %v2235_v31 = vmul.f32 0.2, %v1361_v27  ;;  %vm2043_vm2 = vcmp.gt.f32.partialorder %v1521_v28, 0.0  ;;  %3785 = vmatmul.msk.bf16.gmra.mxu0 %vm931_vm0, %v3913_v19  ;;  %3817 = vmatmul.msk.bf16.gmra.mxu1 %vm931_vm0, %v3945_v20 }
  0xfa   :  { %v2618_v32 = vsel %vm2106_vm14, %v1678_v21, %v2362_v29  ;;  %v2299_v33 = vmul.f32 0.2, %v1521_v28  ;;  %3849 = vmatmul.msk.bf16.gmra.mxu2 %vm931_vm0, %v3977_v25  ;;  %3881 = vmatmul.msk.bf16.gmra.mxu3 %vm931_vm0, %v4009_v26 }
  0xfb   :  { %v2874_v35 = vpack.c.bf16 %v2618_v32, %v2618_v32  ;;  %v2682_v36 = vsel %vm2170_vm15, %v1838_v22, %v2426_v30  ;;  %v2491_v37 = vsel %vm1979_vm1, %v1361_v27, %v2235_v31 }
  0xfc   :  { %v2938_v38 = vpack.c.bf16 %v2682_v36, %v2682_v36  ;;  %v2747_v39 = vpack.c.bf16 %v2491_v37, %v2491_v37  ;;  %v2555_v40 = vsel %vm2043_vm2, %v1521_v28, %v2299_v33 }
  0xfd   :  { %3131 = vst.msk [vmem:[%s5879_s3 + $0x234] sm:$0xf] %vm2989_vm3, %v2874_v35  ;;  %v2811_v41 = vpack.c.bf16 %v2555_v40, %v2555_v40  ;;  %v1680_v42 = vpop.f32.mrf.mxu2  ;;  %v1840_v43 = vpop.f32.mrf.mxu3 }
  0xfe   :  { %3195 = vst.msk [vmem:[%s5879_s3 + $0x334] sm:$0xf] %vm2989_vm3, %v2938_v38  ;;  %v1681_v44 = vadd.f32 %v4195_v34, %v1680_v42  ;;  %v1841_v45 = vadd.f32 %v4195_v34, %v1840_v43  ;;  %v1362_v46 = vpop.f32.mrf.mxu0  ;;  %v1522_v47 = vpop.f32.mrf.mxu1 }
  0xff   :  { %3004 = vst.msk [vmem:[%s5879_s3 + $0x38] sm:$0xf] %vm2989_vm3, %v2747_v39  ;;  %v1363_v48 = vadd.f32 %v4195_v34, %v1362_v46  ;;  %v1523_v49 = vadd.f32 %v4195_v34, %v1522_v47  ;;  %v3947_v46 = vld [vmem:[%s5877_s0 + $0x188] sm:$0xff] }
 0x100   :  { %3068 = vst.msk [vmem:[%s5879_s3 + $0x138] sm:$0xf] %vm2989_vm3, %v2811_v41  ;;  %vm2107_vm4 = vcmp.gt.f32.partialorder %v1681_v44, 0.0  ;;  %v2363_v50 = vmul.f32 0.2, %v1681_v44  ;;  %vm2171_vm5 = vcmp.gt.f32.partialorder %v1841_v45, 0.0 }
 0x101   :  { %v2427_v51 = vmul.f32 0.2, %v1841_v45  ;;  %vm1980_vm6 = vcmp.gt.f32.partialorder %v1363_v48, 0.0  ;;  %v2236_v52 = vmul.f32 0.2, %v1363_v48  ;;  %vm2044_vm7 = vcmp.gt.f32.partialorder %v1523_v49, 0.0 }
 0x102   :  { %v2619_v53 = vsel %vm2107_vm4, %v1681_v44, %v2363_v50  ;;  %v2300_v54 = vmul.f32 0.2, %v1523_v49 }
 0x103   :  { %v2875_v55 = vpack.c.bf16 %v2619_v53, %v2619_v53  ;;  %v2683_v56 = vsel %vm2171_vm5, %v1841_v45, %v2427_v51  ;;  %v2492_v57 = vsel %vm1980_vm6, %v1363_v48, %v2236_v52  ;;  %v3915_v45 = vld [vmem:[%s5877_s0 + $0x88] sm:$0xff] }
 0x104   :  { %v2939_v58 = vpack.c.bf16 %v2683_v56, %v2683_v56  ;;  %v2748_v59 = vpack.c.bf16 %v2492_v57, %v2492_v57  ;;  %v2556_v60 = vsel %vm2044_vm7, %v1523_v49, %v2300_v54  ;;  %v3979_v51 = vld [vmem:[%s5877_s0 + $0x288] sm:$0xff] }
 0x105   :  { %3132 = vst.msk [vmem:[%s5879_s3 + $0x238] sm:$0xf] %vm2989_vm3, %v2875_v55  ;;  %v2812_v61 = vpack.c.bf16 %v2556_v60, %v2556_v60  ;;  %v1682_v62 = vpop.f32.mrf.mxu2  ;;  %v1842_v63 = vpop.f32.mrf.mxu3  ;;  %v4011_v52 = vld [vmem:[%s5877_s0 + $0x388] sm:$0xff] }
 0x106   :  { %3196 = vst.msk [vmem:[%s5879_s3 + $0x338] sm:$0xf] %vm2989_vm3, %v2939_v58  ;;  %v1683_v2 = vadd.f32 %v4195_v34, %v1682_v62  ;;  %v1843_v3 = vadd.f32 %v4195_v34, %v1842_v63  ;;  %v1365_v4 = vpop.f32.mrf.mxu0  ;;  %v1525_v5 = vpop.f32.mrf.mxu1 }
 0x107   :  { %3005 = vst.msk [vmem:[%s5879_s3 + $0x3c] sm:$0xf] %vm2989_vm3, %v2748_v59  ;;  %v1366_v8 = vadd.f32 %v4195_v34, %v1365_v4  ;;  %v1526_v9 = vadd.f32 %v4195_v34, %v1525_v5 }
 0x108   :  { %3069 = vst.msk [vmem:[%s5879_s3 + $0x13c] sm:$0xf] %vm2989_vm3, %v2812_v61  ;;  %vm2108_vm8 = vcmp.gt.f32.partialorder %v1683_v2, 0.0  ;;  %v2364_v10 = vmul.f32 0.2, %v1683_v2  ;;  %vm2172_vm9 = vcmp.gt.f32.partialorder %v1843_v3, 0.0 }
 0x109   :  { %v2428_v11 = vmul.f32 0.2, %v1843_v3  ;;  %vm1981_vm10 = vcmp.gt.f32.partialorder %v1366_v8, 0.0  ;;  %v2237_v12 = vmul.f32 0.2, %v1366_v8  ;;  %vm2045_vm11 = vcmp.gt.f32.partialorder %v1526_v9, 0.0  ;;  %3786 = vmatmul.msk.bf16.gmra.mxu0 %vm931_vm0, %v3914_v0  ;;  %3818 = vmatmul.msk.bf16.gmra.mxu1 %vm931_vm0, %v3946_v1 }
 0x10a   :  { %v2620_v13 = vsel %vm2108_vm8, %v1683_v2, %v2364_v10  ;;  %v2301_v14 = vmul.f32 0.2, %v1526_v9  ;;  %3850 = vmatmul.msk.bf16.gmra.mxu2 %vm931_vm0, %v3978_v6  ;;  %3882 = vmatmul.msk.bf16.gmra.mxu3 %vm931_vm0, %v4010_v7 }
 0x10b   :  { %v2876_v34 = vpack.c.bf16 %v2620_v13, %v2620_v13  ;;  %v2684_v15 = vsel %vm2172_vm9, %v1843_v3, %v2428_v11  ;;  %v2493_v16 = vsel %vm1981_vm10, %v1366_v8, %v2237_v12 }
 0x10c   :  { %v2940_v17 = vpack.c.bf16 %v2684_v15, %v2684_v15  ;;  %v2749_v18 = vpack.c.bf16 %v2493_v16, %v2493_v16  ;;  %v2557_v19 = vsel %vm2045_vm11, %v1526_v9, %v2301_v14 }
 0x10d   :  { %3133 = vst.msk [vmem:[%s5879_s3 + $0x23c] sm:$0xf] %vm2989_vm3, %v2876_v34  ;;  %v2813_v20 = vpack.c.bf16 %v2557_v19, %v2557_v19  ;;  %v1685_v21 = vpop.f32.mrf.mxu2  ;;  %v1845_v22 = vpop.f32.mrf.mxu3 }
 0x10e   :  { %3197 = vst.msk [vmem:[%s5879_s3 + $0x33c] sm:$0xf] %vm2989_vm3, %v2940_v17  ;;  %v1686_v24 = vadd.f32 %v4666_v23, %v1685_v21  ;;  %v1846_v25 = vadd.f32 %v4666_v23, %v1845_v22  ;;  %v1367_v26 = vpop.f32.mrf.mxu0  ;;  %v1527_v27 = vpop.f32.mrf.mxu1 }
 0x10f   :  { %3006 = vst.msk [vmem:[%s5879_s3 + $0x40] sm:$0xf] %vm2989_vm3, %v2749_v18  ;;  %v1368_v28 = vadd.f32 %v4666_v23, %v1367_v26  ;;  %v1528_v29 = vadd.f32 %v4666_v23, %v1527_v27  ;;  %v3948_v26 = vld [vmem:[%s5877_s0 + $0x190] sm:$0xff] }
 0x110   :  { %3070 = vst.msk [vmem:[%s5879_s3 + $0x140] sm:$0xf] %vm2989_vm3, %v2813_v20  ;;  %vm2109_vm12 = vcmp.gt.f32.partialorder %v1686_v24, 0.0  ;;  %v2365_v30 = vmul.f32 0.2, %v1686_v24  ;;  %vm2173_vm13 = vcmp.gt.f32.partialorder %v1846_v25, 0.0 }
 0x111   :  { %v2429_v31 = vmul.f32 0.2, %v1846_v25  ;;  %vm1982_vm14 = vcmp.gt.f32.partialorder %v1368_v28, 0.0  ;;  %v2238_v32 = vmul.f32 0.2, %v1368_v28  ;;  %vm2046_vm15 = vcmp.gt.f32.partialorder %v1528_v29, 0.0 }
 0x112   :  { %v2621_v33 = vsel %vm2109_vm12, %v1686_v24, %v2365_v30  ;;  %v2302_v35 = vmul.f32 0.2, %v1528_v29 }
 0x113   :  { %v2877_v36 = vpack.c.bf16 %v2621_v33, %v2621_v33  ;;  %v2685_v37 = vsel %vm2173_vm13, %v1846_v25, %v2429_v31  ;;  %v2494_v38 = vsel %vm1982_vm14, %v1368_v28, %v2238_v32  ;;  %v3916_v25 = vld [vmem:[%s5877_s0 + $0x90] sm:$0xff] }
 0x114   :  { %v2941_v39 = vpack.c.bf16 %v2685_v37, %v2685_v37  ;;  %v2750_v40 = vpack.c.bf16 %v2494_v38, %v2494_v38  ;;  %v2558_v41 = vsel %vm2046_vm15, %v1528_v29, %v2302_v35  ;;  %v3980_v31 = vld [vmem:[%s5877_s0 + $0x290] sm:$0xff] }
 0x115   :  { %3134 = vst.msk [vmem:[%s5879_s3 + $0x240] sm:$0xf] %vm2989_vm3, %v2877_v36  ;;  %v2814_v42 = vpack.c.bf16 %v2558_v41, %v2558_v41  ;;  %v1687_v43 = vpop.f32.mrf.mxu2  ;;  %v1847_v44 = vpop.f32.mrf.mxu3  ;;  %v4012_v32 = vld [vmem:[%s5877_s0 + $0x390] sm:$0xff] }
 0x116   :  { %3198 = vst.msk [vmem:[%s5879_s3 + $0x340] sm:$0xf] %vm2989_vm3, %v2941_v39  ;;  %v1688_v47 = vadd.f32 %v4666_v23, %v1687_v43  ;;  %v1848_v48 = vadd.f32 %v4666_v23, %v1847_v44  ;;  %v1370_v49 = vpop.f32.mrf.mxu0  ;;  %v1530_v50 = vpop.f32.mrf.mxu1 }
 0x117   :  { %3007 = vst.msk [vmem:[%s5879_s3 + $0x44] sm:$0xf] %vm2989_vm3, %v2750_v40  ;;  %v1371_v53 = vadd.f32 %v4666_v23, %v1370_v49  ;;  %v1531_v54 = vadd.f32 %v4666_v23, %v1530_v50 }
 0x118   :  { %3071 = vst.msk [vmem:[%s5879_s3 + $0x144] sm:$0xf] %vm2989_vm3, %v2814_v42  ;;  %vm2110_vm1 = vcmp.gt.f32.partialorder %v1688_v47, 0.0  ;;  %v2366_v55 = vmul.f32 0.2, %v1688_v47  ;;  %vm2174_vm2 = vcmp.gt.f32.partialorder %v1848_v48, 0.0 }
 0x119   :  { %v2430_v56 = vmul.f32 0.2, %v1848_v48  ;;  %vm1983_vm4 = vcmp.gt.f32.partialorder %v1371_v53, 0.0  ;;  %v2239_v57 = vmul.f32 0.2, %v1371_v53  ;;  %vm2047_vm5 = vcmp.gt.f32.partialorder %v1531_v54, 0.0  ;;  %3787 = vmatmul.msk.bf16.gmra.mxu0 %vm931_vm0, %v3915_v45  ;;  %3819 = vmatmul.msk.bf16.gmra.mxu1 %vm931_vm0, %v3947_v46 }
 0x11a   :  { %v2622_v58 = vsel %vm2110_vm1, %v1688_v47, %v2366_v55  ;;  %v2303_v59 = vmul.f32 0.2, %v1531_v54  ;;  %3851 = vmatmul.msk.bf16.gmra.mxu2 %vm931_vm0, %v3979_v51  ;;  %3883 = vmatmul.msk.bf16.gmra.mxu3 %vm931_vm0, %v4011_v52 }
 0x11b   :  { %v2878_v60 = vpack.c.bf16 %v2622_v58, %v2622_v58  ;;  %v2686_v61 = vsel %vm2174_vm2, %v1848_v48, %v2430_v56  ;;  %v2495_v62 = vsel %vm1983_vm4, %v1371_v53, %v2239_v57 }
 0x11c   :  { %v2942_v63 = vpack.c.bf16 %v2686_v61, %v2686_v61  ;;  %v2751_v0 = vpack.c.bf16 %v2495_v62, %v2495_v62  ;;  %v2559_v1 = vsel %vm2047_vm5, %v1531_v54, %v2303_v59 }
 0x11d   :  { %3135 = vst.msk [vmem:[%s5879_s3 + $0x244] sm:$0xf] %vm2989_vm3, %v2878_v60  ;;  %v2815_v2 = vpack.c.bf16 %v2559_v1, %v2559_v1  ;;  %v1690_v3 = vpop.f32.mrf.mxu2  ;;  %v1850_v4 = vpop.f32.mrf.mxu3 }
 0x11e   :  { %3199 = vst.msk [vmem:[%s5879_s3 + $0x344] sm:$0xf] %vm2989_vm3, %v2942_v63  ;;  %v1691_v5 = vadd.f32 %v4666_v23, %v1690_v3  ;;  %v1851_v6 = vadd.f32 %v4666_v23, %v1850_v4  ;;  %v1372_v7 = vpop.f32.mrf.mxu0  ;;  %v1532_v8 = vpop.f32.mrf.mxu1 }
 0x11f   :  { %3008 = vst.msk [vmem:[%s5879_s3 + $0x48] sm:$0xf] %vm2989_vm3, %v2751_v0  ;;  %v1373_v9 = vadd.f32 %v4666_v23, %v1372_v7  ;;  %v1533_v10 = vadd.f32 %v4666_v23, %v1532_v8  ;;  %v3949_v7 = vld [vmem:[%s5877_s0 + $0x198] sm:$0xff] }
 0x120   :  { %3072 = vst.msk [vmem:[%s5879_s3 + $0x148] sm:$0xf] %vm2989_vm3, %v2815_v2  ;;  %vm2111_vm6 = vcmp.gt.f32.partialorder %v1691_v5, 0.0  ;;  %v2367_v11 = vmul.f32 0.2, %v1691_v5  ;;  %vm2175_vm7 = vcmp.gt.f32.partialorder %v1851_v6, 0.0 }
 0x121   :  { %v2431_v12 = vmul.f32 0.2, %v1851_v6  ;;  %vm1984_vm8 = vcmp.gt.f32.partialorder %v1373_v9, 0.0  ;;  %v2240_v13 = vmul.f32 0.2, %v1373_v9  ;;  %vm2048_vm9 = vcmp.gt.f32.partialorder %v1533_v10, 0.0 }
 0x122   :  { %v2623_v14 = vsel %vm2111_vm6, %v1691_v5, %v2367_v11  ;;  %v2304_v34 = vmul.f32 0.2, %v1533_v10 }
 0x123   :  { %v2879_v15 = vpack.c.bf16 %v2623_v14, %v2623_v14  ;;  %v2687_v16 = vsel %vm2175_vm7, %v1851_v6, %v2431_v12  ;;  %v2496_v17 = vsel %vm1984_vm8, %v1373_v9, %v2240_v13  ;;  %v3917_v6 = vld [vmem:[%s5877_s0 + $0x98] sm:$0xff] }
 0x124   :  { %v2943_v18 = vpack.c.bf16 %v2687_v16, %v2687_v16  ;;  %v2752_v19 = vpack.c.bf16 %v2496_v17, %v2496_v17  ;;  %v2560_v20 = vsel %vm2048_vm9, %v1533_v10, %v2304_v34  ;;  %v3981_v12 = vld [vmem:[%s5877_s0 + $0x298] sm:$0xff] }
 0x125   :  { %3136 = vst.msk [vmem:[%s5879_s3 + $0x248] sm:$0xf] %vm2989_vm3, %v2879_v15  ;;  %v2816_v21 = vpack.c.bf16 %v2560_v20, %v2560_v20  ;;  %v1692_v22 = vpop.f32.mrf.mxu2  ;;  %v1852_v24 = vpop.f32.mrf.mxu3  ;;  %v4013_v13 = vld [vmem:[%s5877_s0 + $0x398] sm:$0xff] }
 0x126   :  { %3200 = vst.msk [vmem:[%s5879_s3 + $0x348] sm:$0xf] %vm2989_vm3, %v2943_v18  ;;  %v1693_v27 = vadd.f32 %v4666_v23, %v1692_v22  ;;  %v1853_v28 = vadd.f32 %v4666_v23, %v1852_v24  ;;  %v1375_v29 = vpop.f32.mrf.mxu0  ;;  %v1535_v30 = vpop.f32.mrf.mxu1 }
 0x127   :  { %3009 = vst.msk [vmem:[%s5879_s3 + $0x4c] sm:$0xf] %vm2989_vm3, %v2752_v19  ;;  %v1376_v33 = vadd.f32 %v4666_v23, %v1375_v29  ;;  %v1536_v35 = vadd.f32 %v4666_v23, %v1535_v30 }
 0x128   :  { %3073 = vst.msk [vmem:[%s5879_s3 + $0x14c] sm:$0xf] %vm2989_vm3, %v2816_v21  ;;  %vm2112_vm10 = vcmp.gt.f32.partialorder %v1693_v27, 0.0  ;;  %v2368_v36 = vmul.f32 0.2, %v1693_v27  ;;  %vm2176_vm11 = vcmp.gt.f32.partialorder %v1853_v28, 0.0 }
 0x129   :  { %v2432_v37 = vmul.f32 0.2, %v1853_v28  ;;  %vm1985_vm12 = vcmp.gt.f32.partialorder %v1376_v33, 0.0  ;;  %v2241_v38 = vmul.f32 0.2, %v1376_v33  ;;  %vm2049_vm13 = vcmp.gt.f32.partialorder %v1536_v35, 0.0  ;;  %3788 = vmatmul.msk.bf16.gmra.mxu0 %vm931_vm0, %v3916_v25  ;;  %3820 = vmatmul.msk.bf16.gmra.mxu1 %vm931_vm0, %v3948_v26 }
 0x12a   :  { %v2624_v39 = vsel %vm2112_vm10, %v1693_v27, %v2368_v36  ;;  %v2305_v40 = vmul.f32 0.2, %v1536_v35  ;;  %3852 = vmatmul.msk.bf16.gmra.mxu2 %vm931_vm0, %v3980_v31  ;;  %3884 = vmatmul.msk.bf16.gmra.mxu3 %vm931_vm0, %v4012_v32 }
 0x12b   :  { %v2880_v41 = vpack.c.bf16 %v2624_v39, %v2624_v39  ;;  %v2688_v42 = vsel %vm2176_vm11, %v1853_v28, %v2432_v37  ;;  %v2497_v43 = vsel %vm1985_vm12, %v1376_v33, %v2241_v38 }
 0x12c   :  { %v2944_v44 = vpack.c.bf16 %v2688_v42, %v2688_v42  ;;  %v2753_v45 = vpack.c.bf16 %v2497_v43, %v2497_v43  ;;  %v2561_v46 = vsel %vm2049_vm13, %v1536_v35, %v2305_v40 }
 0x12d   :  { %3137 = vst.msk [vmem:[%s5879_s3 + $0x24c] sm:$0xf] %vm2989_vm3, %v2880_v41  ;;  %v2817_v47 = vpack.c.bf16 %v2561_v46, %v2561_v46  ;;  %v1695_v48 = vpop.f32.mrf.mxu2  ;;  %v1855_v49 = vpop.f32.mrf.mxu3 }
 0x12e   :  { %3201 = vst.msk [vmem:[%s5879_s3 + $0x34c] sm:$0xf] %vm2989_vm3, %v2944_v44  ;;  %v1696_v50 = vadd.f32 %v4666_v23, %v1695_v48  ;;  %v1856_v51 = vadd.f32 %v4666_v23, %v1855_v49  ;;  %v1377_v52 = vpop.f32.mrf.mxu0  ;;  %v1537_v53 = vpop.f32.mrf.mxu1 }
 0x12f   :  { %3010 = vst.msk [vmem:[%s5879_s3 + $0x50] sm:$0xf] %vm2989_vm3, %v2753_v45  ;;  %v1378_v54 = vadd.f32 %v4666_v23, %v1377_v52  ;;  %v1538_v55 = vadd.f32 %v4666_v23, %v1537_v53  ;;  %v3950_v52 = vld [vmem:[%s5877_s0 + $0x1a0] sm:$0xff] }
 0x130   :  { %3074 = vst.msk [vmem:[%s5879_s3 + $0x150] sm:$0xf] %vm2989_vm3, %v2817_v47  ;;  %vm2113_vm14 = vcmp.gt.f32.partialorder %v1696_v50, 0.0  ;;  %v2369_v56 = vmul.f32 0.2, %v1696_v50  ;;  %vm2177_vm15 = vcmp.gt.f32.partialorder %v1856_v51, 0.0 }
 0x131   :  { %v2433_v57 = vmul.f32 0.2, %v1856_v51  ;;  %vm1986_vm1 = vcmp.gt.f32.partialorder %v1378_v54, 0.0  ;;  %v2242_v58 = vmul.f32 0.2, %v1378_v54  ;;  %vm2050_vm2 = vcmp.gt.f32.partialorder %v1538_v55, 0.0 }
 0x132   :  { %v2625_v59 = vsel %vm2113_vm14, %v1696_v50, %v2369_v56  ;;  %v2306_v60 = vmul.f32 0.2, %v1538_v55 }
 0x133   :  { %v2881_v61 = vpack.c.bf16 %v2625_v59, %v2625_v59  ;;  %v2689_v62 = vsel %vm2177_vm15, %v1856_v51, %v2433_v57  ;;  %v2498_v63 = vsel %vm1986_vm1, %v1378_v54, %v2242_v58  ;;  %v3918_v51 = vld [vmem:[%s5877_s0 + $0xa0] sm:$0xff] }
 0x134   :  { %v2945_v0 = vpack.c.bf16 %v2689_v62, %v2689_v62  ;;  %v2754_v1 = vpack.c.bf16 %v2498_v63, %v2498_v63  ;;  %v2562_v2 = vsel %vm2050_vm2, %v1538_v55, %v2306_v60  ;;  %v3982_v57 = vld [vmem:[%s5877_s0 + $0x2a0] sm:$0xff] }
 0x135   :  { %3138 = vst.msk [vmem:[%s5879_s3 + $0x250] sm:$0xf] %vm2989_vm3, %v2881_v61  ;;  %v2818_v3 = vpack.c.bf16 %v2562_v2, %v2562_v2  ;;  %v1697_v4 = vpop.f32.mrf.mxu2  ;;  %v1857_v5 = vpop.f32.mrf.mxu3  ;;  %v4014_v58 = vld [vmem:[%s5877_s0 + $0x3a0] sm:$0xff] }
 0x136   :  { %3202 = vst.msk [vmem:[%s5879_s3 + $0x350] sm:$0xf] %vm2989_vm3, %v2945_v0  ;;  %v1698_v8 = vadd.f32 %v4666_v23, %v1697_v4  ;;  %v1858_v9 = vadd.f32 %v4666_v23, %v1857_v5  ;;  %v1380_v10 = vpop.f32.mrf.mxu0  ;;  %v1540_v11 = vpop.f32.mrf.mxu1 }
 0x137   :  { %3011 = vst.msk [vmem:[%s5879_s3 + $0x54] sm:$0xf] %vm2989_vm3, %v2754_v1  ;;  %v1381_v14 = vadd.f32 %v4666_v23, %v1380_v10  ;;  %v1541_v34 = vadd.f32 %v4666_v23, %v1540_v11 }
 0x138   :  { %3075 = vst.msk [vmem:[%s5879_s3 + $0x154] sm:$0xf] %vm2989_vm3, %v2818_v3  ;;  %vm2114_vm4 = vcmp.gt.f32.partialorder %v1698_v8, 0.0  ;;  %v2370_v15 = vmul.f32 0.2, %v1698_v8  ;;  %vm2178_vm5 = vcmp.gt.f32.partialorder %v1858_v9, 0.0 }
 0x139   :  { %v2434_v16 = vmul.f32 0.2, %v1858_v9  ;;  %vm1987_vm6 = vcmp.gt.f32.partialorder %v1381_v14, 0.0  ;;  %v2243_v17 = vmul.f32 0.2, %v1381_v14  ;;  %vm2051_vm7 = vcmp.gt.f32.partialorder %v1541_v34, 0.0  ;;  %3789 = vmatmul.msk.bf16.gmra.mxu0 %vm931_vm0, %v3917_v6  ;;  %3821 = vmatmul.msk.bf16.gmra.mxu1 %vm931_vm0, %v3949_v7 }
 0x13a   :  { %v2626_v18 = vsel %vm2114_vm4, %v1698_v8, %v2370_v15  ;;  %v2307_v19 = vmul.f32 0.2, %v1541_v34  ;;  %3853 = vmatmul.msk.bf16.gmra.mxu2 %vm931_vm0, %v3981_v12  ;;  %3885 = vmatmul.msk.bf16.gmra.mxu3 %vm931_vm0, %v4013_v13 }
 0x13b   :  { %v2882_v20 = vpack.c.bf16 %v2626_v18, %v2626_v18  ;;  %v2690_v21 = vsel %vm2178_vm5, %v1858_v9, %v2434_v16  ;;  %v2499_v22 = vsel %vm1987_vm6, %v1381_v14, %v2243_v17 }
 0x13c   :  { %v2946_v24 = vpack.c.bf16 %v2690_v21, %v2690_v21  ;;  %v2755_v25 = vpack.c.bf16 %v2499_v22, %v2499_v22  ;;  %v2563_v26 = vsel %vm2051_vm7, %v1541_v34, %v2307_v19 }
 0x13d   :  { %3139 = vst.msk [vmem:[%s5879_s3 + $0x254] sm:$0xf] %vm2989_vm3, %v2882_v20  ;;  %v2819_v27 = vpack.c.bf16 %v2563_v26, %v2563_v26  ;;  %v1700_v28 = vpop.f32.mrf.mxu2  ;;  %v1860_v29 = vpop.f32.mrf.mxu3 }
 0x13e   :  { %3203 = vst.msk [vmem:[%s5879_s3 + $0x354] sm:$0xf] %vm2989_vm3, %v2946_v24  ;;  %v1701_v30 = vadd.f32 %v4666_v23, %v1700_v28  ;;  %v1861_v31 = vadd.f32 %v4666_v23, %v1860_v29  ;;  %v1382_v32 = vpop.f32.mrf.mxu0  ;;  %v1542_v33 = vpop.f32.mrf.mxu1 }
 0x13f   :  { %3012 = vst.msk [vmem:[%s5879_s3 + $0x58] sm:$0xf] %vm2989_vm3, %v2755_v25  ;;  %v1383_v35 = vadd.f32 %v4666_v23, %v1382_v32  ;;  %v1543_v36 = vadd.f32 %v4666_v23, %v1542_v33  ;;  %v3951_v32 = vld [vmem:[%s5877_s0 + $0x1a8] sm:$0xff] }
 0x140   :  { %3076 = vst.msk [vmem:[%s5879_s3 + $0x158] sm:$0xf] %vm2989_vm3, %v2819_v27  ;;  %vm2115_vm8 = vcmp.gt.f32.partialorder %v1701_v30, 0.0  ;;  %v2371_v37 = vmul.f32 0.2, %v1701_v30  ;;  %vm2179_vm9 = vcmp.gt.f32.partialorder %v1861_v31, 0.0 }
 0x141   :  { %v2435_v38 = vmul.f32 0.2, %v1861_v31  ;;  %vm1988_vm10 = vcmp.gt.f32.partialorder %v1383_v35, 0.0  ;;  %v2244_v39 = vmul.f32 0.2, %v1383_v35  ;;  %vm2052_vm11 = vcmp.gt.f32.partialorder %v1543_v36, 0.0 }
 0x142   :  { %v2627_v40 = vsel %vm2115_vm8, %v1701_v30, %v2371_v37  ;;  %v2308_v41 = vmul.f32 0.2, %v1543_v36 }
 0x143   :  { %v2883_v42 = vpack.c.bf16 %v2627_v40, %v2627_v40  ;;  %v2691_v43 = vsel %vm2179_vm9, %v1861_v31, %v2435_v38  ;;  %v2500_v44 = vsel %vm1988_vm10, %v1383_v35, %v2244_v39  ;;  %v3919_v31 = vld [vmem:[%s5877_s0 + $0xa8] sm:$0xff] }
 0x144   :  { %v2947_v45 = vpack.c.bf16 %v2691_v43, %v2691_v43  ;;  %v2756_v46 = vpack.c.bf16 %v2500_v44, %v2500_v44  ;;  %v2564_v47 = vsel %vm2052_vm11, %v1543_v36, %v2308_v41  ;;  %v3983_v38 = vld [vmem:[%s5877_s0 + $0x2a8] sm:$0xff] }
 0x145   :  { %3140 = vst.msk [vmem:[%s5879_s3 + $0x258] sm:$0xf] %vm2989_vm3, %v2883_v42  ;;  %v2820_v48 = vpack.c.bf16 %v2564_v47, %v2564_v47  ;;  %v1702_v49 = vpop.f32.mrf.mxu2  ;;  %v1862_v50 = vpop.f32.mrf.mxu3  ;;  %v4015_v39 = vld [vmem:[%s5877_s0 + $0x3a8] sm:$0xff] }
 0x146   :  { %3204 = vst.msk [vmem:[%s5879_s3 + $0x358] sm:$0xf] %vm2989_vm3, %v2947_v45  ;;  %v1703_v53 = vadd.f32 %v4666_v23, %v1702_v49  ;;  %v1863_v54 = vadd.f32 %v4666_v23, %v1862_v50  ;;  %v1385_v55 = vpop.f32.mrf.mxu0  ;;  %v1545_v56 = vpop.f32.mrf.mxu1 }
 0x147   :  { %3013 = vst.msk [vmem:[%s5879_s3 + $0x5c] sm:$0xf] %vm2989_vm3, %v2756_v46  ;;  %v1386_v59 = vadd.f32 %v4666_v23, %v1385_v55  ;;  %v1546_v60 = vadd.f32 %v4666_v23, %v1545_v56 }
 0x148   :  { %3077 = vst.msk [vmem:[%s5879_s3 + $0x15c] sm:$0xf] %vm2989_vm3, %v2820_v48  ;;  %vm2116_vm12 = vcmp.gt.f32.partialorder %v1703_v53, 0.0  ;;  %v2372_v61 = vmul.f32 0.2, %v1703_v53  ;;  %vm2180_vm13 = vcmp.gt.f32.partialorder %v1863_v54, 0.0 }
 0x149   :  { %v2436_v62 = vmul.f32 0.2, %v1863_v54  ;;  %vm1989_vm14 = vcmp.gt.f32.partialorder %v1386_v59, 0.0  ;;  %v2245_v63 = vmul.f32 0.2, %v1386_v59  ;;  %vm2053_vm15 = vcmp.gt.f32.partialorder %v1546_v60, 0.0  ;;  %3790 = vmatmul.msk.bf16.gmra.mxu0 %vm931_vm0, %v3918_v51  ;;  %3822 = vmatmul.msk.bf16.gmra.mxu1 %vm931_vm0, %v3950_v52 }
 0x14a   :  { %v2628_v0 = vsel %vm2116_vm12, %v1703_v53, %v2372_v61  ;;  %v2309_v1 = vmul.f32 0.2, %v1546_v60  ;;  %3854 = vmatmul.msk.bf16.gmra.mxu2 %vm931_vm0, %v3982_v57  ;;  %3886 = vmatmul.msk.bf16.gmra.mxu3 %vm931_vm0, %v4014_v58 }
 0x14b   :  { %v2884_v2 = vpack.c.bf16 %v2628_v0, %v2628_v0  ;;  %v2692_v3 = vsel %vm2180_vm13, %v1863_v54, %v2436_v62  ;;  %v2501_v4 = vsel %vm1989_vm14, %v1386_v59, %v2245_v63 }
 0x14c   :  { %v2948_v5 = vpack.c.bf16 %v2692_v3, %v2692_v3  ;;  %v2757_v6 = vpack.c.bf16 %v2501_v4, %v2501_v4  ;;  %v2565_v7 = vsel %vm2053_vm15, %v1546_v60, %v2309_v1 }
 0x14d   :  { %3141 = vst.msk [vmem:[%s5879_s3 + $0x25c] sm:$0xf] %vm2989_vm3, %v2884_v2  ;;  %v2821_v8 = vpack.c.bf16 %v2565_v7, %v2565_v7  ;;  %v1705_v9 = vpop.f32.mrf.mxu2  ;;  %v1865_v10 = vpop.f32.mrf.mxu3 }
 0x14e   :  { %3205 = vst.msk [vmem:[%s5879_s3 + $0x35c] sm:$0xf] %vm2989_vm3, %v2948_v5  ;;  %v1706_v11 = vadd.f32 %v4666_v23, %v1705_v9  ;;  %v1866_v12 = vadd.f32 %v4666_v23, %v1865_v10  ;;  %v1387_v13 = vpop.f32.mrf.mxu0  ;;  %v1547_v14 = vpop.f32.mrf.mxu1 }
 0x14f   :  { %3014 = vst.msk [vmem:[%s5879_s3 + $0x60] sm:$0xf] %vm2989_vm3, %v2757_v6  ;;  %v1388_v34 = vadd.f32 %v4666_v23, %v1387_v13  ;;  %v1548_v15 = vadd.f32 %v4666_v23, %v1547_v14  ;;  %v3952_v13 = vld [vmem:[%s5877_s0 + $0x1b0] sm:$0xff] }
 0x150   :  { %3078 = vst.msk [vmem:[%s5879_s3 + $0x160] sm:$0xf] %vm2989_vm3, %v2821_v8  ;;  %vm2117_vm1 = vcmp.gt.f32.partialorder %v1706_v11, 0.0  ;;  %v2373_v16 = vmul.f32 0.2, %v1706_v11  ;;  %vm2181_vm2 = vcmp.gt.f32.partialorder %v1866_v12, 0.0 }
 0x151   :  { %v2437_v17 = vmul.f32 0.2, %v1866_v12  ;;  %vm1990_vm4 = vcmp.gt.f32.partialorder %v1388_v34, 0.0  ;;  %v2246_v18 = vmul.f32 0.2, %v1388_v34  ;;  %vm2054_vm5 = vcmp.gt.f32.partialorder %v1548_v15, 0.0 }
 0x152   :  { %v2629_v19 = vsel %vm2117_vm1, %v1706_v11, %v2373_v16  ;;  %v2310_v20 = vmul.f32 0.2, %v1548_v15 }
 0x153   :  { %v2885_v21 = vpack.c.bf16 %v2629_v19, %v2629_v19  ;;  %v2693_v22 = vsel %vm2181_vm2, %v1866_v12, %v2437_v17  ;;  %v2502_v24 = vsel %vm1990_vm4, %v1388_v34, %v2246_v18  ;;  %v3920_v12 = vld [vmem:[%s5877_s0 + $0xb0] sm:$0xff] }
 0x154   :  { %v2949_v25 = vpack.c.bf16 %v2693_v22, %v2693_v22  ;;  %v2758_v26 = vpack.c.bf16 %v2502_v24, %v2502_v24  ;;  %v2566_v27 = vsel %vm2054_vm5, %v1548_v15, %v2310_v20  ;;  %v3984_v17 = vld [vmem:[%s5877_s0 + $0x2b0] sm:$0xff] }
 0x155   :  { %3142 = vst.msk [vmem:[%s5879_s3 + $0x260] sm:$0xf] %vm2989_vm3, %v2885_v21  ;;  %v2822_v28 = vpack.c.bf16 %v2566_v27, %v2566_v27  ;;  %v1707_v29 = vpop.f32.mrf.mxu2  ;;  %v1867_v30 = vpop.f32.mrf.mxu3  ;;  %v4016_v18 = vld [vmem:[%s5877_s0 + $0x3b0] sm:$0xff] }
 0x156   :  { %3206 = vst.msk [vmem:[%s5879_s3 + $0x360] sm:$0xf] %vm2989_vm3, %v2949_v25  ;;  %v1708_v33 = vadd.f32 %v4666_v23, %v1707_v29  ;;  %v1868_v35 = vadd.f32 %v4666_v23, %v1867_v30  ;;  %v1390_v36 = vpop.f32.mrf.mxu0  ;;  %v1550_v37 = vpop.f32.mrf.mxu1 }
 0x157   :  { %3015 = vst.msk [vmem:[%s5879_s3 + $0x64] sm:$0xf] %vm2989_vm3, %v2758_v26  ;;  %v1391_v40 = vadd.f32 %v4666_v23, %v1390_v36  ;;  %v1551_v41 = vadd.f32 %v4666_v23, %v1550_v37 }
 0x158   :  { %3079 = vst.msk [vmem:[%s5879_s3 + $0x164] sm:$0xf] %vm2989_vm3, %v2822_v28  ;;  %vm2118_vm6 = vcmp.gt.f32.partialorder %v1708_v33, 0.0  ;;  %v2374_v42 = vmul.f32 0.2, %v1708_v33  ;;  %vm2182_vm7 = vcmp.gt.f32.partialorder %v1868_v35, 0.0 }
 0x159   :  { %v2438_v43 = vmul.f32 0.2, %v1868_v35  ;;  %vm1991_vm8 = vcmp.gt.f32.partialorder %v1391_v40, 0.0  ;;  %v2247_v44 = vmul.f32 0.2, %v1391_v40  ;;  %vm2055_vm9 = vcmp.gt.f32.partialorder %v1551_v41, 0.0  ;;  %3791 = vmatmul.msk.bf16.gmra.mxu0 %vm931_vm0, %v3919_v31  ;;  %3823 = vmatmul.msk.bf16.gmra.mxu1 %vm931_vm0, %v3951_v32 }
 0x15a   :  { %v2630_v45 = vsel %vm2118_vm6, %v1708_v33, %v2374_v42  ;;  %v2311_v46 = vmul.f32 0.2, %v1551_v41  ;;  %3855 = vmatmul.msk.bf16.gmra.mxu2 %vm931_vm0, %v3983_v38  ;;  %3887 = vmatmul.msk.bf16.gmra.mxu3 %vm931_vm0, %v4015_v39 }
 0x15b   :  { %v2886_v47 = vpack.c.bf16 %v2630_v45, %v2630_v45  ;;  %v2694_v48 = vsel %vm2182_vm7, %v1868_v35, %v2438_v43  ;;  %v2503_v49 = vsel %vm1991_vm8, %v1391_v40, %v2247_v44 }
 0x15c   :  { %v2950_v50 = vpack.c.bf16 %v2694_v48, %v2694_v48  ;;  %v2759_v51 = vpack.c.bf16 %v2503_v49, %v2503_v49  ;;  %v2567_v52 = vsel %vm2055_vm9, %v1551_v41, %v2311_v46 }
 0x15d   :  { %3143 = vst.msk [vmem:[%s5879_s3 + $0x264] sm:$0xf] %vm2989_vm3, %v2886_v47  ;;  %v2823_v53 = vpack.c.bf16 %v2567_v52, %v2567_v52  ;;  %v1710_v54 = vpop.f32.mrf.mxu2  ;;  %v1870_v55 = vpop.f32.mrf.mxu3 }
 0x15e   :  { %3207 = vst.msk [vmem:[%s5879_s3 + $0x364] sm:$0xf] %vm2989_vm3, %v2950_v50  ;;  %v1711_v56 = vadd.f32 %v4666_v23, %v1710_v54  ;;  %v1871_v57 = vadd.f32 %v4666_v23, %v1870_v55  ;;  %v1392_v58 = vpop.f32.mrf.mxu0  ;;  %v1552_v59 = vpop.f32.mrf.mxu1 }
 0x15f   :  { %3016 = vst.msk [vmem:[%s5879_s3 + $0x68] sm:$0xf] %vm2989_vm3, %v2759_v51  ;;  %v1393_v60 = vadd.f32 %v4666_v23, %v1392_v58  ;;  %v1553_v61 = vadd.f32 %v4666_v23, %v1552_v59  ;;  %v3953_v58 = vld [vmem:[%s5877_s0 + $0x1b8] sm:$0xff] }
 0x160   :  { %3080 = vst.msk [vmem:[%s5879_s3 + $0x168] sm:$0xf] %vm2989_vm3, %v2823_v53  ;;  %vm2119_vm10 = vcmp.gt.f32.partialorder %v1711_v56, 0.0  ;;  %v2375_v62 = vmul.f32 0.2, %v1711_v56  ;;  %vm2183_vm11 = vcmp.gt.f32.partialorder %v1871_v57, 0.0 }
 0x161   :  { %v2439_v63 = vmul.f32 0.2, %v1871_v57  ;;  %vm1992_vm12 = vcmp.gt.f32.partialorder %v1393_v60, 0.0  ;;  %v2248_v0 = vmul.f32 0.2, %v1393_v60  ;;  %vm2056_vm13 = vcmp.gt.f32.partialorder %v1553_v61, 0.0 }
 0x162   :  { %v2631_v1 = vsel %vm2119_vm10, %v1711_v56, %v2375_v62  ;;  %v2312_v2 = vmul.f32 0.2, %v1553_v61 }
 0x163   :  { %v2887_v3 = vpack.c.bf16 %v2631_v1, %v2631_v1  ;;  %v2695_v4 = vsel %vm2183_vm11, %v1871_v57, %v2439_v63  ;;  %v2504_v5 = vsel %vm1992_vm12, %v1393_v60, %v2248_v0  ;;  %v3921_v57 = vld [vmem:[%s5877_s0 + $0xb8] sm:$0xff] }
 0x164   :  { %v2951_v6 = vpack.c.bf16 %v2695_v4, %v2695_v4  ;;  %v2760_v7 = vpack.c.bf16 %v2504_v5, %v2504_v5  ;;  %v2568_v8 = vsel %vm2056_vm13, %v1553_v61, %v2312_v2  ;;  %v3985_v63 = vld [vmem:[%s5877_s0 + $0x2b8] sm:$0xff] }
 0x165   :  { %3144 = vst.msk [vmem:[%s5879_s3 + $0x268] sm:$0xf] %vm2989_vm3, %v2887_v3  ;;  %v2824_v9 = vpack.c.bf16 %v2568_v8, %v2568_v8  ;;  %v1712_v10 = vpop.f32.mrf.mxu2  ;;  %v1872_v11 = vpop.f32.mrf.mxu3  ;;  %v4017_v0 = vld [vmem:[%s5877_s0 + $0x3b8] sm:$0xff] }
 0x166   :  { %3208 = vst.msk [vmem:[%s5879_s3 + $0x368] sm:$0xf] %vm2989_vm3, %v2951_v6  ;;  %v1713_v14 = vadd.f32 %v4666_v23, %v1712_v10  ;;  %v1873_v34 = vadd.f32 %v4666_v23, %v1872_v11  ;;  %v1395_v15 = vpop.f32.mrf.mxu0  ;;  %v1555_v16 = vpop.f32.mrf.mxu1 }
 0x167   :  { %3017 = vst.msk [vmem:[%s5879_s3 + $0x6c] sm:$0xf] %vm2989_vm3, %v2760_v7  ;;  %v1396_v19 = vadd.f32 %v4666_v23, %v1395_v15  ;;  %v1556_v20 = vadd.f32 %v4666_v23, %v1555_v16 }
 0x168   :  { %3081 = vst.msk [vmem:[%s5879_s3 + $0x16c] sm:$0xf] %vm2989_vm3, %v2824_v9  ;;  %vm2120_vm14 = vcmp.gt.f32.partialorder %v1713_v14, 0.0  ;;  %v2376_v21 = vmul.f32 0.2, %v1713_v14  ;;  %vm2184_vm15 = vcmp.gt.f32.partialorder %v1873_v34, 0.0 }
 0x169   :  { %v2440_v22 = vmul.f32 0.2, %v1873_v34  ;;  %vm1993_vm1 = vcmp.gt.f32.partialorder %v1396_v19, 0.0  ;;  %v2249_v24 = vmul.f32 0.2, %v1396_v19  ;;  %vm2057_vm2 = vcmp.gt.f32.partialorder %v1556_v20, 0.0  ;;  %3792 = vmatmul.msk.bf16.gmra.mxu0 %vm931_vm0, %v3920_v12  ;;  %3824 = vmatmul.msk.bf16.gmra.mxu1 %vm931_vm0, %v3952_v13 }
 0x16a   :  { %v2632_v25 = vsel %vm2120_vm14, %v1713_v14, %v2376_v21  ;;  %v2313_v26 = vmul.f32 0.2, %v1556_v20  ;;  %3856 = vmatmul.msk.bf16.gmra.mxu2 %vm931_vm0, %v3984_v17  ;;  %3888 = vmatmul.msk.bf16.gmra.mxu3 %vm931_vm0, %v4016_v18 }
 0x16b   :  { %v2888_v27 = vpack.c.bf16 %v2632_v25, %v2632_v25  ;;  %v2696_v28 = vsel %vm2184_vm15, %v1873_v34, %v2440_v22  ;;  %v2505_v29 = vsel %vm1993_vm1, %v1396_v19, %v2249_v24 }
 0x16c   :  { %v2952_v30 = vpack.c.bf16 %v2696_v28, %v2696_v28  ;;  %v2761_v31 = vpack.c.bf16 %v2505_v29, %v2505_v29  ;;  %v2569_v32 = vsel %vm2057_vm2, %v1556_v20, %v2313_v26 }
 0x16d   :  { %3145 = vst.msk [vmem:[%s5879_s3 + $0x26c] sm:$0xf] %vm2989_vm3, %v2888_v27  ;;  %v2825_v33 = vpack.c.bf16 %v2569_v32, %v2569_v32  ;;  %v1715_v35 = vpop.f32.mrf.mxu2  ;;  %v1875_v36 = vpop.f32.mrf.mxu3 }
 0x16e   :  { %3209 = vst.msk [vmem:[%s5879_s3 + $0x36c] sm:$0xf] %vm2989_vm3, %v2952_v30  ;;  %v1716_v37 = vadd.f32 %v4666_v23, %v1715_v35  ;;  %v1876_v38 = vadd.f32 %v4666_v23, %v1875_v36  ;;  %v1397_v39 = vpop.f32.mrf.mxu0  ;;  %v1557_v40 = vpop.f32.mrf.mxu1 }
 0x16f   :  { %3018 = vst.msk [vmem:[%s5879_s3 + $0x70] sm:$0xf] %vm2989_vm3, %v2761_v31  ;;  %v1398_v41 = vadd.f32 %v4666_v23, %v1397_v39  ;;  %v1558_v42 = vadd.f32 %v4666_v23, %v1557_v40  ;;  %v3954_v39 = vld [vmem:[%s5877_s0 + $0x1c0] sm:$0xff] }
 0x170   :  { %3082 = vst.msk [vmem:[%s5879_s3 + $0x170] sm:$0xf] %vm2989_vm3, %v2825_v33  ;;  %vm2121_vm4 = vcmp.gt.f32.partialorder %v1716_v37, 0.0  ;;  %v2377_v43 = vmul.f32 0.2, %v1716_v37  ;;  %vm2185_vm5 = vcmp.gt.f32.partialorder %v1876_v38, 0.0 }
 0x171   :  { %v2441_v44 = vmul.f32 0.2, %v1876_v38  ;;  %vm1994_vm6 = vcmp.gt.f32.partialorder %v1398_v41, 0.0  ;;  %v2250_v45 = vmul.f32 0.2, %v1398_v41  ;;  %vm2058_vm7 = vcmp.gt.f32.partialorder %v1558_v42, 0.0 }
 0x172   :  { %v2633_v46 = vsel %vm2121_vm4, %v1716_v37, %v2377_v43  ;;  %v2314_v47 = vmul.f32 0.2, %v1558_v42 }
 0x173   :  { %v2889_v48 = vpack.c.bf16 %v2633_v46, %v2633_v46  ;;  %v2697_v49 = vsel %vm2185_vm5, %v1876_v38, %v2441_v44  ;;  %v2506_v50 = vsel %vm1994_vm6, %v1398_v41, %v2250_v45  ;;  %v3922_v38 = vld [vmem:[%s5877_s0 + $0xc0] sm:$0xff] }
 0x174   :  { %v2953_v51 = vpack.c.bf16 %v2697_v49, %v2697_v49  ;;  %v2762_v52 = vpack.c.bf16 %v2506_v50, %v2506_v50  ;;  %v2570_v53 = vsel %vm2058_vm7, %v1558_v42, %v2314_v47  ;;  %v3986_v44 = vld [vmem:[%s5877_s0 + $0x2c0] sm:$0xff] }
 0x175   :  { %3146 = vst.msk [vmem:[%s5879_s3 + $0x270] sm:$0xf] %vm2989_vm3, %v2889_v48  ;;  %v2826_v54 = vpack.c.bf16 %v2570_v53, %v2570_v53  ;;  %v1717_v55 = vpop.f32.mrf.mxu2  ;;  %v1877_v56 = vpop.f32.mrf.mxu3  ;;  %v4018_v45 = vld [vmem:[%s5877_s0 + $0x3c0] sm:$0xff] }
 0x176   :  { %3210 = vst.msk [vmem:[%s5879_s3 + $0x370] sm:$0xf] %vm2989_vm3, %v2953_v51  ;;  %v1718_v59 = vadd.f32 %v4666_v23, %v1717_v55  ;;  %v1878_v60 = vadd.f32 %v4666_v23, %v1877_v56  ;;  %v1400_v61 = vpop.f32.mrf.mxu0  ;;  %v1560_v62 = vpop.f32.mrf.mxu1 }
 0x177   :  { %3019 = vst.msk [vmem:[%s5879_s3 + $0x74] sm:$0xf] %vm2989_vm3, %v2762_v52  ;;  %v1401_v1 = vadd.f32 %v4666_v23, %v1400_v61  ;;  %v1561_v2 = vadd.f32 %v4666_v23, %v1560_v62  ;;  %v5119_v61 = vld [vmem:[%s5878_s2] ss:$0 sm:$0xff] }
 0x178   :  { %3083 = vst.msk [vmem:[%s5879_s3 + $0x174] sm:$0xf] %vm2989_vm3, %v2826_v54  ;;  %vm2122_vm8 = vcmp.gt.f32.partialorder %v1718_v59, 0.0  ;;  %v2378_v3 = vmul.f32 0.2, %v1718_v59  ;;  %vm2186_vm9 = vcmp.gt.f32.partialorder %v1878_v60, 0.0 }
 0x179   :  { %v2442_v4 = vmul.f32 0.2, %v1878_v60  ;;  %vm1995_vm10 = vcmp.gt.f32.partialorder %v1401_v1, 0.0  ;;  %v2251_v5 = vmul.f32 0.2, %v1401_v1  ;;  %vm2059_vm11 = vcmp.gt.f32.partialorder %v1561_v2, 0.0  ;;  %3793 = vmatmul.msk.bf16.gmra.mxu0 %vm931_vm0, %v3921_v57  ;;  %3825 = vmatmul.msk.bf16.gmra.mxu1 %vm931_vm0, %v3953_v58 }
 0x17a   :  { %v2634_v6 = vsel %vm2122_vm8, %v1718_v59, %v2378_v3  ;;  %v2315_v7 = vmul.f32 0.2, %v1561_v2  ;;  %3857 = vmatmul.msk.bf16.gmra.mxu2 %vm931_vm0, %v3985_v63  ;;  %3889 = vmatmul.msk.bf16.gmra.mxu3 %vm931_vm0, %v4017_v0 }
 0x17b   :  { %v2890_v8 = vpack.c.bf16 %v2634_v6, %v2634_v6  ;;  %v2698_v9 = vsel %vm2186_vm9, %v1878_v60, %v2442_v4  ;;  %v2507_v10 = vsel %vm1995_vm10, %v1401_v1, %v2251_v5 }
 0x17c   :  { %v2954_v11 = vpack.c.bf16 %v2698_v9, %v2698_v9  ;;  %v2763_v12 = vpack.c.bf16 %v2507_v10, %v2507_v10  ;;  %v2571_v13 = vsel %vm2059_vm11, %v1561_v2, %v2315_v7 }
 0x17d   :  { %3147 = vst.msk [vmem:[%s5879_s3 + $0x274] sm:$0xf] %vm2989_vm3, %v2890_v8  ;;  %v2827_v14 = vpack.c.bf16 %v2571_v13, %v2571_v13  ;;  %v1720_v34 = vpop.f32.mrf.mxu2  ;;  %v1880_v15 = vpop.f32.mrf.mxu3 }
 0x17e   :  { %3211 = vst.msk [vmem:[%s5879_s3 + $0x374] sm:$0xf] %vm2989_vm3, %v2954_v11  ;;  %v1721_v16 = vadd.f32 %v4666_v23, %v1720_v34  ;;  %v1881_v17 = vadd.f32 %v4666_v23, %v1880_v15  ;;  %v1402_v18 = vpop.f32.mrf.mxu0  ;;  %v1562_v19 = vpop.f32.mrf.mxu1 }
 0x17f   :  { %3020 = vst.msk [vmem:[%s5879_s3 + $0x78] sm:$0xf] %vm2989_vm3, %v2763_v12  ;;  %v1403_v20 = vadd.f32 %v4666_v23, %v1402_v18  ;;  %v1563_v21 = vadd.f32 %v4666_v23, %v1562_v19  ;;  %v3955_v18 = vld [vmem:[%s5877_s0 + $0x1c8] sm:$0xff] }
 0x180   :  { %3084 = vst.msk [vmem:[%s5879_s3 + $0x178] sm:$0xf] %vm2989_vm3, %v2827_v14  ;;  %vm2123_vm12 = vcmp.gt.f32.partialorder %v1721_v16, 0.0  ;;  %v2379_v22 = vmul.f32 0.2, %v1721_v16  ;;  %vm2187_vm13 = vcmp.gt.f32.partialorder %v1881_v17, 0.0 }
 0x181   :  { %v2443_v24 = vmul.f32 0.2, %v1881_v17  ;;  %vm1996_vm14 = vcmp.gt.f32.partialorder %v1403_v20, 0.0  ;;  %v2252_v25 = vmul.f32 0.2, %v1403_v20  ;;  %vm2060_vm15 = vcmp.gt.f32.partialorder %v1563_v21, 0.0 }
 0x182   :  { %v2635_v26 = vsel %vm2123_vm12, %v1721_v16, %v2379_v22  ;;  %v2316_v27 = vmul.f32 0.2, %v1563_v21 }
 0x183   :  { %v2891_v28 = vpack.c.bf16 %v2635_v26, %v2635_v26  ;;  %v2699_v29 = vsel %vm2187_vm13, %v1881_v17, %v2443_v24  ;;  %v2508_v30 = vsel %vm1996_vm14, %v1403_v20, %v2252_v25  ;;  %v3923_v17 = vld [vmem:[%s5877_s0 + $0xc8] sm:$0xff] }
 0x184   :  { %v2955_v31 = vpack.c.bf16 %v2699_v29, %v2699_v29  ;;  %v2764_v32 = vpack.c.bf16 %v2508_v30, %v2508_v30  ;;  %v2572_v33 = vsel %vm2060_vm15, %v1563_v21, %v2316_v27  ;;  %v3987_v24 = vld [vmem:[%s5877_s0 + $0x2c8] sm:$0xff] }
 0x185   :  { %3148 = vst.msk [vmem:[%s5879_s3 + $0x278] sm:$0xf] %vm2989_vm3, %v2891_v28  ;;  %v2828_v35 = vpack.c.bf16 %v2572_v33, %v2572_v33  ;;  %v1722_v36 = vpop.f32.mrf.mxu2  ;;  %v1882_v37 = vpop.f32.mrf.mxu3  ;;  %v4019_v25 = vld [vmem:[%s5877_s0 + $0x3c8] sm:$0xff] }
 0x186   :  { %3212 = vst.msk [vmem:[%s5879_s3 + $0x378] sm:$0xf] %vm2989_vm3, %v2955_v31  ;;  %v1723_v40 = vadd.f32 %v4666_v23, %v1722_v36  ;;  %v1883_v41 = vadd.f32 %v4666_v23, %v1882_v37  ;;  %v1405_v42 = vpop.f32.mrf.mxu0  ;;  %v1565_v43 = vpop.f32.mrf.mxu1 }
 0x187   :  { %3021 = vst.msk [vmem:[%s5879_s3 + $0x7c] sm:$0xf] %vm2989_vm3, %v2764_v32  ;;  %v1406_v46 = vadd.f32 %v4666_v23, %v1405_v42  ;;  %v1566_v47 = vadd.f32 %v4666_v23, %v1565_v43 }
 0x188   :  { %3085 = vst.msk [vmem:[%s5879_s3 + $0x17c] sm:$0xf] %vm2989_vm3, %v2828_v35  ;;  %vm2124_vm1 = vcmp.gt.f32.partialorder %v1723_v40, 0.0  ;;  %v2380_v48 = vmul.f32 0.2, %v1723_v40  ;;  %vm2188_vm2 = vcmp.gt.f32.partialorder %v1883_v41, 0.0 }
 0x189   :  { %v2444_v49 = vmul.f32 0.2, %v1883_v41  ;;  %vm1997_vm4 = vcmp.gt.f32.partialorder %v1406_v46, 0.0  ;;  %v2253_v50 = vmul.f32 0.2, %v1406_v46  ;;  %vm2061_vm5 = vcmp.gt.f32.partialorder %v1566_v47, 0.0  ;;  %3794 = vmatmul.msk.bf16.gmra.mxu0 %vm931_vm0, %v3922_v38  ;;  %3826 = vmatmul.msk.bf16.gmra.mxu1 %vm931_vm0, %v3954_v39 }
 0x18a   :  { %v2636_v51 = vsel %vm2124_vm1, %v1723_v40, %v2380_v48  ;;  %v2317_v52 = vmul.f32 0.2, %v1566_v47  ;;  %3858 = vmatmul.msk.bf16.gmra.mxu2 %vm931_vm0, %v3986_v44  ;;  %3890 = vmatmul.msk.bf16.gmra.mxu3 %vm931_vm0, %v4018_v45 }
 0x18b   :  { %v2892_v23 = vpack.c.bf16 %v2636_v51, %v2636_v51  ;;  %v2700_v53 = vsel %vm2188_vm2, %v1883_v41, %v2444_v49  ;;  %v2509_v54 = vsel %vm1997_vm4, %v1406_v46, %v2253_v50 }
 0x18c   :  { %v2956_v55 = vpack.c.bf16 %v2700_v53, %v2700_v53  ;;  %v2765_v56 = vpack.c.bf16 %v2509_v54, %v2509_v54  ;;  %v2573_v57 = vsel %vm2061_vm5, %v1566_v47, %v2317_v52 }
 0x18d   :  { %3149 = vst.msk [vmem:[%s5879_s3 + $0x27c] sm:$0xf] %vm2989_vm3, %v2892_v23  ;;  %v2829_v58 = vpack.c.bf16 %v2573_v57, %v2573_v57  ;;  %v1725_v59 = vpop.f32.mrf.mxu2  ;;  %v1885_v60 = vpop.f32.mrf.mxu3 }
 0x18e   :  { %3213 = vst.msk [vmem:[%s5879_s3 + $0x37c] sm:$0xf] %vm2989_vm3, %v2956_v55  ;;  %v1726_v62 = vadd.f32 %v5119_v61, %v1725_v59  ;;  %v1886_v63 = vadd.f32 %v5119_v61, %v1885_v60  ;;  %v1407_v0 = vpop.f32.mrf.mxu0  ;;  %v1567_v1 = vpop.f32.mrf.mxu1 }
 0x18f   :  { %3022 = vst.msk [vmem:[%s5879_s3 + $0x80] sm:$0xf] %vm2989_vm3, %v2765_v56  ;;  %v1408_v2 = vadd.f32 %v5119_v61, %v1407_v0  ;;  %v1568_v3 = vadd.f32 %v5119_v61, %v1567_v1  ;;  %v3956_v0 = vld [vmem:[%s5877_s0 + $0x1d0] sm:$0xff] }
 0x190   :  { %3086 = vst.msk [vmem:[%s5879_s3 + $0x180] sm:$0xf] %vm2989_vm3, %v2829_v58  ;;  %vm2125_vm6 = vcmp.gt.f32.partialorder %v1726_v62, 0.0  ;;  %v2381_v4 = vmul.f32 0.2, %v1726_v62  ;;  %vm2189_vm7 = vcmp.gt.f32.partialorder %v1886_v63, 0.0 }
 0x191   :  { %v2445_v5 = vmul.f32 0.2, %v1886_v63  ;;  %vm1998_vm8 = vcmp.gt.f32.partialorder %v1408_v2, 0.0  ;;  %v2254_v6 = vmul.f32 0.2, %v1408_v2  ;;  %vm2062_vm9 = vcmp.gt.f32.partialorder %v1568_v3, 0.0 }
 0x192   :  { %v2637_v7 = vsel %vm2125_vm6, %v1726_v62, %v2381_v4  ;;  %v2318_v8 = vmul.f32 0.2, %v1568_v3 }
 0x193   :  { %v2893_v9 = vpack.c.bf16 %v2637_v7, %v2637_v7  ;;  %v2701_v10 = vsel %vm2189_vm7, %v1886_v63, %v2445_v5  ;;  %v2510_v11 = vsel %vm1998_vm8, %v1408_v2, %v2254_v6  ;;  %v3924_v63 = vld [vmem:[%s5877_s0 + $0xd0] sm:$0xff] }
 0x194   :  { %v2957_v12 = vpack.c.bf16 %v2701_v10, %v2701_v10  ;;  %v2766_v13 = vpack.c.bf16 %v2510_v11, %v2510_v11  ;;  %v2574_v14 = vsel %vm2062_vm9, %v1568_v3, %v2318_v8  ;;  %v3988_v5 = vld [vmem:[%s5877_s0 + $0x2d0] sm:$0xff] }
 0x195   :  { %3150 = vst.msk [vmem:[%s5879_s3 + $0x280] sm:$0xf] %vm2989_vm3, %v2893_v9  ;;  %v2830_v34 = vpack.c.bf16 %v2574_v14, %v2574_v14  ;;  %v1727_v15 = vpop.f32.mrf.mxu2  ;;  %v1887_v16 = vpop.f32.mrf.mxu3  ;;  %v4020_v6 = vld [vmem:[%s5877_s0 + $0x3d0] sm:$0xff] }
 0x196   :  { %3214 = vst.msk [vmem:[%s5879_s3 + $0x380] sm:$0xf] %vm2989_vm3, %v2957_v12  ;;  %v1728_v19 = vadd.f32 %v5119_v61, %v1727_v15  ;;  %v1888_v20 = vadd.f32 %v5119_v61, %v1887_v16  ;;  %v1410_v21 = vpop.f32.mrf.mxu0  ;;  %v1570_v22 = vpop.f32.mrf.mxu1 }
 0x197   :  { %3023 = vst.msk [vmem:[%s5879_s3 + $0x84] sm:$0xf] %vm2989_vm3, %v2766_v13  ;;  %v1411_v26 = vadd.f32 %v5119_v61, %v1410_v21  ;;  %v1571_v27 = vadd.f32 %v5119_v61, %v1570_v22 }
 0x198   :  { %3087 = vst.msk [vmem:[%s5879_s3 + $0x184] sm:$0xf] %vm2989_vm3, %v2830_v34  ;;  %vm2126_vm10 = vcmp.gt.f32.partialorder %v1728_v19, 0.0  ;;  %v2382_v28 = vmul.f32 0.2, %v1728_v19  ;;  %vm2190_vm11 = vcmp.gt.f32.partialorder %v1888_v20, 0.0 }
 0x199   :  { %v2446_v29 = vmul.f32 0.2, %v1888_v20  ;;  %vm1999_vm12 = vcmp.gt.f32.partialorder %v1411_v26, 0.0  ;;  %v2255_v30 = vmul.f32 0.2, %v1411_v26  ;;  %vm2063_vm13 = vcmp.gt.f32.partialorder %v1571_v27, 0.0  ;;  %3795 = vmatmul.msk.bf16.gmra.mxu0 %vm931_vm0, %v3923_v17  ;;  %3827 = vmatmul.msk.bf16.gmra.mxu1 %vm931_vm0, %v3955_v18 }
 0x19a   :  { %v2638_v31 = vsel %vm2126_vm10, %v1728_v19, %v2382_v28  ;;  %v2319_v32 = vmul.f32 0.2, %v1571_v27  ;;  %3859 = vmatmul.msk.bf16.gmra.mxu2 %vm931_vm0, %v3987_v24  ;;  %3891 = vmatmul.msk.bf16.gmra.mxu3 %vm931_vm0, %v4019_v25 }
 0x19b   :  { %v2894_v33 = vpack.c.bf16 %v2638_v31, %v2638_v31  ;;  %v2702_v35 = vsel %vm2190_vm11, %v1888_v20, %v2446_v29  ;;  %v2511_v36 = vsel %vm1999_vm12, %v1411_v26, %v2255_v30 }
 0x19c   :  { %v2958_v37 = vpack.c.bf16 %v2702_v35, %v2702_v35  ;;  %v2767_v38 = vpack.c.bf16 %v2511_v36, %v2511_v36  ;;  %v2575_v39 = vsel %vm2063_vm13, %v1571_v27, %v2319_v32 }
 0x19d   :  { %3151 = vst.msk [vmem:[%s5879_s3 + $0x284] sm:$0xf] %vm2989_vm3, %v2894_v33  ;;  %v2831_v40 = vpack.c.bf16 %v2575_v39, %v2575_v39  ;;  %v1730_v41 = vpop.f32.mrf.mxu2  ;;  %v1890_v42 = vpop.f32.mrf.mxu3 }
 0x19e   :  { %3215 = vst.msk [vmem:[%s5879_s3 + $0x384] sm:$0xf] %vm2989_vm3, %v2958_v37  ;;  %v1731_v43 = vadd.f32 %v5119_v61, %v1730_v41  ;;  %v1891_v44 = vadd.f32 %v5119_v61, %v1890_v42  ;;  %v1412_v45 = vpop.f32.mrf.mxu0  ;;  %v1572_v46 = vpop.f32.mrf.mxu1 }
 0x19f   :  { %3024 = vst.msk [vmem:[%s5879_s3 + $0x88] sm:$0xf] %vm2989_vm3, %v2767_v38  ;;  %v1413_v47 = vadd.f32 %v5119_v61, %v1412_v45  ;;  %v1573_v48 = vadd.f32 %v5119_v61, %v1572_v46  ;;  %v3957_v45 = vld [vmem:[%s5877_s0 + $0x1d8] sm:$0xff] }
 0x1a0   :  { %3088 = vst.msk [vmem:[%s5879_s3 + $0x188] sm:$0xf] %vm2989_vm3, %v2831_v40  ;;  %vm2127_vm14 = vcmp.gt.f32.partialorder %v1731_v43, 0.0  ;;  %v2383_v49 = vmul.f32 0.2, %v1731_v43  ;;  %vm2191_vm15 = vcmp.gt.f32.partialorder %v1891_v44, 0.0 }
 0x1a1   :  { %v2447_v50 = vmul.f32 0.2, %v1891_v44  ;;  %vm2000_vm1 = vcmp.gt.f32.partialorder %v1413_v47, 0.0  ;;  %v2256_v51 = vmul.f32 0.2, %v1413_v47  ;;  %vm2064_vm2 = vcmp.gt.f32.partialorder %v1573_v48, 0.0 }
 0x1a2   :  { %v2639_v52 = vsel %vm2127_vm14, %v1731_v43, %v2383_v49  ;;  %v2320_v23 = vmul.f32 0.2, %v1573_v48 }
 0x1a3   :  { %v2895_v53 = vpack.c.bf16 %v2639_v52, %v2639_v52  ;;  %v2703_v54 = vsel %vm2191_vm15, %v1891_v44, %v2447_v50  ;;  %v2512_v55 = vsel %vm2000_vm1, %v1413_v47, %v2256_v51  ;;  %v3925_v44 = vld [vmem:[%s5877_s0 + $0xd8] sm:$0xff] }
 0x1a4   :  { %v2959_v56 = vpack.c.bf16 %v2703_v54, %v2703_v54  ;;  %v2768_v57 = vpack.c.bf16 %v2512_v55, %v2512_v55  ;;  %v2576_v58 = vsel %vm2064_vm2, %v1573_v48, %v2320_v23  ;;  %v3989_v50 = vld [vmem:[%s5877_s0 + $0x2d8] sm:$0xff] }
 0x1a5   :  { %3152 = vst.msk [vmem:[%s5879_s3 + $0x288] sm:$0xf] %vm2989_vm3, %v2895_v53  ;;  %v2832_v59 = vpack.c.bf16 %v2576_v58, %v2576_v58  ;;  %v1732_v60 = vpop.f32.mrf.mxu2  ;;  %v1892_v62 = vpop.f32.mrf.mxu3  ;;  %v4021_v51 = vld [vmem:[%s5877_s0 + $0x3d8] sm:$0xff] }
 0x1a6   :  { %3216 = vst.msk [vmem:[%s5879_s3 + $0x388] sm:$0xf] %vm2989_vm3, %v2959_v56  ;;  %v1733_v1 = vadd.f32 %v5119_v61, %v1732_v60  ;;  %v1893_v2 = vadd.f32 %v5119_v61, %v1892_v62  ;;  %v1415_v3 = vpop.f32.mrf.mxu0  ;;  %v1575_v4 = vpop.f32.mrf.mxu1 }
 0x1a7   :  { %3025 = vst.msk [vmem:[%s5879_s3 + $0x8c] sm:$0xf] %vm2989_vm3, %v2768_v57  ;;  %v1416_v7 = vadd.f32 %v5119_v61, %v1415_v3  ;;  %v1576_v8 = vadd.f32 %v5119_v61, %v1575_v4 }
 0x1a8   :  { %3089 = vst.msk [vmem:[%s5879_s3 + $0x18c] sm:$0xf] %vm2989_vm3, %v2832_v59  ;;  %vm2128_vm4 = vcmp.gt.f32.partialorder %v1733_v1, 0.0  ;;  %v2384_v9 = vmul.f32 0.2, %v1733_v1  ;;  %vm2192_vm5 = vcmp.gt.f32.partialorder %v1893_v2, 0.0 }
 0x1a9   :  { %v2448_v10 = vmul.f32 0.2, %v1893_v2  ;;  %vm2001_vm6 = vcmp.gt.f32.partialorder %v1416_v7, 0.0  ;;  %v2257_v11 = vmul.f32 0.2, %v1416_v7  ;;  %vm2065_vm7 = vcmp.gt.f32.partialorder %v1576_v8, 0.0  ;;  %3796 = vmatmul.msk.bf16.gmra.mxu0 %vm931_vm0, %v3924_v63  ;;  %3828 = vmatmul.msk.bf16.gmra.mxu1 %vm931_vm0, %v3956_v0 }
 0x1aa   :  { %v2640_v12 = vsel %vm2128_vm4, %v1733_v1, %v2384_v9  ;;  %v2321_v13 = vmul.f32 0.2, %v1576_v8  ;;  %3860 = vmatmul.msk.bf16.gmra.mxu2 %vm931_vm0, %v3988_v5  ;;  %3892 = vmatmul.msk.bf16.gmra.mxu3 %vm931_vm0, %v4020_v6 }
 0x1ab   :  { %v2896_v14 = vpack.c.bf16 %v2640_v12, %v2640_v12  ;;  %v2704_v34 = vsel %vm2192_vm5, %v1893_v2, %v2448_v10  ;;  %v2513_v15 = vsel %vm2001_vm6, %v1416_v7, %v2257_v11 }
 0x1ac   :  { %v2960_v16 = vpack.c.bf16 %v2704_v34, %v2704_v34  ;;  %v2769_v17 = vpack.c.bf16 %v2513_v15, %v2513_v15  ;;  %v2577_v18 = vsel %vm2065_vm7, %v1576_v8, %v2321_v13 }
 0x1ad   :  { %3153 = vst.msk [vmem:[%s5879_s3 + $0x28c] sm:$0xf] %vm2989_vm3, %v2896_v14  ;;  %v2833_v19 = vpack.c.bf16 %v2577_v18, %v2577_v18  ;;  %v1735_v20 = vpop.f32.mrf.mxu2  ;;  %v1895_v21 = vpop.f32.mrf.mxu3 }
 0x1ae   :  { %3217 = vst.msk [vmem:[%s5879_s3 + $0x38c] sm:$0xf] %vm2989_vm3, %v2960_v16  ;;  %v1736_v22 = vadd.f32 %v5119_v61, %v1735_v20  ;;  %v1896_v24 = vadd.f32 %v5119_v61, %v1895_v21  ;;  %v1417_v25 = vpop.f32.mrf.mxu0  ;;  %v1577_v26 = vpop.f32.mrf.mxu1 }
 0x1af   :  { %3026 = vst.msk [vmem:[%s5879_s3 + $0x90] sm:$0xf] %vm2989_vm3, %v2769_v17  ;;  %v1418_v27 = vadd.f32 %v5119_v61, %v1417_v25  ;;  %v1578_v28 = vadd.f32 %v5119_v61, %v1577_v26  ;;  %v3958_v25 = vld [vmem:[%s5877_s0 + $0x1e0] sm:$0xff] }
 0x1b0   :  { %3090 = vst.msk [vmem:[%s5879_s3 + $0x190] sm:$0xf] %vm2989_vm3, %v2833_v19  ;;  %vm2129_vm8 = vcmp.gt.f32.partialorder %v1736_v22, 0.0  ;;  %v2385_v29 = vmul.f32 0.2, %v1736_v22  ;;  %vm2193_vm9 = vcmp.gt.f32.partialorder %v1896_v24, 0.0 }
 0x1b1   :  { %v2449_v30 = vmul.f32 0.2, %v1896_v24  ;;  %vm2002_vm10 = vcmp.gt.f32.partialorder %v1418_v27, 0.0  ;;  %v2258_v31 = vmul.f32 0.2, %v1418_v27  ;;  %vm2066_vm11 = vcmp.gt.f32.partialorder %v1578_v28, 0.0 }
 0x1b2   :  { %v2641_v32 = vsel %vm2129_vm8, %v1736_v22, %v2385_v29  ;;  %v2322_v33 = vmul.f32 0.2, %v1578_v28 }
 0x1b3   :  { %v2897_v35 = vpack.c.bf16 %v2641_v32, %v2641_v32  ;;  %v2705_v36 = vsel %vm2193_vm9, %v1896_v24, %v2449_v30  ;;  %v2514_v37 = vsel %vm2002_vm10, %v1418_v27, %v2258_v31  ;;  %v3926_v24 = vld [vmem:[%s5877_s0 + $0xe0] sm:$0xff] }
 0x1b4   :  { %v2961_v38 = vpack.c.bf16 %v2705_v36, %v2705_v36  ;;  %v2770_v39 = vpack.c.bf16 %v2514_v37, %v2514_v37  ;;  %v2578_v40 = vsel %vm2066_vm11, %v1578_v28, %v2322_v33  ;;  %v3990_v30 = vld [vmem:[%s5877_s0 + $0x2e0] sm:$0xff] }
 0x1b5   :  { %3154 = vst.msk [vmem:[%s5879_s3 + $0x290] sm:$0xf] %vm2989_vm3, %v2897_v35  ;;  %v2834_v41 = vpack.c.bf16 %v2578_v40, %v2578_v40  ;;  %v1737_v42 = vpop.f32.mrf.mxu2  ;;  %v1897_v43 = vpop.f32.mrf.mxu3  ;;  %v4022_v31 = vld [vmem:[%s5877_s0 + $0x3e0] sm:$0xff] }
 0x1b6   :  { %3218 = vst.msk [vmem:[%s5879_s3 + $0x390] sm:$0xf] %vm2989_vm3, %v2961_v38  ;;  %v1738_v46 = vadd.f32 %v5119_v61, %v1737_v42  ;;  %v1898_v47 = vadd.f32 %v5119_v61, %v1897_v43  ;;  %v1420_v48 = vpop.f32.mrf.mxu0  ;;  %v1580_v49 = vpop.f32.mrf.mxu1 }
 0x1b7   :  { %3027 = vst.msk [vmem:[%s5879_s3 + $0x94] sm:$0xf] %vm2989_vm3, %v2770_v39  ;;  %v1421_v52 = vadd.f32 %v5119_v61, %v1420_v48  ;;  %v1581_v23 = vadd.f32 %v5119_v61, %v1580_v49 }
 0x1b8   :  { %3091 = vst.msk [vmem:[%s5879_s3 + $0x194] sm:$0xf] %vm2989_vm3, %v2834_v41  ;;  %vm2130_vm12 = vcmp.gt.f32.partialorder %v1738_v46, 0.0  ;;  %v2386_v53 = vmul.f32 0.2, %v1738_v46  ;;  %vm2194_vm13 = vcmp.gt.f32.partialorder %v1898_v47, 0.0 }
 0x1b9   :  { %v2450_v54 = vmul.f32 0.2, %v1898_v47  ;;  %vm2003_vm14 = vcmp.gt.f32.partialorder %v1421_v52, 0.0  ;;  %v2259_v55 = vmul.f32 0.2, %v1421_v52  ;;  %vm2067_vm15 = vcmp.gt.f32.partialorder %v1581_v23, 0.0  ;;  %3797 = vmatmul.msk.bf16.gmra.mxu0 %vm931_vm0, %v3925_v44  ;;  %3829 = vmatmul.msk.bf16.gmra.mxu1 %vm931_vm0, %v3957_v45 }
 0x1ba   :  { %v2642_v56 = vsel %vm2130_vm12, %v1738_v46, %v2386_v53  ;;  %v2323_v57 = vmul.f32 0.2, %v1581_v23  ;;  %3861 = vmatmul.msk.bf16.gmra.mxu2 %vm931_vm0, %v3989_v50  ;;  %3893 = vmatmul.msk.bf16.gmra.mxu3 %vm931_vm0, %v4021_v51 }
 0x1bb   :  { %v2898_v58 = vpack.c.bf16 %v2642_v56, %v2642_v56  ;;  %v2706_v59 = vsel %vm2194_vm13, %v1898_v47, %v2450_v54  ;;  %v2515_v60 = vsel %vm2003_vm14, %v1421_v52, %v2259_v55 }
 0x1bc   :  { %v2962_v62 = vpack.c.bf16 %v2706_v59, %v2706_v59  ;;  %v2771_v63 = vpack.c.bf16 %v2515_v60, %v2515_v60  ;;  %v2579_v0 = vsel %vm2067_vm15, %v1581_v23, %v2323_v57 }
 0x1bd   :  { %3155 = vst.msk [vmem:[%s5879_s3 + $0x294] sm:$0xf] %vm2989_vm3, %v2898_v58  ;;  %v2835_v1 = vpack.c.bf16 %v2579_v0, %v2579_v0  ;;  %v1740_v2 = vpop.f32.mrf.mxu2  ;;  %v1900_v3 = vpop.f32.mrf.mxu3 }
 0x1be   :  { %3219 = vst.msk [vmem:[%s5879_s3 + $0x394] sm:$0xf] %vm2989_vm3, %v2962_v62  ;;  %v1741_v4 = vadd.f32 %v5119_v61, %v1740_v2  ;;  %v1901_v5 = vadd.f32 %v5119_v61, %v1900_v3  ;;  %v1422_v6 = vpop.f32.mrf.mxu0  ;;  %v1582_v7 = vpop.f32.mrf.mxu1 }
 0x1bf   :  { %3028 = vst.msk [vmem:[%s5879_s3 + $0x98] sm:$0xf] %vm2989_vm3, %v2771_v63  ;;  %v1423_v8 = vadd.f32 %v5119_v61, %v1422_v6  ;;  %v1583_v9 = vadd.f32 %v5119_v61, %v1582_v7  ;;  %v3959_v6 = vld [vmem:[%s5877_s0 + $0x1e8] sm:$0xff] }
 0x1c0   :  { %3092 = vst.msk [vmem:[%s5879_s3 + $0x198] sm:$0xf] %vm2989_vm3, %v2835_v1  ;;  %vm2131_vm1 = vcmp.gt.f32.partialorder %v1741_v4, 0.0  ;;  %v2387_v10 = vmul.f32 0.2, %v1741_v4  ;;  %vm2195_vm2 = vcmp.gt.f32.partialorder %v1901_v5, 0.0 }
 0x1c1   :  { %v2451_v11 = vmul.f32 0.2, %v1901_v5  ;;  %vm2004_vm4 = vcmp.gt.f32.partialorder %v1423_v8, 0.0  ;;  %v2260_v12 = vmul.f32 0.2, %v1423_v8  ;;  %vm2068_vm5 = vcmp.gt.f32.partialorder %v1583_v9, 0.0 }
 0x1c2   :  { %v2643_v13 = vsel %vm2131_vm1, %v1741_v4, %v2387_v10  ;;  %v2324_v14 = vmul.f32 0.2, %v1583_v9 }
 0x1c3   :  { %v2899_v34 = vpack.c.bf16 %v2643_v13, %v2643_v13  ;;  %v2707_v15 = vsel %vm2195_vm2, %v1901_v5, %v2451_v11  ;;  %v2516_v16 = vsel %vm2004_vm4, %v1423_v8, %v2260_v12  ;;  %v3927_v5 = vld [vmem:[%s5877_s0 + $0xe8] sm:$0xff] }
 0x1c4   :  { %v2963_v17 = vpack.c.bf16 %v2707_v15, %v2707_v15  ;;  %v2772_v18 = vpack.c.bf16 %v2516_v16, %v2516_v16  ;;  %v2580_v19 = vsel %vm2068_vm5, %v1583_v9, %v2324_v14  ;;  %v3991_v11 = vld [vmem:[%s5877_s0 + $0x2e8] sm:$0xff] }
 0x1c5   :  { %3156 = vst.msk [vmem:[%s5879_s3 + $0x298] sm:$0xf] %vm2989_vm3, %v2899_v34  ;;  %v2836_v20 = vpack.c.bf16 %v2580_v19, %v2580_v19  ;;  %v1742_v21 = vpop.f32.mrf.mxu2  ;;  %v1902_v22 = vpop.f32.mrf.mxu3  ;;  %v4023_v12 = vld [vmem:[%s5877_s0 + $0x3e8] sm:$0xff] }
 0x1c6   :  { %3220 = vst.msk [vmem:[%s5879_s3 + $0x398] sm:$0xf] %vm2989_vm3, %v2963_v17  ;;  %v1743_v26 = vadd.f32 %v5119_v61, %v1742_v21  ;;  %v1903_v27 = vadd.f32 %v5119_v61, %v1902_v22  ;;  %v1425_v28 = vpop.f32.mrf.mxu0  ;;  %v1585_v29 = vpop.f32.mrf.mxu1 }
 0x1c7   :  { %3029 = vst.msk [vmem:[%s5879_s3 + $0x9c] sm:$0xf] %vm2989_vm3, %v2772_v18  ;;  %v1426_v32 = vadd.f32 %v5119_v61, %v1425_v28  ;;  %v1586_v33 = vadd.f32 %v5119_v61, %v1585_v29 }
 0x1c8   :  { %3093 = vst.msk [vmem:[%s5879_s3 + $0x19c] sm:$0xf] %vm2989_vm3, %v2836_v20  ;;  %vm2132_vm6 = vcmp.gt.f32.partialorder %v1743_v26, 0.0  ;;  %v2388_v35 = vmul.f32 0.2, %v1743_v26  ;;  %vm2196_vm7 = vcmp.gt.f32.partialorder %v1903_v27, 0.0 }
 0x1c9   :  { %v2452_v36 = vmul.f32 0.2, %v1903_v27  ;;  %vm2005_vm8 = vcmp.gt.f32.partialorder %v1426_v32, 0.0  ;;  %v2261_v37 = vmul.f32 0.2, %v1426_v32  ;;  %vm2069_vm9 = vcmp.gt.f32.partialorder %v1586_v33, 0.0  ;;  %3798 = vmatmul.msk.bf16.gmra.mxu0 %vm931_vm0, %v3926_v24  ;;  %3830 = vmatmul.msk.bf16.gmra.mxu1 %vm931_vm0, %v3958_v25 }
 0x1ca   :  { %v2644_v38 = vsel %vm2132_vm6, %v1743_v26, %v2388_v35  ;;  %v2325_v39 = vmul.f32 0.2, %v1586_v33  ;;  %3862 = vmatmul.msk.bf16.gmra.mxu2 %vm931_vm0, %v3990_v30  ;;  %3894 = vmatmul.msk.bf16.gmra.mxu3 %vm931_vm0, %v4022_v31 }
 0x1cb   :  { %v2900_v40 = vpack.c.bf16 %v2644_v38, %v2644_v38  ;;  %v2708_v41 = vsel %vm2196_vm7, %v1903_v27, %v2452_v36  ;;  %v2517_v42 = vsel %vm2005_vm8, %v1426_v32, %v2261_v37 }
 0x1cc   :  { %v2964_v43 = vpack.c.bf16 %v2708_v41, %v2708_v41  ;;  %v2773_v44 = vpack.c.bf16 %v2517_v42, %v2517_v42  ;;  %v2581_v45 = vsel %vm2069_vm9, %v1586_v33, %v2325_v39 }
 0x1cd   :  { %3157 = vst.msk [vmem:[%s5879_s3 + $0x29c] sm:$0xf] %vm2989_vm3, %v2900_v40  ;;  %v2837_v46 = vpack.c.bf16 %v2581_v45, %v2581_v45  ;;  %v1745_v47 = vpop.f32.mrf.mxu2  ;;  %v1905_v48 = vpop.f32.mrf.mxu3 }
 0x1ce   :  { %3221 = vst.msk [vmem:[%s5879_s3 + $0x39c] sm:$0xf] %vm2989_vm3, %v2964_v43  ;;  %v1746_v49 = vadd.f32 %v5119_v61, %v1745_v47  ;;  %v1906_v50 = vadd.f32 %v5119_v61, %v1905_v48  ;;  %v1427_v51 = vpop.f32.mrf.mxu0  ;;  %v1587_v52 = vpop.f32.mrf.mxu1 }
 0x1cf   :  { %3030 = vst.msk [vmem:[%s5879_s3 + $0xa0] sm:$0xf] %vm2989_vm3, %v2773_v44  ;;  %v1428_v23 = vadd.f32 %v5119_v61, %v1427_v51  ;;  %v1588_v53 = vadd.f32 %v5119_v61, %v1587_v52  ;;  %v3960_v51 = vld [vmem:[%s5877_s0 + $0x1f0] sm:$0xff] }
 0x1d0   :  { %3094 = vst.msk [vmem:[%s5879_s3 + $0x1a0] sm:$0xf] %vm2989_vm3, %v2837_v46  ;;  %vm2133_vm10 = vcmp.gt.f32.partialorder %v1746_v49, 0.0  ;;  %v2389_v54 = vmul.f32 0.2, %v1746_v49  ;;  %vm2197_vm11 = vcmp.gt.f32.partialorder %v1906_v50, 0.0 }
 0x1d1   :  { %v2453_v55 = vmul.f32 0.2, %v1906_v50  ;;  %vm2006_vm12 = vcmp.gt.f32.partialorder %v1428_v23, 0.0  ;;  %v2262_v56 = vmul.f32 0.2, %v1428_v23  ;;  %vm2070_vm13 = vcmp.gt.f32.partialorder %v1588_v53, 0.0 }
 0x1d2   :  { %v2645_v57 = vsel %vm2133_vm10, %v1746_v49, %v2389_v54  ;;  %v2326_v58 = vmul.f32 0.2, %v1588_v53 }
 0x1d3   :  { %v2901_v59 = vpack.c.bf16 %v2645_v57, %v2645_v57  ;;  %v2709_v60 = vsel %vm2197_vm11, %v1906_v50, %v2453_v55  ;;  %v2518_v62 = vsel %vm2006_vm12, %v1428_v23, %v2262_v56  ;;  %v3928_v50 = vld [vmem:[%s5877_s0 + $0xf0] sm:$0xff] }
 0x1d4   :  { %v2965_v63 = vpack.c.bf16 %v2709_v60, %v2709_v60  ;;  %v2774_v0 = vpack.c.bf16 %v2518_v62, %v2518_v62  ;;  %v2582_v1 = vsel %vm2070_vm13, %v1588_v53, %v2326_v58  ;;  %v3992_v55 = vld [vmem:[%s5877_s0 + $0x2f0] sm:$0xff] }
 0x1d5   :  { %3158 = vst.msk [vmem:[%s5879_s3 + $0x2a0] sm:$0xf] %vm2989_vm3, %v2901_v59  ;;  %v2838_v2 = vpack.c.bf16 %v2582_v1, %v2582_v1  ;;  %v1747_v3 = vpop.f32.mrf.mxu2  ;;  %v1907_v4 = vpop.f32.mrf.mxu3  ;;  %v4024_v56 = vld [vmem:[%s5877_s0 + $0x3f0] sm:$0xff] }
 0x1d6   :  { %3222 = vst.msk [vmem:[%s5879_s3 + $0x3a0] sm:$0xf] %vm2989_vm3, %v2965_v63  ;;  %v1748_v7 = vadd.f32 %v5119_v61, %v1747_v3  ;;  %v1908_v8 = vadd.f32 %v5119_v61, %v1907_v4  ;;  %v1430_v9 = vpop.f32.mrf.mxu0  ;;  %v1590_v10 = vpop.f32.mrf.mxu1 }
 0x1d7   :  { %3031 = vst.msk [vmem:[%s5879_s3 + $0xa4] sm:$0xf] %vm2989_vm3, %v2774_v0  ;;  %v1431_v13 = vadd.f32 %v5119_v61, %v1430_v9  ;;  %v1591_v14 = vadd.f32 %v5119_v61, %v1590_v10 }
 0x1d8   :  { %3095 = vst.msk [vmem:[%s5879_s3 + $0x1a4] sm:$0xf] %vm2989_vm3, %v2838_v2  ;;  %vm2134_vm14 = vcmp.gt.f32.partialorder %v1748_v7, 0.0  ;;  %v2390_v34 = vmul.f32 0.2, %v1748_v7  ;;  %vm2198_vm15 = vcmp.gt.f32.partialorder %v1908_v8, 0.0 }
 0x1d9   :  { %v2454_v15 = vmul.f32 0.2, %v1908_v8  ;;  %vm2007_vm1 = vcmp.gt.f32.partialorder %v1431_v13, 0.0  ;;  %v2263_v16 = vmul.f32 0.2, %v1431_v13  ;;  %vm2071_vm2 = vcmp.gt.f32.partialorder %v1591_v14, 0.0  ;;  %3799 = vmatmul.msk.bf16.gmra.mxu0 %vm931_vm0, %v3927_v5  ;;  %3831 = vmatmul.msk.bf16.gmra.mxu1 %vm931_vm0, %v3959_v6 }
 0x1da   :  { %v2646_v17 = vsel %vm2134_vm14, %v1748_v7, %v2390_v34  ;;  %v2327_v18 = vmul.f32 0.2, %v1591_v14  ;;  %3863 = vmatmul.msk.bf16.gmra.mxu2 %vm931_vm0, %v3991_v11  ;;  %3895 = vmatmul.msk.bf16.gmra.mxu3 %vm931_vm0, %v4023_v12 }
 0x1db   :  { %v2902_v19 = vpack.c.bf16 %v2646_v17, %v2646_v17  ;;  %v2710_v20 = vsel %vm2198_vm15, %v1908_v8, %v2454_v15  ;;  %v2519_v21 = vsel %vm2007_vm1, %v1431_v13, %v2263_v16 }
 0x1dc   :  { %v2966_v22 = vpack.c.bf16 %v2710_v20, %v2710_v20  ;;  %v2775_v24 = vpack.c.bf16 %v2519_v21, %v2519_v21  ;;  %v2583_v25 = vsel %vm2071_vm2, %v1591_v14, %v2327_v18 }
 0x1dd   :  { %3159 = vst.msk [vmem:[%s5879_s3 + $0x2a4] sm:$0xf] %vm2989_vm3, %v2902_v19  ;;  %v2839_v26 = vpack.c.bf16 %v2583_v25, %v2583_v25  ;;  %v1750_v27 = vpop.f32.mrf.mxu2  ;;  %v1910_v28 = vpop.f32.mrf.mxu3 }
 0x1de   :  { %3223 = vst.msk [vmem:[%s5879_s3 + $0x3a4] sm:$0xf] %vm2989_vm3, %v2966_v22  ;;  %v1751_v29 = vadd.f32 %v5119_v61, %v1750_v27  ;;  %v1911_v30 = vadd.f32 %v5119_v61, %v1910_v28  ;;  %v1432_v31 = vpop.f32.mrf.mxu0  ;;  %v1592_v32 = vpop.f32.mrf.mxu1 }
 0x1df   :  { %3032 = vst.msk [vmem:[%s5879_s3 + $0xa8] sm:$0xf] %vm2989_vm3, %v2775_v24  ;;  %v1433_v33 = vadd.f32 %v5119_v61, %v1432_v31  ;;  %v1593_v35 = vadd.f32 %v5119_v61, %v1592_v32  ;;  %v3961_v31 = vld [vmem:[%s5877_s0 + $0x1f8] sm:$0xff] }
 0x1e0   :  { %3096 = vst.msk [vmem:[%s5879_s3 + $0x1a8] sm:$0xf] %vm2989_vm3, %v2839_v26  ;;  %vm2135_vm4 = vcmp.gt.f32.partialorder %v1751_v29, 0.0  ;;  %v2391_v36 = vmul.f32 0.2, %v1751_v29  ;;  %vm2199_vm5 = vcmp.gt.f32.partialorder %v1911_v30, 0.0 }
 0x1e1   :  { %v2455_v37 = vmul.f32 0.2, %v1911_v30  ;;  %vm2008_vm6 = vcmp.gt.f32.partialorder %v1433_v33, 0.0  ;;  %v2264_v38 = vmul.f32 0.2, %v1433_v33  ;;  %vm2072_vm7 = vcmp.gt.f32.partialorder %v1593_v35, 0.0 }
 0x1e2   :  { %v2647_v39 = vsel %vm2135_vm4, %v1751_v29, %v2391_v36  ;;  %v2328_v40 = vmul.f32 0.2, %v1593_v35 }
 0x1e3   :  { %v2903_v41 = vpack.c.bf16 %v2647_v39, %v2647_v39  ;;  %v2711_v42 = vsel %vm2199_vm5, %v1911_v30, %v2455_v37  ;;  %v2520_v43 = vsel %vm2008_vm6, %v1433_v33, %v2264_v38  ;;  %v3929_v30 = vld [vmem:[%s5877_s0 + $0xf8] sm:$0xff] }
 0x1e4   :  { %v2967_v44 = vpack.c.bf16 %v2711_v42, %v2711_v42  ;;  %v2776_v45 = vpack.c.bf16 %v2520_v43, %v2520_v43  ;;  %v2584_v46 = vsel %vm2072_vm7, %v1593_v35, %v2328_v40  ;;  %v3993_v37 = vld [vmem:[%s5877_s0 + $0x2f8] sm:$0xff] }
 0x1e5   :  { %3160 = vst.msk [vmem:[%s5879_s3 + $0x2a8] sm:$0xf] %vm2989_vm3, %v2903_v41  ;;  %v2840_v47 = vpack.c.bf16 %v2584_v46, %v2584_v46  ;;  %v1752_v48 = vpop.f32.mrf.mxu2  ;;  %v1912_v49 = vpop.f32.mrf.mxu3  ;;  %v4025_v38 = vld [vmem:[%s5877_s0 + $0x3f8] sm:$0xff] }
 0x1e6   :  { %3224 = vst.msk [vmem:[%s5879_s3 + $0x3a8] sm:$0xf] %vm2989_vm3, %v2967_v44  ;;  %v1753_v52 = vadd.f32 %v5119_v61, %v1752_v48  ;;  %v1913_v23 = vadd.f32 %v5119_v61, %v1912_v49  ;;  %v1435_v53 = vpop.f32.mrf.mxu0  ;;  %v1595_v54 = vpop.f32.mrf.mxu1 }
 0x1e7   :  { %3033 = vst.msk [vmem:[%s5879_s3 + $0xac] sm:$0xf] %vm2989_vm3, %v2776_v45  ;;  %v1436_v57 = vadd.f32 %v5119_v61, %v1435_v53  ;;  %v1596_v58 = vadd.f32 %v5119_v61, %v1595_v54 }
 0x1e8   :  { %3097 = vst.msk [vmem:[%s5879_s3 + $0x1ac] sm:$0xf] %vm2989_vm3, %v2840_v47  ;;  %vm2136_vm8 = vcmp.gt.f32.partialorder %v1753_v52, 0.0  ;;  %v2392_v59 = vmul.f32 0.2, %v1753_v52  ;;  %vm2200_vm9 = vcmp.gt.f32.partialorder %v1913_v23, 0.0 }
 0x1e9   :  { %v2456_v60 = vmul.f32 0.2, %v1913_v23  ;;  %vm2009_vm10 = vcmp.gt.f32.partialorder %v1436_v57, 0.0  ;;  %v2265_v62 = vmul.f32 0.2, %v1436_v57  ;;  %vm2073_vm11 = vcmp.gt.f32.partialorder %v1596_v58, 0.0  ;;  %3800 = vmatmul.msk.bf16.gmra.mxu0 %vm931_vm0, %v3928_v50  ;;  %3832 = vmatmul.msk.bf16.gmra.mxu1 %vm931_vm0, %v3960_v51 }
 0x1ea   :  { %v2648_v63 = vsel %vm2136_vm8, %v1753_v52, %v2392_v59  ;;  %v2329_v0 = vmul.f32 0.2, %v1596_v58  ;;  %3864 = vmatmul.msk.bf16.gmra.mxu2 %vm931_vm0, %v3992_v55  ;;  %3896 = vmatmul.msk.bf16.gmra.mxu3 %vm931_vm0, %v4024_v56 }
 0x1eb   :  { %v2904_v1 = vpack.c.bf16 %v2648_v63, %v2648_v63  ;;  %v2712_v2 = vsel %vm2200_vm9, %v1913_v23, %v2456_v60  ;;  %v2521_v3 = vsel %vm2009_vm10, %v1436_v57, %v2265_v62 }
 0x1ec   :  { %v2968_v4 = vpack.c.bf16 %v2712_v2, %v2712_v2  ;;  %v2777_v5 = vpack.c.bf16 %v2521_v3, %v2521_v3  ;;  %v2585_v6 = vsel %vm2073_vm11, %v1596_v58, %v2329_v0 }
 0x1ed   :  { %3161 = vst.msk [vmem:[%s5879_s3 + $0x2ac] sm:$0xf] %vm2989_vm3, %v2904_v1  ;;  %v2841_v7 = vpack.c.bf16 %v2585_v6, %v2585_v6  ;;  %v1755_v8 = vpop.f32.mrf.mxu2  ;;  %v1915_v9 = vpop.f32.mrf.mxu3 }
 0x1ee   :  { %3225 = vst.msk [vmem:[%s5879_s3 + $0x3ac] sm:$0xf] %vm2989_vm3, %v2968_v4  ;;  %v1756_v10 = vadd.f32 %v5119_v61, %v1755_v8  ;;  %v1916_v11 = vadd.f32 %v5119_v61, %v1915_v9  ;;  %v1437_v12 = vpop.f32.mrf.mxu0  ;;  %v1597_v13 = vpop.f32.mrf.mxu1 }
 0x1ef   :  { %3034 = vst.msk [vmem:[%s5879_s3 + $0xb0] sm:$0xf] %vm2989_vm3, %v2777_v5  ;;  %v1438_v14 = vadd.f32 %v5119_v61, %v1437_v12  ;;  %v1598_v34 = vadd.f32 %v5119_v61, %v1597_v13 }
 0x1f0   :  { %3098 = vst.msk [vmem:[%s5879_s3 + $0x1b0] sm:$0xf] %vm2989_vm3, %v2841_v7  ;;  %vm2137_vm12 = vcmp.gt.f32.partialorder %v1756_v10, 0.0  ;;  %v2393_v15 = vmul.f32 0.2, %v1756_v10  ;;  %vm2201_vm13 = vcmp.gt.f32.partialorder %v1916_v11, 0.0 }
 0x1f1   :  { %v2457_v16 = vmul.f32 0.2, %v1916_v11  ;;  %vm2010_vm14 = vcmp.gt.f32.partialorder %v1438_v14, 0.0  ;;  %v2266_v17 = vmul.f32 0.2, %v1438_v14  ;;  %vm2074_vm15 = vcmp.gt.f32.partialorder %v1598_v34, 0.0 }
 0x1f2   :  { %v2649_v18 = vsel %vm2137_vm12, %v1756_v10, %v2393_v15  ;;  %v2330_v19 = vmul.f32 0.2, %v1598_v34 }
 0x1f3   :  { %v2905_v20 = vpack.c.bf16 %v2649_v18, %v2649_v18  ;;  %v2713_v21 = vsel %vm2201_vm13, %v1916_v11, %v2457_v16  ;;  %v2522_v22 = vsel %vm2010_vm14, %v1438_v14, %v2266_v17 }
 0x1f4   :  { %v2969_v24 = vpack.c.bf16 %v2713_v21, %v2713_v21  ;;  %v2778_v25 = vpack.c.bf16 %v2522_v22, %v2522_v22  ;;  %v2586_v26 = vsel %vm2074_vm15, %v1598_v34, %v2330_v19 }
 0x1f5   :  { %3162 = vst.msk [vmem:[%s5879_s3 + $0x2b0] sm:$0xf] %vm2989_vm3, %v2905_v20  ;;  %v2842_v27 = vpack.c.bf16 %v2586_v26, %v2586_v26  ;;  %v1757_v28 = vpop.f32.mrf.mxu2  ;;  %v1917_v29 = vpop.f32.mrf.mxu3 }
 0x1f6   :  { %3226 = vst.msk [vmem:[%s5879_s3 + $0x3b0] sm:$0xf] %vm2989_vm3, %v2969_v24  ;;  %v1758_v32 = vadd.f32 %v5119_v61, %v1757_v28  ;;  %v1918_v33 = vadd.f32 %v5119_v61, %v1917_v29  ;;  %v1440_v35 = vpop.f32.mrf.mxu0  ;;  %v1600_v36 = vpop.f32.mrf.mxu1 }
 0x1f7   :  { %3035 = vst.msk [vmem:[%s5879_s3 + $0xb4] sm:$0xf] %vm2989_vm3, %v2778_v25  ;;  %v1441_v39 = vadd.f32 %v5119_v61, %v1440_v35  ;;  %v1601_v40 = vadd.f32 %v5119_v61, %v1600_v36 }
 0x1f8   :  { %3099 = vst.msk [vmem:[%s5879_s3 + $0x1b4] sm:$0xf] %vm2989_vm3, %v2842_v27  ;;  %vm2138_vm1 = vcmp.gt.f32.partialorder %v1758_v32, 0.0  ;;  %v2394_v41 = vmul.f32 0.2, %v1758_v32  ;;  %vm2202_vm2 = vcmp.gt.f32.partialorder %v1918_v33, 0.0 }
 0x1f9   :  { %v2458_v42 = vmul.f32 0.2, %v1918_v33  ;;  %vm2011_vm4 = vcmp.gt.f32.partialorder %v1441_v39, 0.0  ;;  %v2267_v43 = vmul.f32 0.2, %v1441_v39  ;;  %vm2075_vm5 = vcmp.gt.f32.partialorder %v1601_v40, 0.0  ;;  %3801 = vmatmul.msk.bf16.gmra.mxu0 %vm931_vm0, %v3929_v30  ;;  %3833 = vmatmul.msk.bf16.gmra.mxu1 %vm931_vm0, %v3961_v31 }
 0x1fa   :  { %v2650_v44 = vsel %vm2138_vm1, %v1758_v32, %v2394_v41  ;;  %v2331_v45 = vmul.f32 0.2, %v1601_v40  ;;  %3865 = vmatmul.msk.bf16.gmra.mxu2 %vm931_vm0, %v3993_v37  ;;  %3897 = vmatmul.msk.bf16.gmra.mxu3 %vm931_vm0, %v4025_v38 }
 0x1fb   :  { %v2906_v46 = vpack.c.bf16 %v2650_v44, %v2650_v44  ;;  %v2714_v47 = vsel %vm2202_vm2, %v1918_v33, %v2458_v42  ;;  %v2523_v48 = vsel %vm2011_vm4, %v1441_v39, %v2267_v43 }
 0x1fc   :  { %v2970_v49 = vpack.c.bf16 %v2714_v47, %v2714_v47  ;;  %v2779_v50 = vpack.c.bf16 %v2523_v48, %v2523_v48  ;;  %v2587_v51 = vsel %vm2075_vm5, %v1601_v40, %v2331_v45 }
 0x1fd   :  { %3163 = vst.msk [vmem:[%s5879_s3 + $0x2b4] sm:$0xf] %vm2989_vm3, %v2906_v46  ;;  %v2843_v52 = vpack.c.bf16 %v2587_v51, %v2587_v51  ;;  %v1760_v23 = vpop.f32.mrf.mxu2  ;;  %v1920_v53 = vpop.f32.mrf.mxu3  ;;  %v5576_v51 = vld [vmem:[%s5878_s2] ss:$0 sm:$0xff] }
 0x1fe   :  { %3227 = vst.msk [vmem:[%s5879_s3 + $0x3b4] sm:$0xf] %vm2989_vm3, %v2970_v49  ;;  %v1761_v54 = vadd.f32 %v5119_v61, %v1760_v23  ;;  %v1921_v55 = vadd.f32 %v5119_v61, %v1920_v53  ;;  %v1442_v56 = vpop.f32.mrf.mxu0  ;;  %v1602_v57 = vpop.f32.mrf.mxu1 }
 0x1ff   :  { %3036 = vst.msk [vmem:[%s5879_s3 + $0xb8] sm:$0xf] %vm2989_vm3, %v2779_v50  ;;  %v1443_v58 = vadd.f32 %v5119_v61, %v1442_v56  ;;  %v1603_v59 = vadd.f32 %v5119_v61, %v1602_v57 }
 0x200   :  { %3100 = vst.msk [vmem:[%s5879_s3 + $0x1b8] sm:$0xf] %vm2989_vm3, %v2843_v52  ;;  %vm2139_vm0 = vcmp.gt.f32.partialorder %v1761_v54, 0.0  ;;  %v2395_v60 = vmul.f32 0.2, %v1761_v54  ;;  %vm2203_vm6 = vcmp.gt.f32.partialorder %v1921_v55, 0.0 }
 0x201   :  { %v2459_v62 = vmul.f32 0.2, %v1921_v55  ;;  %vm2012_vm7 = vcmp.gt.f32.partialorder %v1443_v58, 0.0  ;;  %v2268_v63 = vmul.f32 0.2, %v1443_v58  ;;  %vm2076_vm8 = vcmp.gt.f32.partialorder %v1603_v59, 0.0 }
 0x202   :  { %v2651_v0 = vsel %vm2139_vm0, %v1761_v54, %v2395_v60  ;;  %v2332_v1 = vmul.f32 0.2, %v1603_v59 }
 0x203   :  { %v2907_v2 = vpack.c.bf16 %v2651_v0, %v2651_v0  ;;  %v2715_v3 = vsel %vm2203_vm6, %v1921_v55, %v2459_v62  ;;  %v2524_v4 = vsel %vm2012_vm7, %v1443_v58, %v2268_v63 }
 0x204   :  { %v2971_v5 = vpack.c.bf16 %v2715_v3, %v2715_v3  ;;  %v2780_v6 = vpack.c.bf16 %v2524_v4, %v2524_v4  ;;  %v2588_v7 = vsel %vm2076_vm8, %v1603_v59, %v2332_v1 }
 0x205   :  { %3164 = vst.msk [vmem:[%s5879_s3 + $0x2b8] sm:$0xf] %vm2989_vm3, %v2907_v2  ;;  %v2844_v8 = vpack.c.bf16 %v2588_v7, %v2588_v7  ;;  %v1762_v9 = vpop.f32.mrf.mxu2  ;;  %v1922_v10 = vpop.f32.mrf.mxu3 }
 0x206   :  { %3228 = vst.msk [vmem:[%s5879_s3 + $0x3b8] sm:$0xf] %vm2989_vm3, %v2971_v5  ;;  %v1763_v11 = vadd.f32 %v5119_v61, %v1762_v9  ;;  %v1923_v12 = vadd.f32 %v5119_v61, %v1922_v10  ;;  %v1445_v13 = vpop.f32.mrf.mxu0  ;;  %v1605_v14 = vpop.f32.mrf.mxu1 }
 0x207   :  { %3037 = vst.msk [vmem:[%s5879_s3 + $0xbc] sm:$0xf] %vm2989_vm3, %v2780_v6  ;;  %v1446_v34 = vadd.f32 %v5119_v61, %v1445_v13  ;;  %v1606_v15 = vadd.f32 %v5119_v61, %v1605_v14 }
 0x208   :  { %3101 = vst.msk [vmem:[%s5879_s3 + $0x1bc] sm:$0xf] %vm2989_vm3, %v2844_v8  ;;  %vm2140_vm9 = vcmp.gt.f32.partialorder %v1763_v11, 0.0  ;;  %v2396_v16 = vmul.f32 0.2, %v1763_v11  ;;  %vm2204_vm10 = vcmp.gt.f32.partialorder %v1923_v12, 0.0 }
 0x209   :  { %v2460_v17 = vmul.f32 0.2, %v1923_v12  ;;  %vm2013_vm11 = vcmp.gt.f32.partialorder %v1446_v34, 0.0  ;;  %v2269_v18 = vmul.f32 0.2, %v1446_v34  ;;  %vm2077_vm12 = vcmp.gt.f32.partialorder %v1606_v15, 0.0 }
 0x20a   :  { %v2652_v19 = vsel %vm2140_vm9, %v1763_v11, %v2396_v16  ;;  %v2333_v20 = vmul.f32 0.2, %v1606_v15 }
 0x20b   :  { %v2908_v21 = vpack.c.bf16 %v2652_v19, %v2652_v19  ;;  %v2716_v22 = vsel %vm2204_vm10, %v1923_v12, %v2460_v17  ;;  %v2525_v24 = vsel %vm2013_vm11, %v1446_v34, %v2269_v18 }
 0x20c   :  { %v2972_v25 = vpack.c.bf16 %v2716_v22, %v2716_v22  ;;  %v2781_v26 = vpack.c.bf16 %v2525_v24, %v2525_v24  ;;  %v2589_v27 = vsel %vm2077_vm12, %v1606_v15, %v2333_v20 }
 0x20d   :  { %3165 = vst.msk [vmem:[%s5879_s3 + $0x2bc] sm:$0xf] %vm2989_vm3, %v2908_v21  ;;  %v2845_v28 = vpack.c.bf16 %v2589_v27, %v2589_v27  ;;  %v1765_v29 = vpop.f32.mrf.mxu2  ;;  %v1925_v30 = vpop.f32.mrf.mxu3 }
 0x20e   :  { %3229 = vst.msk [vmem:[%s5879_s3 + $0x3bc] sm:$0xf] %vm2989_vm3, %v2972_v25  ;;  %v1766_v31 = vadd.f32 %v5119_v61, %v1765_v29  ;;  %v1926_v32 = vadd.f32 %v5119_v61, %v1925_v30  ;;  %v1447_v33 = vpop.f32.mrf.mxu0  ;;  %v1607_v35 = vpop.f32.mrf.mxu1 }
 0x20f   :  { %3038 = vst.msk [vmem:[%s5879_s3 + $0xc0] sm:$0xf] %vm2989_vm3, %v2781_v26  ;;  %v1448_v36 = vadd.f32 %v5119_v61, %v1447_v33  ;;  %v1608_v37 = vadd.f32 %v5119_v61, %v1607_v35 }
 0x210   :  { %3102 = vst.msk [vmem:[%s5879_s3 + $0x1c0] sm:$0xf] %vm2989_vm3, %v2845_v28  ;;  %vm2141_vm13 = vcmp.gt.f32.partialorder %v1766_v31, 0.0  ;;  %v2397_v38 = vmul.f32 0.2, %v1766_v31  ;;  %vm2205_vm14 = vcmp.gt.f32.partialorder %v1926_v32, 0.0 }
 0x211   :  { %v2461_v39 = vmul.f32 0.2, %v1926_v32  ;;  %vm2014_vm15 = vcmp.gt.f32.partialorder %v1448_v36, 0.0  ;;  %v2270_v40 = vmul.f32 0.2, %v1448_v36  ;;  %vm2078_vm1 = vcmp.gt.f32.partialorder %v1608_v37, 0.0 }
 0x212   :  { %v2653_v41 = vsel %vm2141_vm13, %v1766_v31, %v2397_v38  ;;  %v2334_v42 = vmul.f32 0.2, %v1608_v37 }
 0x213   :  { %v2909_v43 = vpack.c.bf16 %v2653_v41, %v2653_v41  ;;  %v2717_v44 = vsel %vm2205_vm14, %v1926_v32, %v2461_v39  ;;  %v2526_v45 = vsel %vm2014_vm15, %v1448_v36, %v2270_v40 }
 0x214   :  { %v2973_v46 = vpack.c.bf16 %v2717_v44, %v2717_v44  ;;  %v2782_v47 = vpack.c.bf16 %v2526_v45, %v2526_v45  ;;  %v2590_v61 = vsel %vm2078_vm1, %v1608_v37, %v2334_v42 }
 0x215   :  { %3166 = vst.msk [vmem:[%s5879_s3 + $0x2c0] sm:$0xf] %vm2989_vm3, %v2909_v43  ;;  %v2846_v48 = vpack.c.bf16 %v2590_v61, %v2590_v61  ;;  %v1767_v49 = vpop.f32.mrf.mxu2  ;;  %v1927_v50 = vpop.f32.mrf.mxu3 }
 0x216   :  { %3230 = vst.msk [vmem:[%s5879_s3 + $0x3c0] sm:$0xf] %vm2989_vm3, %v2973_v46  ;;  %v1768_v52 = vadd.f32 %v5576_v51, %v1767_v49  ;;  %v1928_v23 = vadd.f32 %v5576_v51, %v1927_v50  ;;  %v1450_v53 = vpop.f32.mrf.mxu0  ;;  %v1610_v54 = vpop.f32.mrf.mxu1 }
 0x217   :  { %3039 = vst.msk [vmem:[%s5879_s3 + $0xc4] sm:$0xf] %vm2989_vm3, %v2782_v47  ;;  %v1451_v55 = vadd.f32 %v5576_v51, %v1450_v53  ;;  %v1611_v56 = vadd.f32 %v5576_v51, %v1610_v54 }
 0x218   :  { %3103 = vst.msk [vmem:[%s5879_s3 + $0x1c4] sm:$0xf] %vm2989_vm3, %v2846_v48  ;;  %vm2142_vm2 = vcmp.gt.f32.partialorder %v1768_v52, 0.0  ;;  %v2398_v57 = vmul.f32 0.2, %v1768_v52  ;;  %vm2206_vm4 = vcmp.gt.f32.partialorder %v1928_v23, 0.0 }
 0x219   :  { %v2462_v58 = vmul.f32 0.2, %v1928_v23  ;;  %vm2015_vm5 = vcmp.gt.f32.partialorder %v1451_v55, 0.0  ;;  %v2271_v59 = vmul.f32 0.2, %v1451_v55  ;;  %vm2079_vm0 = vcmp.gt.f32.partialorder %v1611_v56, 0.0 }
 0x21a   :  { %v2654_v60 = vsel %vm2142_vm2, %v1768_v52, %v2398_v57  ;;  %v2335_v62 = vmul.f32 0.2, %v1611_v56 }
 0x21b   :  { %v2910_v63 = vpack.c.bf16 %v2654_v60, %v2654_v60  ;;  %v2718_v0 = vsel %vm2206_vm4, %v1928_v23, %v2462_v58  ;;  %v2527_v1 = vsel %vm2015_vm5, %v1451_v55, %v2271_v59 }
 0x21c   :  { %v2974_v2 = vpack.c.bf16 %v2718_v0, %v2718_v0  ;;  %v2783_v3 = vpack.c.bf16 %v2527_v1, %v2527_v1  ;;  %v2591_v4 = vsel %vm2079_vm0, %v1611_v56, %v2335_v62 }
 0x21d   :  { %3167 = vst.msk [vmem:[%s5879_s3 + $0x2c4] sm:$0xf] %vm2989_vm3, %v2910_v63  ;;  %v2847_v5 = vpack.c.bf16 %v2591_v4, %v2591_v4  ;;  %v1770_v6 = vpop.f32.mrf.mxu2  ;;  %v1930_v7 = vpop.f32.mrf.mxu3 }
 0x21e   :  { %3231 = vst.msk [vmem:[%s5879_s3 + $0x3c4] sm:$0xf] %vm2989_vm3, %v2974_v2  ;;  %v1771_v8 = vadd.f32 %v5576_v51, %v1770_v6  ;;  %v1931_v9 = vadd.f32 %v5576_v51, %v1930_v7  ;;  %v1452_v10 = vpop.f32.mrf.mxu0  ;;  %v1612_v11 = vpop.f32.mrf.mxu1 }
 0x21f   :  { %3040 = vst.msk [vmem:[%s5879_s3 + $0xc8] sm:$0xf] %vm2989_vm3, %v2783_v3  ;;  %v1453_v12 = vadd.f32 %v5576_v51, %v1452_v10  ;;  %v1613_v13 = vadd.f32 %v5576_v51, %v1612_v11 }
 0x220   :  { %3104 = vst.msk [vmem:[%s5879_s3 + $0x1c8] sm:$0xf] %vm2989_vm3, %v2847_v5  ;;  %vm2143_vm6 = vcmp.gt.f32.partialorder %v1771_v8, 0.0  ;;  %v2399_v14 = vmul.f32 0.2, %v1771_v8  ;;  %vm2207_vm7 = vcmp.gt.f32.partialorder %v1931_v9, 0.0 }
 0x221   :  { %v2463_v34 = vmul.f32 0.2, %v1931_v9  ;;  %vm2016_vm8 = vcmp.gt.f32.partialorder %v1453_v12, 0.0  ;;  %v2272_v15 = vmul.f32 0.2, %v1453_v12  ;;  %vm2080_vm9 = vcmp.gt.f32.partialorder %v1613_v13, 0.0 }
 0x222   :  { %v2655_v16 = vsel %vm2143_vm6, %v1771_v8, %v2399_v14  ;;  %v2336_v17 = vmul.f32 0.2, %v1613_v13 }
 0x223   :  { %v2911_v18 = vpack.c.bf16 %v2655_v16, %v2655_v16  ;;  %v2719_v19 = vsel %vm2207_vm7, %v1931_v9, %v2463_v34  ;;  %v2528_v20 = vsel %vm2016_vm8, %v1453_v12, %v2272_v15 }
 0x224   :  { %v2975_v21 = vpack.c.bf16 %v2719_v19, %v2719_v19  ;;  %v2784_v22 = vpack.c.bf16 %v2528_v20, %v2528_v20  ;;  %v2592_v24 = vsel %vm2080_vm9, %v1613_v13, %v2336_v17 }
 0x225   :  { %3168 = vst.msk [vmem:[%s5879_s3 + $0x2c8] sm:$0xf] %vm2989_vm3, %v2911_v18  ;;  %v2848_v25 = vpack.c.bf16 %v2592_v24, %v2592_v24  ;;  %v1772_v26 = vpop.f32.mrf.mxu2  ;;  %v1932_v27 = vpop.f32.mrf.mxu3 }
 0x226   :  { %3232 = vst.msk [vmem:[%s5879_s3 + $0x3c8] sm:$0xf] %vm2989_vm3, %v2975_v21  ;;  %v1773_v28 = vadd.f32 %v5576_v51, %v1772_v26  ;;  %v1933_v29 = vadd.f32 %v5576_v51, %v1932_v27  ;;  %v1455_v30 = vpop.f32.mrf.mxu0  ;;  %v1615_v31 = vpop.f32.mrf.mxu1 }
 0x227   :  { %3041 = vst.msk [vmem:[%s5879_s3 + $0xcc] sm:$0xf] %vm2989_vm3, %v2784_v22  ;;  %v1456_v32 = vadd.f32 %v5576_v51, %v1455_v30  ;;  %v1616_v33 = vadd.f32 %v5576_v51, %v1615_v31 }
 0x228   :  { %3105 = vst.msk [vmem:[%s5879_s3 + $0x1cc] sm:$0xf] %vm2989_vm3, %v2848_v25  ;;  %vm2144_vm10 = vcmp.gt.f32.partialorder %v1773_v28, 0.0  ;;  %v2400_v35 = vmul.f32 0.2, %v1773_v28  ;;  %vm2208_vm11 = vcmp.gt.f32.partialorder %v1933_v29, 0.0 }
 0x229   :  { %v2464_v36 = vmul.f32 0.2, %v1933_v29  ;;  %vm2017_vm12 = vcmp.gt.f32.partialorder %v1456_v32, 0.0  ;;  %v2273_v37 = vmul.f32 0.2, %v1456_v32  ;;  %vm2081_vm13 = vcmp.gt.f32.partialorder %v1616_v33, 0.0 }
 0x22a   :  { %v2656_v38 = vsel %vm2144_vm10, %v1773_v28, %v2400_v35  ;;  %v2337_v39 = vmul.f32 0.2, %v1616_v33 }
 0x22b   :  { %v2912_v40 = vpack.c.bf16 %v2656_v38, %v2656_v38  ;;  %v2720_v41 = vsel %vm2208_vm11, %v1933_v29, %v2464_v36  ;;  %v2529_v42 = vsel %vm2017_vm12, %v1456_v32, %v2273_v37 }
 0x22c   :  { %v2976_v43 = vpack.c.bf16 %v2720_v41, %v2720_v41  ;;  %v2785_v44 = vpack.c.bf16 %v2529_v42, %v2529_v42  ;;  %v2593_v45 = vsel %vm2081_vm13, %v1616_v33, %v2337_v39 }
 0x22d   :  { %3169 = vst.msk [vmem:[%s5879_s3 + $0x2cc] sm:$0xf] %vm2989_vm3, %v2912_v40  ;;  %v2849_v46 = vpack.c.bf16 %v2593_v45, %v2593_v45  ;;  %v1775_v47 = vpop.f32.mrf.mxu2  ;;  %v1935_v61 = vpop.f32.mrf.mxu3 }
 0x22e   :  { %3233 = vst.msk [vmem:[%s5879_s3 + $0x3cc] sm:$0xf] %vm2989_vm3, %v2976_v43  ;;  %v1776_v48 = vadd.f32 %v5576_v51, %v1775_v47  ;;  %v1936_v49 = vadd.f32 %v5576_v51, %v1935_v61  ;;  %v1457_v50 = vpop.f32.mrf.mxu0  ;;  %v1617_v52 = vpop.f32.mrf.mxu1 }
 0x22f   :  { %3042 = vst.msk [vmem:[%s5879_s3 + $0xd0] sm:$0xf] %vm2989_vm3, %v2785_v44  ;;  %v1458_v23 = vadd.f32 %v5576_v51, %v1457_v50  ;;  %v1618_v53 = vadd.f32 %v5576_v51, %v1617_v52 }
 0x230   :  { %3106 = vst.msk [vmem:[%s5879_s3 + $0x1d0] sm:$0xf] %vm2989_vm3, %v2849_v46  ;;  %vm2145_vm14 = vcmp.gt.f32.partialorder %v1776_v48, 0.0  ;;  %v2401_v54 = vmul.f32 0.2, %v1776_v48  ;;  %vm2209_vm15 = vcmp.gt.f32.partialorder %v1936_v49, 0.0 }
 0x231   :  { %v2465_v55 = vmul.f32 0.2, %v1936_v49  ;;  %vm2018_vm1 = vcmp.gt.f32.partialorder %v1458_v23, 0.0  ;;  %v2274_v56 = vmul.f32 0.2, %v1458_v23  ;;  %vm2082_vm2 = vcmp.gt.f32.partialorder %v1618_v53, 0.0 }
 0x232   :  { %v2657_v57 = vsel %vm2145_vm14, %v1776_v48, %v2401_v54  ;;  %v2338_v58 = vmul.f32 0.2, %v1618_v53 }
 0x233   :  { %v2913_v59 = vpack.c.bf16 %v2657_v57, %v2657_v57  ;;  %v2721_v60 = vsel %vm2209_vm15, %v1936_v49, %v2465_v55  ;;  %v2530_v62 = vsel %vm2018_vm1, %v1458_v23, %v2274_v56 }
 0x234   :  { %v2977_v63 = vpack.c.bf16 %v2721_v60, %v2721_v60  ;;  %v2786_v0 = vpack.c.bf16 %v2530_v62, %v2530_v62  ;;  %v2594_v1 = vsel %vm2082_vm2, %v1618_v53, %v2338_v58 }
 0x235   :  { %3170 = vst.msk [vmem:[%s5879_s3 + $0x2d0] sm:$0xf] %vm2989_vm3, %v2913_v59  ;;  %v2850_v2 = vpack.c.bf16 %v2594_v1, %v2594_v1  ;;  %v1777_v3 = vpop.f32.mrf.mxu2  ;;  %v1937_v4 = vpop.f32.mrf.mxu3 }
 0x236   :  { %3234 = vst.msk [vmem:[%s5879_s3 + $0x3d0] sm:$0xf] %vm2989_vm3, %v2977_v63  ;;  %v1778_v5 = vadd.f32 %v5576_v51, %v1777_v3  ;;  %v1938_v6 = vadd.f32 %v5576_v51, %v1937_v4  ;;  %v1460_v7 = vpop.f32.mrf.mxu0  ;;  %v1620_v8 = vpop.f32.mrf.mxu1 }
 0x237   :  { %3043 = vst.msk [vmem:[%s5879_s3 + $0xd4] sm:$0xf] %vm2989_vm3, %v2786_v0  ;;  %v1461_v9 = vadd.f32 %v5576_v51, %v1460_v7  ;;  %v1621_v10 = vadd.f32 %v5576_v51, %v1620_v8 }
 0x238   :  { %3107 = vst.msk [vmem:[%s5879_s3 + $0x1d4] sm:$0xf] %vm2989_vm3, %v2850_v2  ;;  %vm2146_vm4 = vcmp.gt.f32.partialorder %v1778_v5, 0.0  ;;  %v2402_v11 = vmul.f32 0.2, %v1778_v5  ;;  %vm2210_vm5 = vcmp.gt.f32.partialorder %v1938_v6, 0.0 }
 0x239   :  { %v2466_v12 = vmul.f32 0.2, %v1938_v6  ;;  %vm2019_vm0 = vcmp.gt.f32.partialorder %v1461_v9, 0.0  ;;  %v2275_v13 = vmul.f32 0.2, %v1461_v9  ;;  %vm2083_vm6 = vcmp.gt.f32.partialorder %v1621_v10, 0.0 }
 0x23a   :  { %v2658_v14 = vsel %vm2146_vm4, %v1778_v5, %v2402_v11  ;;  %v2339_v34 = vmul.f32 0.2, %v1621_v10 }
 0x23b   :  { %v2914_v15 = vpack.c.bf16 %v2658_v14, %v2658_v14  ;;  %v2722_v16 = vsel %vm2210_vm5, %v1938_v6, %v2466_v12  ;;  %v2531_v17 = vsel %vm2019_vm0, %v1461_v9, %v2275_v13 }
 0x23c   :  { %v2978_v18 = vpack.c.bf16 %v2722_v16, %v2722_v16  ;;  %v2787_v19 = vpack.c.bf16 %v2531_v17, %v2531_v17  ;;  %v2595_v20 = vsel %vm2083_vm6, %v1621_v10, %v2339_v34 }
 0x23d   :  { %3171 = vst.msk [vmem:[%s5879_s3 + $0x2d4] sm:$0xf] %vm2989_vm3, %v2914_v15  ;;  %v2851_v21 = vpack.c.bf16 %v2595_v20, %v2595_v20  ;;  %v1780_v22 = vpop.f32.mrf.mxu2  ;;  %v1940_v24 = vpop.f32.mrf.mxu3 }
 0x23e   :  { %3235 = vst.msk [vmem:[%s5879_s3 + $0x3d4] sm:$0xf] %vm2989_vm3, %v2978_v18  ;;  %v1781_v25 = vadd.f32 %v5576_v51, %v1780_v22  ;;  %v1941_v26 = vadd.f32 %v5576_v51, %v1940_v24  ;;  %v1462_v27 = vpop.f32.mrf.mxu0  ;;  %v1622_v28 = vpop.f32.mrf.mxu1 }
 0x23f   :  { %3044 = vst.msk [vmem:[%s5879_s3 + $0xd8] sm:$0xf] %vm2989_vm3, %v2787_v19  ;;  %v1463_v29 = vadd.f32 %v5576_v51, %v1462_v27  ;;  %v1623_v30 = vadd.f32 %v5576_v51, %v1622_v28 }
 0x240   :  { %3108 = vst.msk [vmem:[%s5879_s3 + $0x1d8] sm:$0xf] %vm2989_vm3, %v2851_v21  ;;  %vm2147_vm7 = vcmp.gt.f32.partialorder %v1781_v25, 0.0  ;;  %v2403_v31 = vmul.f32 0.2, %v1781_v25  ;;  %vm2211_vm8 = vcmp.gt.f32.partialorder %v1941_v26, 0.0 }
 0x241   :  { %v2467_v32 = vmul.f32 0.2, %v1941_v26  ;;  %vm2020_vm9 = vcmp.gt.f32.partialorder %v1463_v29, 0.0  ;;  %v2276_v33 = vmul.f32 0.2, %v1463_v29  ;;  %vm2084_vm10 = vcmp.gt.f32.partialorder %v1623_v30, 0.0 }
 0x242   :  { %v2659_v35 = vsel %vm2147_vm7, %v1781_v25, %v2403_v31  ;;  %v2340_v36 = vmul.f32 0.2, %v1623_v30 }
 0x243   :  { %v2915_v37 = vpack.c.bf16 %v2659_v35, %v2659_v35  ;;  %v2723_v38 = vsel %vm2211_vm8, %v1941_v26, %v2467_v32  ;;  %v2532_v39 = vsel %vm2020_vm9, %v1463_v29, %v2276_v33 }
 0x244   :  { %v2979_v40 = vpack.c.bf16 %v2723_v38, %v2723_v38  ;;  %v2788_v41 = vpack.c.bf16 %v2532_v39, %v2532_v39  ;;  %v2596_v42 = vsel %vm2084_vm10, %v1623_v30, %v2340_v36 }
 0x245   :  { %3172 = vst.msk [vmem:[%s5879_s3 + $0x2d8] sm:$0xf] %vm2989_vm3, %v2915_v37  ;;  %v2852_v43 = vpack.c.bf16 %v2596_v42, %v2596_v42  ;;  %v1782_v44 = vpop.f32.mrf.mxu2  ;;  %v1942_v45 = vpop.f32.mrf.mxu3 }
 0x246   :  { %3236 = vst.msk [vmem:[%s5879_s3 + $0x3d8] sm:$0xf] %vm2989_vm3, %v2979_v40  ;;  %v1783_v46 = vadd.f32 %v5576_v51, %v1782_v44  ;;  %v1943_v47 = vadd.f32 %v5576_v51, %v1942_v45  ;;  %v1465_v61 = vpop.f32.mrf.mxu0  ;;  %v1625_v48 = vpop.f32.mrf.mxu1 }
 0x247   :  { %3045 = vst.msk [vmem:[%s5879_s3 + $0xdc] sm:$0xf] %vm2989_vm3, %v2788_v41  ;;  %v1466_v49 = vadd.f32 %v5576_v51, %v1465_v61  ;;  %v1626_v50 = vadd.f32 %v5576_v51, %v1625_v48 }
 0x248   :  { %3109 = vst.msk [vmem:[%s5879_s3 + $0x1dc] sm:$0xf] %vm2989_vm3, %v2852_v43  ;;  %vm2148_vm11 = vcmp.gt.f32.partialorder %v1783_v46, 0.0  ;;  %v2404_v52 = vmul.f32 0.2, %v1783_v46  ;;  %vm2212_vm12 = vcmp.gt.f32.partialorder %v1943_v47, 0.0 }
 0x249   :  { %v2468_v23 = vmul.f32 0.2, %v1943_v47  ;;  %vm2021_vm13 = vcmp.gt.f32.partialorder %v1466_v49, 0.0  ;;  %v2277_v53 = vmul.f32 0.2, %v1466_v49  ;;  %vm2085_vm14 = vcmp.gt.f32.partialorder %v1626_v50, 0.0 }
 0x24a   :  { %v2660_v54 = vsel %vm2148_vm11, %v1783_v46, %v2404_v52  ;;  %v2341_v55 = vmul.f32 0.2, %v1626_v50 }
 0x24b   :  { %v2916_v56 = vpack.c.bf16 %v2660_v54, %v2660_v54  ;;  %v2724_v57 = vsel %vm2212_vm12, %v1943_v47, %v2468_v23  ;;  %v2533_v58 = vsel %vm2021_vm13, %v1466_v49, %v2277_v53 }
 0x24c   :  { %v2980_v59 = vpack.c.bf16 %v2724_v57, %v2724_v57  ;;  %v2789_v60 = vpack.c.bf16 %v2533_v58, %v2533_v58  ;;  %v2597_v62 = vsel %vm2085_vm14, %v1626_v50, %v2341_v55 }
 0x24d   :  { %3173 = vst.msk [vmem:[%s5879_s3 + $0x2dc] sm:$0xf] %vm2989_vm3, %v2916_v56  ;;  %v2853_v63 = vpack.c.bf16 %v2597_v62, %v2597_v62  ;;  %v1785_v0 = vpop.f32.mrf.mxu2  ;;  %v1945_v1 = vpop.f32.mrf.mxu3 }
 0x24e   :  { %3237 = vst.msk [vmem:[%s5879_s3 + $0x3dc] sm:$0xf] %vm2989_vm3, %v2980_v59  ;;  %v1786_v2 = vadd.f32 %v5576_v51, %v1785_v0  ;;  %v1946_v3 = vadd.f32 %v5576_v51, %v1945_v1  ;;  %v1467_v4 = vpop.f32.mrf.mxu0  ;;  %v1627_v5 = vpop.f32.mrf.mxu1 }
 0x24f   :  { %3046 = vst.msk [vmem:[%s5879_s3 + $0xe0] sm:$0xf] %vm2989_vm3, %v2789_v60  ;;  %v1468_v6 = vadd.f32 %v5576_v51, %v1467_v4  ;;  %v1628_v7 = vadd.f32 %v5576_v51, %v1627_v5 }
 0x250   :  { %3110 = vst.msk [vmem:[%s5879_s3 + $0x1e0] sm:$0xf] %vm2989_vm3, %v2853_v63  ;;  %vm2149_vm15 = vcmp.gt.f32.partialorder %v1786_v2, 0.0  ;;  %v2405_v8 = vmul.f32 0.2, %v1786_v2  ;;  %vm2213_vm1 = vcmp.gt.f32.partialorder %v1946_v3, 0.0 }
 0x251   :  { %v2469_v9 = vmul.f32 0.2, %v1946_v3  ;;  %vm2022_vm2 = vcmp.gt.f32.partialorder %v1468_v6, 0.0  ;;  %v2278_v10 = vmul.f32 0.2, %v1468_v6  ;;  %vm2086_vm4 = vcmp.gt.f32.partialorder %v1628_v7, 0.0 }
 0x252   :  { %v2661_v11 = vsel %vm2149_vm15, %v1786_v2, %v2405_v8  ;;  %v2342_v12 = vmul.f32 0.2, %v1628_v7 }
 0x253   :  { %v2917_v13 = vpack.c.bf16 %v2661_v11, %v2661_v11  ;;  %v2725_v14 = vsel %vm2213_vm1, %v1946_v3, %v2469_v9  ;;  %v2534_v34 = vsel %vm2022_vm2, %v1468_v6, %v2278_v10 }
 0x254   :  { %v2981_v15 = vpack.c.bf16 %v2725_v14, %v2725_v14  ;;  %v2790_v16 = vpack.c.bf16 %v2534_v34, %v2534_v34  ;;  %v2598_v17 = vsel %vm2086_vm4, %v1628_v7, %v2342_v12 }
 0x255   :  { %3174 = vst.msk [vmem:[%s5879_s3 + $0x2e0] sm:$0xf] %vm2989_vm3, %v2917_v13  ;;  %v2854_v18 = vpack.c.bf16 %v2598_v17, %v2598_v17  ;;  %v1787_v19 = vpop.f32.mrf.mxu2  ;;  %v1947_v20 = vpop.f32.mrf.mxu3 }
 0x256   :  { %3238 = vst.msk [vmem:[%s5879_s3 + $0x3e0] sm:$0xf] %vm2989_vm3, %v2981_v15  ;;  %v1788_v21 = vadd.f32 %v5576_v51, %v1787_v19  ;;  %v1948_v22 = vadd.f32 %v5576_v51, %v1947_v20  ;;  %v1470_v24 = vpop.f32.mrf.mxu0  ;;  %v1630_v25 = vpop.f32.mrf.mxu1 }
 0x257   :  { %3047 = vst.msk [vmem:[%s5879_s3 + $0xe4] sm:$0xf] %vm2989_vm3, %v2790_v16  ;;  %v1471_v26 = vadd.f32 %v5576_v51, %v1470_v24  ;;  %v1631_v27 = vadd.f32 %v5576_v51, %v1630_v25 }
 0x258   :  { %3111 = vst.msk [vmem:[%s5879_s3 + $0x1e4] sm:$0xf] %vm2989_vm3, %v2854_v18  ;;  %vm2150_vm5 = vcmp.gt.f32.partialorder %v1788_v21, 0.0  ;;  %v2406_v28 = vmul.f32 0.2, %v1788_v21  ;;  %vm2214_vm0 = vcmp.gt.f32.partialorder %v1948_v22, 0.0 }
 0x259   :  { %v2470_v29 = vmul.f32 0.2, %v1948_v22  ;;  %vm2023_vm6 = vcmp.gt.f32.partialorder %v1471_v26, 0.0  ;;  %v2279_v30 = vmul.f32 0.2, %v1471_v26  ;;  %vm2087_vm7 = vcmp.gt.f32.partialorder %v1631_v27, 0.0 }
 0x25a   :  { %v2662_v31 = vsel %vm2150_vm5, %v1788_v21, %v2406_v28  ;;  %v2343_v32 = vmul.f32 0.2, %v1631_v27 }
 0x25b   :  { %v2918_v33 = vpack.c.bf16 %v2662_v31, %v2662_v31  ;;  %v2726_v35 = vsel %vm2214_vm0, %v1948_v22, %v2470_v29  ;;  %v2535_v36 = vsel %vm2023_vm6, %v1471_v26, %v2279_v30 }
 0x25c   :  { %v2982_v37 = vpack.c.bf16 %v2726_v35, %v2726_v35  ;;  %v2791_v38 = vpack.c.bf16 %v2535_v36, %v2535_v36  ;;  %v2599_v39 = vsel %vm2087_vm7, %v1631_v27, %v2343_v32 }
 0x25d   :  { %3175 = vst.msk [vmem:[%s5879_s3 + $0x2e4] sm:$0xf] %vm2989_vm3, %v2918_v33  ;;  %v2855_v40 = vpack.c.bf16 %v2599_v39, %v2599_v39  ;;  %v1790_v41 = vpop.f32.mrf.mxu2  ;;  %v1950_v42 = vpop.f32.mrf.mxu3 }
 0x25e   :  { %3239 = vst.msk [vmem:[%s5879_s3 + $0x3e4] sm:$0xf] %vm2989_vm3, %v2982_v37  ;;  %v1791_v43 = vadd.f32 %v5576_v51, %v1790_v41  ;;  %v1951_v44 = vadd.f32 %v5576_v51, %v1950_v42  ;;  %v1472_v45 = vpop.f32.mrf.mxu0  ;;  %v1632_v46 = vpop.f32.mrf.mxu1 }
 0x25f   :  { %3048 = vst.msk [vmem:[%s5879_s3 + $0xe8] sm:$0xf] %vm2989_vm3, %v2791_v38  ;;  %v1473_v47 = vadd.f32 %v5576_v51, %v1472_v45  ;;  %v1633_v61 = vadd.f32 %v5576_v51, %v1632_v46 }
 0x260   :  { %3112 = vst.msk [vmem:[%s5879_s3 + $0x1e8] sm:$0xf] %vm2989_vm3, %v2855_v40  ;;  %vm2151_vm8 = vcmp.gt.f32.partialorder %v1791_v43, 0.0  ;;  %v2407_v48 = vmul.f32 0.2, %v1791_v43  ;;  %vm2215_vm9 = vcmp.gt.f32.partialorder %v1951_v44, 0.0 }
 0x261   :  { %v2471_v49 = vmul.f32 0.2, %v1951_v44  ;;  %vm2024_vm10 = vcmp.gt.f32.partialorder %v1473_v47, 0.0  ;;  %v2280_v50 = vmul.f32 0.2, %v1473_v47  ;;  %vm2088_vm11 = vcmp.gt.f32.partialorder %v1633_v61, 0.0 }
 0x262   :  { %v2663_v52 = vsel %vm2151_vm8, %v1791_v43, %v2407_v48  ;;  %v2344_v23 = vmul.f32 0.2, %v1633_v61 }
 0x263   :  { %v2919_v53 = vpack.c.bf16 %v2663_v52, %v2663_v52  ;;  %v2727_v54 = vsel %vm2215_vm9, %v1951_v44, %v2471_v49  ;;  %v2536_v55 = vsel %vm2024_vm10, %v1473_v47, %v2280_v50 }
 0x264   :  { %v2983_v56 = vpack.c.bf16 %v2727_v54, %v2727_v54  ;;  %v2792_v57 = vpack.c.bf16 %v2536_v55, %v2536_v55  ;;  %v2600_v58 = vsel %vm2088_vm11, %v1633_v61, %v2344_v23 }
 0x265   :  { %3176 = vst.msk [vmem:[%s5879_s3 + $0x2e8] sm:$0xf] %vm2989_vm3, %v2919_v53  ;;  %v2856_v59 = vpack.c.bf16 %v2600_v58, %v2600_v58  ;;  %v1792_v60 = vpop.f32.mrf.mxu2  ;;  %v1952_v62 = vpop.f32.mrf.mxu3 }
 0x266   :  { %3240 = vst.msk [vmem:[%s5879_s3 + $0x3e8] sm:$0xf] %vm2989_vm3, %v2983_v56  ;;  %v1793_v63 = vadd.f32 %v5576_v51, %v1792_v60  ;;  %v1953_v0 = vadd.f32 %v5576_v51, %v1952_v62  ;;  %v1475_v1 = vpop.f32.mrf.mxu0  ;;  %v1635_v2 = vpop.f32.mrf.mxu1 }
 0x267   :  { %3049 = vst.msk [vmem:[%s5879_s3 + $0xec] sm:$0xf] %vm2989_vm3, %v2792_v57  ;;  %v1476_v3 = vadd.f32 %v5576_v51, %v1475_v1  ;;  %v1636_v4 = vadd.f32 %v5576_v51, %v1635_v2 }
 0x268   :  { %3113 = vst.msk [vmem:[%s5879_s3 + $0x1ec] sm:$0xf] %vm2989_vm3, %v2856_v59  ;;  %vm2152_vm12 = vcmp.gt.f32.partialorder %v1793_v63, 0.0  ;;  %v2408_v5 = vmul.f32 0.2, %v1793_v63  ;;  %vm2216_vm13 = vcmp.gt.f32.partialorder %v1953_v0, 0.0 }
 0x269   :  { %v2472_v6 = vmul.f32 0.2, %v1953_v0  ;;  %vm2025_vm14 = vcmp.gt.f32.partialorder %v1476_v3, 0.0  ;;  %v2281_v7 = vmul.f32 0.2, %v1476_v3  ;;  %vm2089_vm15 = vcmp.gt.f32.partialorder %v1636_v4, 0.0 }
 0x26a   :  { %v2664_v8 = vsel %vm2152_vm12, %v1793_v63, %v2408_v5  ;;  %v2345_v9 = vmul.f32 0.2, %v1636_v4 }
 0x26b   :  { %v2920_v10 = vpack.c.bf16 %v2664_v8, %v2664_v8  ;;  %v2728_v11 = vsel %vm2216_vm13, %v1953_v0, %v2472_v6  ;;  %v2537_v12 = vsel %vm2025_vm14, %v1476_v3, %v2281_v7 }
 0x26c   :  { %v2984_v13 = vpack.c.bf16 %v2728_v11, %v2728_v11  ;;  %v2793_v14 = vpack.c.bf16 %v2537_v12, %v2537_v12  ;;  %v2601_v34 = vsel %vm2089_vm15, %v1636_v4, %v2345_v9 }
 0x26d   :  { %3177 = vst.msk [vmem:[%s5879_s3 + $0x2ec] sm:$0xf] %vm2989_vm3, %v2920_v10  ;;  %v2857_v15 = vpack.c.bf16 %v2601_v34, %v2601_v34  ;;  %v1795_v16 = vpop.f32.mrf.mxu2  ;;  %v1955_v17 = vpop.f32.mrf.mxu3 }
 0x26e   :  { %3241 = vst.msk [vmem:[%s5879_s3 + $0x3ec] sm:$0xf] %vm2989_vm3, %v2984_v13  ;;  %v1796_v18 = vadd.f32 %v5576_v51, %v1795_v16  ;;  %v1956_v19 = vadd.f32 %v5576_v51, %v1955_v17  ;;  %v1477_v20 = vpop.f32.mrf.mxu0  ;;  %v1637_v21 = vpop.f32.mrf.mxu1 }
 0x26f   :  { %3050 = vst.msk [vmem:[%s5879_s3 + $0xf0] sm:$0xf] %vm2989_vm3, %v2793_v14  ;;  %v1478_v22 = vadd.f32 %v5576_v51, %v1477_v20  ;;  %v1638_v24 = vadd.f32 %v5576_v51, %v1637_v21 }
 0x270   :  { %3114 = vst.msk [vmem:[%s5879_s3 + $0x1f0] sm:$0xf] %vm2989_vm3, %v2857_v15  ;;  %vm2153_vm1 = vcmp.gt.f32.partialorder %v1796_v18, 0.0  ;;  %v2409_v25 = vmul.f32 0.2, %v1796_v18  ;;  %vm2217_vm2 = vcmp.gt.f32.partialorder %v1956_v19, 0.0 }
 0x271   :  { %v2473_v26 = vmul.f32 0.2, %v1956_v19  ;;  %vm2026_vm4 = vcmp.gt.f32.partialorder %v1478_v22, 0.0  ;;  %v2282_v27 = vmul.f32 0.2, %v1478_v22  ;;  %vm2090_vm5 = vcmp.gt.f32.partialorder %v1638_v24, 0.0 }
 0x272   :  { %v2665_v28 = vsel %vm2153_vm1, %v1796_v18, %v2409_v25  ;;  %v2346_v29 = vmul.f32 0.2, %v1638_v24 }
 0x273   :  { %v2921_v30 = vpack.c.bf16 %v2665_v28, %v2665_v28  ;;  %v2729_v31 = vsel %vm2217_vm2, %v1956_v19, %v2473_v26  ;;  %v2538_v32 = vsel %vm2026_vm4, %v1478_v22, %v2282_v27 }
 0x274   :  { %v2985_v33 = vpack.c.bf16 %v2729_v31, %v2729_v31  ;;  %v2794_v35 = vpack.c.bf16 %v2538_v32, %v2538_v32  ;;  %v2602_v36 = vsel %vm2090_vm5, %v1638_v24, %v2346_v29 }
 0x275   :  { %3178 = vst.msk [vmem:[%s5879_s3 + $0x2f0] sm:$0xf] %vm2989_vm3, %v2921_v30  ;;  %v2858_v37 = vpack.c.bf16 %v2602_v36, %v2602_v36  ;;  %v1797_v38 = vpop.f32.mrf.mxu2  ;;  %v1957_v39 = vpop.f32.mrf.mxu3 }
 0x276   :  { %3242 = vst.msk [vmem:[%s5879_s3 + $0x3f0] sm:$0xf] %vm2989_vm3, %v2985_v33  ;;  %v1798_v40 = vadd.f32 %v5576_v51, %v1797_v38  ;;  %v1958_v41 = vadd.f32 %v5576_v51, %v1957_v39  ;;  %v1480_v42 = vpop.f32.mrf.mxu0  ;;  %v1640_v43 = vpop.f32.mrf.mxu1 }
 0x277   :  { %3051 = vst.msk [vmem:[%s5879_s3 + $0xf4] sm:$0xf] %vm2989_vm3, %v2794_v35  ;;  %v1481_v44 = vadd.f32 %v5576_v51, %v1480_v42  ;;  %v1641_v45 = vadd.f32 %v5576_v51, %v1640_v43 }
 0x278   :  { %3115 = vst.msk [vmem:[%s5879_s3 + $0x1f4] sm:$0xf] %vm2989_vm3, %v2858_v37  ;;  %vm2154_vm0 = vcmp.gt.f32.partialorder %v1798_v40, 0.0  ;;  %v2410_v46 = vmul.f32 0.2, %v1798_v40  ;;  %vm2218_vm6 = vcmp.gt.f32.partialorder %v1958_v41, 0.0 }
 0x279   :  { %v2474_v47 = vmul.f32 0.2, %v1958_v41  ;;  %vm2027_vm7 = vcmp.gt.f32.partialorder %v1481_v44, 0.0  ;;  %v2283_v61 = vmul.f32 0.2, %v1481_v44  ;;  %vm2091_vm8 = vcmp.gt.f32.partialorder %v1641_v45, 0.0 }
 0x27a   :  { %v2666_v48 = vsel %vm2154_vm0, %v1798_v40, %v2410_v46  ;;  %v2347_v49 = vmul.f32 0.2, %v1641_v45 }
 0x27b   :  { %v2922_v50 = vpack.c.bf16 %v2666_v48, %v2666_v48  ;;  %v2730_v52 = vsel %vm2218_vm6, %v1958_v41, %v2474_v47  ;;  %v2539_v23 = vsel %vm2027_vm7, %v1481_v44, %v2283_v61 }
 0x27c   :  { %v2986_v53 = vpack.c.bf16 %v2730_v52, %v2730_v52  ;;  %v2795_v54 = vpack.c.bf16 %v2539_v23, %v2539_v23  ;;  %v2603_v55 = vsel %vm2091_vm8, %v1641_v45, %v2347_v49 }
 0x27d   :  { %3179 = vst.msk [vmem:[%s5879_s3 + $0x2f4] sm:$0xf] %vm2989_vm3, %v2922_v50  ;;  %v2859_v56 = vpack.c.bf16 %v2603_v55, %v2603_v55  ;;  %v1800_v57 = vpop.f32.mrf.mxu2  ;;  %v1960_v58 = vpop.f32.mrf.mxu3 }
 0x27e   :  { %3243 = vst.msk [vmem:[%s5879_s3 + $0x3f4] sm:$0xf] %vm2989_vm3, %v2986_v53  ;;  %v1801_v59 = vadd.f32 %v5576_v51, %v1800_v57  ;;  %v1961_v60 = vadd.f32 %v5576_v51, %v1960_v58  ;;  %v1482_v62 = vpop.f32.mrf.mxu0  ;;  %v1642_v63 = vpop.f32.mrf.mxu1 }
 0x27f   :  { %3052 = vst.msk [vmem:[%s5879_s3 + $0xf8] sm:$0xf] %vm2989_vm3, %v2795_v54  ;;  %v1483_v0 = vadd.f32 %v5576_v51, %v1482_v62  ;;  %v1643_v1 = vadd.f32 %v5576_v51, %v1642_v63 }
 0x280   :  { %3116 = vst.msk [vmem:[%s5879_s3 + $0x1f8] sm:$0xf] %vm2989_vm3, %v2859_v56  ;;  %vm2155_vm9 = vcmp.gt.f32.partialorder %v1801_v59, 0.0  ;;  %v2411_v2 = vmul.f32 0.2, %v1801_v59  ;;  %vm2219_vm10 = vcmp.gt.f32.partialorder %v1961_v60, 0.0 }
 0x281   :  { %v2475_v3 = vmul.f32 0.2, %v1961_v60  ;;  %vm2028_vm11 = vcmp.gt.f32.partialorder %v1483_v0, 0.0  ;;  %v2284_v4 = vmul.f32 0.2, %v1483_v0  ;;  %vm2092_vm12 = vcmp.gt.f32.partialorder %v1643_v1, 0.0 }
 0x282   :  { %v2667_v5 = vsel %vm2155_vm9, %v1801_v59, %v2411_v2  ;;  %v2348_v6 = vmul.f32 0.2, %v1643_v1 }
 0x283   :  { %v2923_v7 = vpack.c.bf16 %v2667_v5, %v2667_v5  ;;  %v2731_v8 = vsel %vm2219_vm10, %v1961_v60, %v2475_v3  ;;  %v2540_v9 = vsel %vm2028_vm11, %v1483_v0, %v2284_v4 }
 0x284   :  { %v2987_v10 = vpack.c.bf16 %v2731_v8, %v2731_v8  ;;  %v2796_v11 = vpack.c.bf16 %v2540_v9, %v2540_v9  ;;  %v2604_v12 = vsel %vm2092_vm12, %v1643_v1, %v2348_v6 }
 0x285   :  { %3180 = vst.msk [vmem:[%s5879_s3 + $0x2f8] sm:$0xf] %vm2989_vm3, %v2923_v7  ;;  %v2860_v13 = vpack.c.bf16 %v2604_v12, %v2604_v12  ;;  %v1802_v14 = vpop.f32.mrf.mxu2  ;;  %v1962_v34 = vpop.f32.mrf.mxu3 }
 0x286   :  { %3244 = vst.msk [vmem:[%s5879_s3 + $0x3f8] sm:$0xf] %vm2989_vm3, %v2987_v10  ;;  %v1803_v15 = vadd.f32 %v5576_v51, %v1802_v14  ;;  %v1963_v16 = vadd.f32 %v5576_v51, %v1962_v34 }
 0x287   :  { %3053 = vst.msk [vmem:[%s5879_s3 + $0xfc] sm:$0xf] %vm2989_vm3, %v2796_v11 }
 0x288   :  { %3117 = vst.msk [vmem:[%s5879_s3 + $0x1fc] sm:$0xf] %vm2989_vm3, %v2860_v13  ;;  %vm2156_vm13 = vcmp.gt.f32.partialorder %v1803_v15, 0.0  ;;  %v2412_v17 = vmul.f32 0.2, %v1803_v15  ;;  %vm2220_vm14 = vcmp.gt.f32.partialorder %v1963_v16, 0.0 }
 0x289   :  { %v2476_v18 = vmul.f32 0.2, %v1963_v16 }
 0x28a   :  { %v2668_v19 = vsel %vm2156_vm13, %v1803_v15, %v2412_v17 }
 0x28b   :  { %v2924_v20 = vpack.c.bf16 %v2668_v19, %v2668_v19  ;;  %v2732_v21 = vsel %vm2220_vm14, %v1963_v16, %v2476_v18 }
 0x28c   :  { %v2988_v22 = vpack.c.bf16 %v2732_v21, %v2732_v21 }
 0x28d   :  { %3181 = vst.msk [vmem:[%s5879_s3 + $0x2fc] sm:$0xf] %vm2989_vm3, %v2924_v20 }
 0x28e   :  { %3245 = vst.msk [vmem:[%s5879_s3 + $0x3fc] sm:$0xf] %vm2989_vm3, %v2988_v22 }

// kernel: discriminator_forward.6
= control target key start
LH: loop header
LB: loop body
LE: loop exit
PB: predicated region body
PF: predicated region fallthrough
CT: control target
= control target key end

     0   :  { %s1449_s18 = smov 0   ;;  %s1451_s19 = smov 0   ;;  %s1996_s0 = inlined_call_operand.vmem [shape: bf16[512,64], index: 0, kind: input, shape index: {}]   ;;  %s1997_s1 = inlined_call_operand.vmem [shape: bf16[64,8], index: 1, kind: input, shape index: {}]   ;;  %s1998_s2 = inlined_call_operand.vmem [shape: f32[1,8], index: 2, kind: input, shape index: {}]   ;;  %s1999_s3 = inlined_call_operand.vmem [shape: f32[1,8], index: 3, kind: input, shape index: {}]   ;;  %s2000_s4 = inlined_call_operand.vmem [shape: f32[1,8], index: 4, kind: input, shape index: {}]   ;;  %s2001_s5 = inlined_call_operand.vmem [shape: bf16[512,8], index: 5, kind: output, shape index: {}]  }
   0x1   :  { %s1453_s20 = smov 0   ;;  %s1455_s21 = smov 0  }
   0x2   :  { %s1457_s22 = smov 0  }
   0x3 LB: > { %s27_s23 = sadd.s32 1, %s1408_s20  ;;  %s30_s24 = sadd.s32 1, %s1412_s21  ;;  %s1416_s22 = sphi %s1457_s22, %s15_s22   ;;  %s1412_s21 = sphi %s1455_s21, %s2006_s21   ;;  %s1408_s20 = sphi %s1453_s20, %s2005_s20   ;;  %s1404_s19 = sphi %s1451_s19, %s2004_s19   ;;  %s1400_s18 = sphi %s1449_s18, %s2003_s18  }
   0x4   : > { %p28_p0 = scmp.ge.s32.totalorder %s27_s23, 2  ;;  %p1197_p1 = scmp.ge.s32.totalorder %s1416_s22, 1 }
   0x5   : > { %p244_p2 = scmp.lt.s32.totalorder %s1416_s22, 5 }
   0x6   : > { %s2008_s23 = smov (%p28_p0, %s27_s23), 0  ;;  %s2010_s24 = smov (!%p28_p0, %s30_s24), %s1412_s21 }
   0x7   : > { %p245_p3 = pnand %p1197_p1, %p244_p2  ;;  %p32_p4 = scmp.ge.s32.totalorder %s2010_s24, 2 }
   0x8   : > { %s308_s25 = smul.u32 (!%p245_p3), %s1400_s18, %s1404_s19  ;;  %s1198_s28 = sshll.u32 (!%p245_p3), %s1400_s18, 5 }
   0x9   : > { %s2012_s24 = smov (%p32_p4, %s2010_s24), 0  ;;  %248 = sbr.rel (%p245_p3) target bundleno = 406 (0x196), region = 40 }
   0xa   : > { %p290_p5 = scmp.lt.s32.totalorder (!%p245_p3), %s1198_s28, 63  ;;  %s1200_s29 = sshll.u32 (!%p245_p3), %s308_s25, 5 }
   0xb   : > { %p310_p6 = scmp.lt.s32.totalorder (!%p245_p3), %s1200_s29, 63  ;;  %p606_p7 = scmp.eq.s32.totalorder (!%p245_p3), %s1404_s19, 0 }
   0xc   : > { %p607_p8 = scmp.eq.s32.totalorder (!%p245_p3), %s1400_s18, 0 }
   0xe   : > { %v1321_v0 = vld [vmem:[%s1997_s1 + $0x18] sm:$0xff]  ;;  %v1320_v1 = vld [vmem:[%s1997_s1 + $0x10] sm:$0xff]  ;;  %s2014_s28 = smov (!%p290_p5, %s1198_s28), 63  ;;  %s2016_s29 = smov (!%p310_p6, %s1200_s29), 63  ;;  %v1319_v2 = vld [vmem:[%s1997_s1 + $0x8] sm:$0xff]  ;;  %vm468_vm0 = vcmask 523264  }
   0xf   : > { %521 = vmatpush.bf16.msra.mxu0 %v1321_v0  ;;  %1322 = vmatpush.bf16.msra.mxu1 %v1321_v0  ;;  %s1201_s9 = sshll.u32 %s2016_s29, 2  ;;  %s1199_s10 = sshll.u32 %s2014_s28, 2  ;;  %v1318_v3 = vld [vmem:[%s1997_s1] sm:$0xff] }
  0x10   : > { %1323 = vmatpush.bf16.msra.mxu2 %v1321_v0  ;;  %1324 = vmatpush.bf16.msra.mxu3 %v1321_v0  ;;  %s1498_s13 = scalar_lea.vmem %s2001_s5, %s1201_s9  ;;  %s1506_s25 = scalar_lea.vmem %s1996_s0, %s1199_s10  ;;  %v1549_v20 = vld [vmem:[%s1998_s2] ss:$0 sm:$0xff] }
  0x11   : > { %v1302_v4 = vld [vmem:[%s1506_s25] sm:$0xff]  ;;  %v1303_v8 = vld [vmem:[%s1506_s25 + $0x8] sm:$0xff]  ;;  %v1304_v12 = vld [vmem:[%s1506_s25 + $0x10] sm:$0xff]  ;;  %p1542_p9 = pnand %p607_p8, %p606_p7 }
  0x12   : > { %v1306_v5 = vld [vmem:[%s1506_s25 + $0x20] sm:$0xff]  ;;  %v1307_v9 = vld [vmem:[%s1506_s25 + $0x28] sm:$0xff]  ;;  %v1308_v13 = vld [vmem:[%s1506_s25 + $0x30] sm:$0xff] }
  0x13   : > { %522 = vmatpush.bf16.msra.mxu0 %v1320_v1  ;;  %1325 = vmatpush.bf16.msra.mxu1 %v1320_v1  ;;  %v1310_v6 = vld [vmem:[%s1506_s25 + $0x40] sm:$0xff]  ;;  %v1311_v10 = vld [vmem:[%s1506_s25 + $0x48] sm:$0xff]  ;;  %v1312_v14 = vld [vmem:[%s1506_s25 + $0x50] sm:$0xff] }
  0x14   : > { %1326 = vmatpush.bf16.msra.mxu2 %v1320_v1  ;;  %1327 = vmatpush.bf16.msra.mxu3 %v1320_v1  ;;  %v1314_v7 = vld [vmem:[%s1506_s25 + $0x60] sm:$0xff]  ;;  %v1315_v11 = vld [vmem:[%s1506_s25 + $0x68] sm:$0xff]  ;;  %v1316_v15 = vld [vmem:[%s1506_s25 + $0x70] sm:$0xff] }
  0x15   : > { %v1305_v16 = vld [vmem:[%s1506_s25 + $0x18] sm:$0xff] }
  0x16   : > { %v1309_v17 = vld [vmem:[%s1506_s25 + $0x38] sm:$0xff] }
  0x17   : > { %523 = vmatpush.bf16.msra.mxu0 %v1319_v2  ;;  %1328 = vmatpush.bf16.msra.mxu1 %v1319_v2  ;;  %v1313_v18 = vld [vmem:[%s1506_s25 + $0x58] sm:$0xff] }
  0x18   : > { %1329 = vmatpush.bf16.msra.mxu2 %v1319_v2  ;;  %1330 = vmatpush.bf16.msra.mxu3 %v1319_v2  ;;  %v1317_v19 = vld [vmem:[%s1506_s25 + $0x78] sm:$0xff] }
  0x1b   : > { %524 = vmatpush.bf16.msra.mxu0 %v1318_v3  ;;  %1331 = vmatpush.bf16.msra.mxu1 %v1318_v3 }
  0x1c   : > { %1332 = vmatpush.bf16.msra.mxu2 %v1318_v3  ;;  %1333 = vmatpush.bf16.msra.mxu3 %v1318_v3 }
  0x1e   : > { %1282 = vmatmul.msk.bf16.vlgmr.msra.gmra.mxu0 %vm468_vm0, %v1302_v4  ;;  %1286 = vmatmul.msk.bf16.vlgmr.msra.gmra.mxu1 %vm468_vm0, %v1306_v5 }
  0x1f   : > { %1290 = vmatmul.msk.bf16.vlgmr.msra.gmra.mxu2 %vm468_vm0, %v1310_v6  ;;  %1294 = vmatmul.msk.bf16.vlgmr.msra.gmra.mxu3 %vm468_vm0, %v1314_v7 }
  0x2e   : > { %1283 = vmatmul.msk.bf16.gmra.mxu0 %vm468_vm0, %v1303_v8  ;;  %1287 = vmatmul.msk.bf16.gmra.mxu1 %vm468_vm0, %v1307_v9 }
  0x2f   : > { %1291 = vmatmul.msk.bf16.gmra.mxu2 %vm468_vm0, %v1311_v10  ;;  %1295 = vmatmul.msk.bf16.gmra.mxu3 %vm468_vm0, %v1315_v11 }
  0x3e   : > { %1284 = vmatmul.msk.bf16.gmra.mxu0 %vm468_vm0, %v1304_v12  ;;  %1288 = vmatmul.msk.bf16.gmra.mxu1 %vm468_vm0, %v1308_v13 }
  0x3f   : > { %1292 = vmatmul.msk.bf16.gmra.mxu2 %vm468_vm0, %v1312_v14  ;;  %1296 = vmatmul.msk.bf16.gmra.mxu3 %vm468_vm0, %v1316_v15 }
  0x4e   : > { %1285 = vmatmul.msk.bf16.gmra.mxu0 %vm468_vm0, %v1305_v16  ;;  %1289 = vmatmul.msk.bf16.gmra.mxu1 %vm468_vm0, %v1309_v17 }
  0x4f   : > { %1293 = vmatmul.msk.bf16.gmra.mxu2 %vm468_vm0, %v1313_v18  ;;  %1297 = vmatmul.msk.bf16.gmra.mxu3 %vm468_vm0, %v1317_v19 }
  0x9b   : > { %v526_v21 = vpop.f32.mrf.mxu0  ;;  %v546_v22 = vpop.f32.mrf.mxu1 }
  0x9c   : > { %v1552_v23 = vadd.f32 %v1549_v20, %v526_v21  ;;  %v1555_v24 = vadd.f32 %v1549_v20, %v546_v22 }
  0xa2   : > { %v566_v25 = vpop.f32.mrf.mxu2  ;;  %v586_v26 = vpop.f32.mrf.mxu3 }
  0xa3   : > { %v1558_v27 = vadd.f32 %v1549_v20, %v566_v25  ;;  %v1561_v28 = vadd.f32 %v1549_v20, %v586_v26  ;;  %v528_v29 = vpop.f32.mrf.mxu0  ;;  %v548_v30 = vpop.f32.mrf.mxu1 }
  0xa4   : > { %v1564_v31 = vadd.f32 %v1549_v20, %v528_v29  ;;  %v1567_v32 = vadd.f32 %v1549_v20, %v548_v30 }
  0xaa   : > { %v568_v33 = vpop.f32.mrf.mxu2  ;;  %v588_v34 = vpop.f32.mrf.mxu3 }
  0xab   : > { %v1570_v35 = vadd.f32 %v1549_v20, %v568_v33  ;;  %v1573_v36 = vadd.f32 %v1549_v20, %v588_v34  ;;  %v531_v37 = vpop.f32.mrf.mxu0  ;;  %v551_v38 = vpop.f32.mrf.mxu1 }
  0xac   : > { %v1576_v39 = vadd.f32 %v1549_v20, %v531_v37  ;;  %v1579_v40 = vadd.f32 %v1549_v20, %v551_v38 }
  0xb2   : > { %v571_v41 = vpop.f32.mrf.mxu2  ;;  %v591_v42 = vpop.f32.mrf.mxu3 }
  0xb3   : > { %v1582_v43 = vadd.f32 %v1549_v20, %v571_v41  ;;  %v1585_v44 = vadd.f32 %v1549_v20, %v591_v42  ;;  %v533_v45 = vpop.f32.mrf.mxu0  ;;  %v553_v46 = vpop.f32.mrf.mxu1 }
  0xb4   : > { %v1588_v47 = vadd.f32 %v1549_v20, %v533_v45  ;;  %v1591_v48 = vadd.f32 %v1549_v20, %v553_v46 }
  0xba   : > { %v573_v49 = vpop.f32.mrf.mxu2  ;;  %v593_v50 = vpop.f32.mrf.mxu3 }
  0xbb   : > { %v1594_v51 = vadd.f32 %v1549_v20, %v573_v49  ;;  %v1597_v52 = vadd.f32 %v1549_v20, %v593_v50  ;;  %v536_v53 = vpop.f32.mrf.mxu0  ;;  %v556_v54 = vpop.f32.mrf.mxu1 }
  0xbc   : > { %v1600_v55 = vadd.f32 %v1549_v20, %v536_v53  ;;  %v1603_v56 = vadd.f32 %v1549_v20, %v556_v54 }
  0xc2   : > { %v576_v57 = vpop.f32.mrf.mxu2  ;;  %v596_v58 = vpop.f32.mrf.mxu3 }
  0xc3   : > { %v1606_v59 = vadd.f32 %v1549_v20, %v576_v57  ;;  %v1609_v60 = vadd.f32 %v1549_v20, %v596_v58  ;;  %v538_v61 = vpop.f32.mrf.mxu0  ;;  %v558_v62 = vpop.f32.mrf.mxu1 }
  0xc4   : > { %v1612_v63 = vadd.f32 %v1549_v20, %v538_v61  ;;  %v1615_v0 = vadd.f32 %v1549_v20, %v558_v62 }
  0xca   : > { %v578_v1 = vpop.f32.mrf.mxu2  ;;  %v598_v2 = vpop.f32.mrf.mxu3 }
  0xcb   : > { %v1618_v3 = vadd.f32 %v1549_v20, %v578_v1  ;;  %v1621_v4 = vadd.f32 %v1549_v20, %v598_v2  ;;  %v541_v5 = vpop.f32.mrf.mxu0  ;;  %v561_v6 = vpop.f32.mrf.mxu1 }
  0xcc   : > { %v1624_v7 = vadd.f32 %v1549_v20, %v541_v5  ;;  %v1627_v8 = vadd.f32 %v1549_v20, %v561_v6 }
  0xd2   : > { %v581_v9 = vpop.f32.mrf.mxu2  ;;  %v601_v10 = vpop.f32.mrf.mxu3 }
  0xd3   : > { %v1630_v11 = vadd.f32 %v1549_v20, %v581_v9  ;;  %v1633_v12 = vadd.f32 %v1549_v20, %v601_v10  ;;  %v543_v13 = vpop.f32.mrf.mxu0  ;;  %v563_v14 = vpop.f32.mrf.mxu1 }
  0xd4   : > { %v1636_v15 = vadd.f32 %v1549_v20, %v543_v13  ;;  %v1639_v16 = vadd.f32 %v1549_v20, %v563_v14 }
  0xd7   : > { %611 = sbr.rel (%p1542_p9) target bundleno = 223 (0xdf), region = 44 }
  0xda   : > { %v583_v17 = vpop.f32.mrf.mxu2  ;;  %v603_v18 = vpop.f32.mrf.mxu3 }
  0xdb   : > { %v1642_v19 = vadd.f32 %v1549_v20, %v583_v17  ;;  %v1645_v21 = vadd.f32 %v1549_v20, %v603_v18 }
  0xdc   : > { %vm612_vm1 = vcmask 57344   ;;  %v1418_v22 = vmov 0.0  }
  0xdd   : > { %613 = vst.msk [vmem:[#allocation2] sm:$0x1] %vm612_vm1, %v1418_v22 }
  0xde   : > { %614 = vst.msk [vmem:[#allocation3] sm:$0x1] %vm612_vm1, %v1418_v22 }
  0xdf PF: > { %p1298_p10 = scmp.ne.s32.totalorder %s1404_s19, 0 }
  0xe1   : > { %617 = sbr.rel (%p1298_p10) target bundleno = 312 (0x138), region = 48 }
  0xe6   : > { %vm619_vm2 = vcmask 64512   ;;  %v693_v45 = vmul.f32 %v1552_v23, %v1552_v23  ;;  %v694_v46 = vmul.f32 %v1564_v31, %v1564_v31  ;;  %v695_v50 = vmul.f32 %v1576_v39, %v1576_v39 }
  0xe7   : > { %v620_v25 = vsel %vm619_vm2, %v1552_v23, 0.0  ;;  %v621_v26 = vsel %vm619_vm2, %v1564_v31, 0.0  ;;  %v623_v20 = vsel %vm619_vm2, %v1576_v39, 0.0  ;;  %v625_v30 = vsel %vm619_vm2, %v1588_v47, 0.0 }
  0xe8   : > { %v622_v29 = vadd.f32 %v621_v26, %v620_v25  ;;  %v627_v34 = vsel %vm619_vm2, %v1600_v55, 0.0  ;;  %v629_v38 = vsel %vm619_vm2, %v1612_v63, 0.0  ;;  %v631_v42 = vsel %vm619_vm2, %v1624_v7, 0.0 }
  0xe9   : > { %v633_v53 = vsel %vm619_vm2, %v1636_v15, 0.0  ;;  %v696_v54 = vmul.f32 %v1588_v47, %v1588_v47  ;;  %v635_v58 = vsel %vm619_vm2, %v1555_v24, 0.0  ;;  %v697_v61 = vmul.f32 %v1600_v55, %v1600_v55 }
  0xea   : > { %v624_v33 = vadd.f32 %v623_v20, %v622_v29  ;;  %v725_v62 = vsel %vm619_vm2, %v693_v45, 0.0  ;;  %v726_v1 = vsel %vm619_vm2, %v694_v46, 0.0  ;;  %v728_v6 = vsel %vm619_vm2, %v695_v50, 0.0 }
  0xeb   : > { %v727_v5 = vadd.f32 %v726_v1, %v725_v62  ;;  %v637_v9 = vsel %vm619_vm2, %v1567_v32, 0.0  ;;  %v698_v10 = vmul.f32 %v1612_v63, %v1612_v63  ;;  %v730_v13 = vsel %vm619_vm2, %v696_v54, 0.0 }
  0xec   : > { %v626_v37 = vadd.f32 %v625_v30, %v624_v33  ;;  %v639_v18 = vsel %vm619_vm2, %v1579_v40, 0.0  ;;  %v699_v22 = vmul.f32 %v1624_v7, %v1624_v7  ;;  %v732_v25 = vsel %vm619_vm2, %v697_v61, 0.0 }
  0xed   : > { %v729_v17 = vadd.f32 %v728_v6, %v727_v5  ;;  %v641_v29 = vsel %vm619_vm2, %v1591_v48, 0.0  ;;  %v700_v30 = vmul.f32 %v1636_v15, %v1636_v15  ;;  %v734_v33 = vsel %vm619_vm2, %v698_v10, 0.0 }
  0xee   : > { %v628_v41 = vadd.f32 %v627_v34, %v626_v37  ;;  %v702_v50 = vmul.f32 %v1567_v32, %v1567_v32  ;;  %v703_v61 = vmul.f32 %v1579_v40, %v1579_v40  ;;  %v649_v5 = vsel %vm619_vm2, %v1639_v16, 0.0 }
  0xef   : > { %v731_v20 = vadd.f32 %v730_v13, %v729_v17  ;;  %v704_v6 = vmul.f32 %v1591_v48, %v1591_v48  ;;  %v705_v17 = vmul.f32 %v1603_v56, %v1603_v56  ;;  %vm690_vm3 = vcmask 57344  }
  0xf0   : > { %v630_v49 = vadd.f32 %v629_v38, %v628_v41  ;;  %v643_v38 = vsel %vm619_vm2, %v1603_v56, 0.0  ;;  %v701_v41 = vmul.f32 %v1555_v24, %v1555_v24 }
  0xf1   : > { %v733_v37 = vadd.f32 %v732_v25, %v731_v20  ;;  %v706_v20 = vmul.f32 %v1615_v0, %v1615_v0 }
  0xf2   : > { %v632_v57 = vadd.f32 %v631_v42, %v630_v49  ;;  %v736_v42 = vsel %vm619_vm2, %v699_v22, 0.0  ;;  %v645_v49 = vsel %vm619_vm2, %v1615_v0, 0.0  ;;  %v740_v62 = vsel %vm619_vm2, %v701_v41, 0.0 }
  0xf3   : > { %v735_v46 = vadd.f32 %v734_v33, %v733_v37  ;;  %v707_v37 = vmul.f32 %v1627_v8, %v1627_v8 }
  0xf4   : > { %v634_v2 = vadd.f32 %v633_v53, %v632_v57  ;;  %v738_v53 = vsel %vm619_vm2, %v700_v30, 0.0 }
  0xf5   : > { %v737_v57 = vadd.f32 %v736_v42, %v735_v46  ;;  %v708_v46 = vmul.f32 %v1639_v16, %v1639_v16 }
  0xf6   : > { %v636_v14 = vadd.f32 %v635_v58, %v634_v2  ;;  %v647_v58 = vsel %vm619_vm2, %v1627_v8, 0.0 }
  0xf7   : > { %v739_v2 = vadd.f32 %v738_v53, %v737_v57  ;;  %v709_v57 = vmul.f32 %v1558_v27, %v1558_v27 }
  0xf8   : > { %v638_v26 = vadd.f32 %v637_v9, %v636_v14  ;;  %v742_v9 = vsel %vm619_vm2, %v702_v50, 0.0  ;;  %v651_v14 = vsel %vm619_vm2, %v1558_v27, 0.0 }
  0xf9   : > { %v741_v13 = vadd.f32 %v740_v62, %v739_v2  ;;  %v710_v2 = vmul.f32 %v1570_v35, %v1570_v35 }
  0xfa   : > { %v640_v34 = vadd.f32 %v639_v18, %v638_v26  ;;  %v744_v18 = vsel %vm619_vm2, %v703_v61, 0.0  ;;  %v653_v26 = vsel %vm619_vm2, %v1570_v35, 0.0 }
  0xfb   : > { %v743_v25 = vadd.f32 %v742_v9, %v741_v13  ;;  %v711_v13 = vmul.f32 %v1582_v43, %v1582_v43 }
  0xfc   : > { %v642_v45 = vadd.f32 %v641_v29, %v640_v34  ;;  %v746_v29 = vsel %vm619_vm2, %v704_v6, 0.0  ;;  %v655_v34 = vsel %vm619_vm2, %v1582_v43, 0.0 }
  0xfd   : > { %v745_v33 = vadd.f32 %v744_v18, %v743_v25  ;;  %v712_v25 = vmul.f32 %v1594_v51, %v1594_v51 }
  0xfe   : > { %v644_v54 = vadd.f32 %v643_v38, %v642_v45  ;;  %v748_v38 = vsel %vm619_vm2, %v705_v17, 0.0  ;;  %v657_v45 = vsel %vm619_vm2, %v1594_v51, 0.0 }
  0xff   : > { %v747_v42 = vadd.f32 %v746_v29, %v745_v33  ;;  %v713_v33 = vmul.f32 %v1606_v59, %v1606_v59 }
 0x100   : > { %v646_v1 = vadd.f32 %v645_v49, %v644_v54  ;;  %v750_v49 = vsel %vm619_vm2, %v706_v20, 0.0  ;;  %v659_v54 = vsel %vm619_vm2, %v1606_v59, 0.0 }
 0x101   : > { %v749_v53 = vadd.f32 %v748_v38, %v747_v42  ;;  %v714_v42 = vmul.f32 %v1618_v3, %v1618_v3 }
 0x102   : > { %v648_v10 = vadd.f32 %v647_v58, %v646_v1  ;;  %v752_v58 = vsel %vm619_vm2, %v707_v37, 0.0  ;;  %v661_v1 = vsel %vm619_vm2, %v1618_v3, 0.0 }
 0x103   : > { %v751_v62 = vadd.f32 %v750_v49, %v749_v53  ;;  %v715_v53 = vmul.f32 %v1630_v11, %v1630_v11 }
 0x104   : > { %v650_v22 = vadd.f32 %v649_v5, %v648_v10  ;;  %v754_v5 = vsel %vm619_vm2, %v708_v46, 0.0  ;;  %v663_v10 = vsel %vm619_vm2, %v1630_v11, 0.0 }
 0x105   : > { %v753_v9 = vadd.f32 %v752_v58, %v751_v62  ;;  %v716_v62 = vmul.f32 %v1642_v19, %v1642_v19 }
 0x106   : > { %v652_v30 = vadd.f32 %v651_v14, %v650_v22  ;;  %v756_v14 = vsel %vm619_vm2, %v709_v57, 0.0  ;;  %v665_v22 = vsel %vm619_vm2, %v1642_v19, 0.0 }
 0x107   : > { %v755_v18 = vadd.f32 %v754_v5, %v753_v9  ;;  %v717_v9 = vmul.f32 %v1561_v28, %v1561_v28 }
 0x108   : > { %v654_v41 = vadd.f32 %v653_v26, %v652_v30  ;;  %v758_v26 = vsel %vm619_vm2, %v710_v2, 0.0  ;;  %v667_v30 = vsel %vm619_vm2, %v1561_v28, 0.0 }
 0x109   : > { %v757_v29 = vadd.f32 %v756_v14, %v755_v18  ;;  %v718_v18 = vmul.f32 %v1573_v36, %v1573_v36 }
 0x10a   : > { %v656_v50 = vadd.f32 %v655_v34, %v654_v41  ;;  %v760_v34 = vsel %vm619_vm2, %v711_v13, 0.0  ;;  %v669_v41 = vsel %vm619_vm2, %v1573_v36, 0.0 }
 0x10b   : > { %v759_v38 = vadd.f32 %v758_v26, %v757_v29  ;;  %v719_v29 = vmul.f32 %v1585_v44, %v1585_v44 }
 0x10c   : > { %v658_v61 = vadd.f32 %v657_v45, %v656_v50  ;;  %v762_v45 = vsel %vm619_vm2, %v712_v25, 0.0  ;;  %v671_v50 = vsel %vm619_vm2, %v1585_v44, 0.0 }
 0x10d   : > { %v761_v49 = vadd.f32 %v760_v34, %v759_v38  ;;  %v720_v38 = vmul.f32 %v1597_v52, %v1597_v52 }
 0x10e   : > { %v660_v6 = vadd.f32 %v659_v54, %v658_v61  ;;  %v764_v54 = vsel %vm619_vm2, %v713_v33, 0.0  ;;  %v673_v61 = vsel %vm619_vm2, %v1597_v52, 0.0 }
 0x10f   : > { %v763_v58 = vadd.f32 %v762_v45, %v761_v49  ;;  %v776_v49 = vsel %vm619_vm2, %v719_v29, 0.0 }
 0x110   : > { %v662_v17 = vadd.f32 %v661_v1, %v660_v6  ;;  %v766_v1 = vsel %vm619_vm2, %v714_v42, 0.0  ;;  %v675_v6 = vsel %vm619_vm2, %v1609_v60, 0.0 }
 0x111   : > { %v765_v5 = vadd.f32 %v764_v54, %v763_v58  ;;  %v722_v54 = vmul.f32 %v1621_v4, %v1621_v4 }
 0x112   : > { %v664_v20 = vadd.f32 %v663_v10, %v662_v17  ;;  %v768_v10 = vsel %vm619_vm2, %v715_v53, 0.0  ;;  %v677_v17 = vsel %vm619_vm2, %v1621_v4, 0.0 }
 0x113   : > { %v767_v14 = vadd.f32 %v766_v1, %v765_v5 }
 0x114   : > { %v666_v37 = vadd.f32 %v665_v22, %v664_v20  ;;  %v770_v22 = vsel %vm619_vm2, %v716_v62, 0.0  ;;  %v679_v20 = vsel %vm619_vm2, %v1633_v12, 0.0  ;;  %v723_v62 = vmul.f32 %v1633_v12, %v1633_v12 }
 0x115   : > { %v769_v26 = vadd.f32 %v768_v10, %v767_v14 }
 0x116   : > { %v668_v46 = vadd.f32 %v667_v30, %v666_v37  ;;  %v772_v30 = vsel %vm619_vm2, %v717_v9, 0.0  ;;  %v681_v37 = vsel %vm619_vm2, %v1645_v21, 0.0  ;;  %v782_v9 = vsel %vm619_vm2, %v722_v54, 0.0 }
 0x117   : > { %v771_v34 = vadd.f32 %v770_v22, %v769_v26  ;;  %v784_v14 = vsel %vm619_vm2, %v723_v62, 0.0 }
 0x118   : > { %v670_v57 = vadd.f32 %v669_v41, %v668_v46  ;;  %v774_v41 = vsel %vm619_vm2, %v718_v18, 0.0  ;;  %v721_v46 = vmul.f32 %v1609_v60, %v1609_v60 }
 0x119   : > { %v773_v45 = vadd.f32 %v772_v30, %v771_v34 }
 0x11a   : > { %v672_v2 = vadd.f32 %v671_v50, %v670_v57  ;;  %v778_v57 = vsel %vm619_vm2, %v720_v38, 0.0  ;;  %v780_v1 = vsel %vm619_vm2, %v721_v46, 0.0 }
 0x11b   : > { %v775_v53 = vadd.f32 %v774_v41, %v773_v45  ;;  %v692_v45 = vld [vmem:[#allocation3] sm:$0x1] }
 0x11c   : > { %v674_v13 = vadd.f32 %v673_v61, %v672_v2 }
 0x11d   : > { %v777_v61 = vadd.f32 %v776_v49, %v775_v53 }
 0x11e   : > { %v676_v25 = vadd.f32 %v675_v6, %v674_v13  ;;  %v724_v6 = vmul.f32 %v1645_v21, %v1645_v21 }
 0x11f   : > { %v779_v5 = vadd.f32 %v778_v57, %v777_v61 }
 0x120   : > { %v678_v33 = vadd.f32 %v677_v17, %v676_v25  ;;  %v786_v22 = vsel %vm619_vm2, %v724_v6, 0.0 }
 0x121   : > { %v781_v13 = vadd.f32 %v780_v1, %v779_v5 }
 0x122   : > { %v680_v42 = vadd.f32 %v679_v20, %v678_v33  ;;  %v618_v20 = vld [vmem:[#allocation2] sm:$0x1] }
 0x123   : > { %v783_v18 = vadd.f32 %v782_v9, %v781_v13 }
 0x124   : > { %v682_v50 = vadd.f32 %v681_v37, %v680_v42 }
 0x125   : > { %v785_v26 = vadd.f32 %v784_v14, %v783_v18 }
 0x126   : > { %v683_v58 = vrot.slane %v682_v50, 4 }
 0x127   : > { %v787_v30 = vadd.f32 %v786_v22, %v785_v26 }
 0x128   : > { %v684_v2 = vadd.f32 %v683_v58, %v682_v50 }
 0x129   : > { %v788_v34 = vrot.slane %v787_v30, 4 }
 0x12a   : > { %v685_v10 = vrot.slane %v684_v2, 2 }
 0x12b   : > { %v789_v37 = vadd.f32 %v788_v34, %v787_v30 }
 0x12c   : > { %v686_v17 = vadd.f32 %v685_v10, %v684_v2 }
 0x12d   : > { %v790_v38 = vrot.slane %v789_v37, 2 }
 0x12e   : > { %v687_v25 = vrot.slane %v686_v17, 1 }
 0x12f   : > { %v791_v41 = vadd.f32 %v790_v38, %v789_v37 }
 0x130   : > { %v688_v29 = vadd.f32 %v687_v25, %v686_v17 }
 0x131   : > { %v792_v42 = vrot.slane %v791_v41, 1 }
 0x132   : > { %v689_v33 = vadd.f32 %v688_v29, %v618_v20 }
 0x133   : > { %v793_v46 = vadd.f32 %v792_v42, %v791_v41 }
 0x134   : > { %691 = vst.msk [vmem:[#allocation2] sm:$0x1] %vm690_vm3, %v689_v33 }
 0x135   : > { %v794_v49 = vadd.f32 %v793_v46, %v692_v45 }
 0x137   : > { %795 = vst.msk [vmem:[#allocation3] sm:$0x1] %vm690_vm3, %v794_v49 }
 0x138 PF: > { %p1299_p11 = scmp.ne.s32.totalorder %s1404_s19, 1 }
 0x13a   : > { %799 = sbr.rel (%p1299_p11) target bundleno = 406 (0x196), region = 52 }
 0x13f   : > { %v800_v50 = vld [vmem:[#allocation2] sm:$0x1]  ;;  %v802_v53 = vld [vmem:[#allocation3] sm:$0x1]  ;;  %vm1021_vm7 = vcmask 60416  }
 0x140   : > { %v801_v54 = vmul.f32 0.001953125, %v800_v50  ;;  %v803_v57 = vmul.f32 0.001953125, %v802_v53  ;;  %v818_v14 = vld [vmem:[%s1999_s3] sm:$0x1] }
 0x141   : > { %v820_v22 = vld [vmem:[%s2000_s4] sm:$0x1] }
 0x142   : > { %v804_v58 = vmul.f32 %v801_v54, %v801_v54 }
 0x144   : > { %v805_v61 = vsub.f32 %v803_v57, %v804_v58 }
 0x146   : > { %v806_v62 = vmax.f32 %v805_v61, 0.0 }
 0x148   : > { %v807_v1 = vadd.f32 1e-05, %v806_v62 }
 0x14a   : > { %1376 = vrsqrt.f32 %v807_v1  ;;  %vm814_vm4 = vweird.f32 %v807_v1 }
 0x150   : > { %v1377_v2 = vpop.eup %1376 }
 0x151   : > { %v809_v5 = vmul.f32 %v1377_v2, %v807_v1  ;;  %vm815_vm5 = vweird.f32 %v1377_v2 }
 0x152   : > { %vm816_vm6 = vmor %vm814_vm4, %vm815_vm5 }
 0x153   : > { %v810_v6 = vmul.f32 %v1377_v2, %v809_v5 }
 0x155   : > { %v811_v9 = vmul.f32 0.5, %v810_v6 }
 0x157   : > { %v812_v10 = vsub.f32 1.5, %v811_v9 }
 0x159   : > { %v813_v13 = vmul.f32 %v1377_v2, %v812_v10 }
 0x15b   : > { %v817_v17 = vsel %vm816_vm6, %v1377_v2, %v813_v13 }
 0x15c   : > { %v819_v18 = vmul.f32 %v818_v14, %v817_v17 }
 0x15e   : > { %v821_v25 = vmul.f32 %v819_v18, %v801_v54  ;;  %v1817_v26 = vperm.slane %v819_v18, 0 }
 0x160   : > { %v822_v20 = vsub.f32 %v820_v22, %v821_v25  ;;  %v826_v29 = vmul.f32 %v1817_v26, %v1552_v23  ;;  %v827_v30 = vmul.f32 %v1817_v26, %v1564_v31  ;;  %v828_v33 = vmul.f32 %v1817_v26, %v1576_v39 }
 0x161   : > { %v829_v34 = vmul.f32 %v1817_v26, %v1588_v47  ;;  %v830_v37 = vmul.f32 %v1817_v26, %v1600_v55  ;;  %v831_v38 = vmul.f32 %v1817_v26, %v1612_v63  ;;  %v832_v41 = vmul.f32 %v1817_v26, %v1624_v7 }
 0x162   : > { %v1833_v23 = vperm.slane %v822_v20, 0  ;;  %v833_v31 = vmul.f32 %v1817_v26, %v1636_v15  ;;  %v834_v39 = vmul.f32 %v1817_v26, %v1555_v24  ;;  %v835_v47 = vmul.f32 %v1817_v26, %v1567_v32 }
 0x163   : > { %v836_v55 = vmul.f32 %v1817_v26, %v1579_v40  ;;  %v837_v63 = vmul.f32 %v1817_v26, %v1591_v48  ;;  %v838_v7 = vmul.f32 %v1817_v26, %v1603_v56  ;;  %v839_v42 = vmul.f32 %v1817_v26, %v1615_v0 }
 0x164   : > { %v861_v15 = vadd.f32 %v1833_v23, %v826_v29  ;;  %v862_v45 = vadd.f32 %v1833_v23, %v827_v30  ;;  %v863_v24 = vadd.f32 %v1833_v23, %v828_v33  ;;  %v864_v32 = vadd.f32 %v1833_v23, %v829_v34 }
 0x165   : > { %v865_v46 = vadd.f32 %v1833_v23, %v830_v37  ;;  %v866_v40 = vadd.f32 %v1833_v23, %v831_v38  ;;  %v867_v48 = vadd.f32 %v1833_v23, %v832_v41  ;;  %v868_v49 = vadd.f32 %v1833_v23, %v833_v31 }
 0x166   : > { %vm893_vm8 = vcmp.gt.f32.partialorder %v861_v15, 0.0  ;;  %v925_v56 = vmul.f32 0.2, %v861_v15  ;;  %vm894_vm9 = vcmp.gt.f32.partialorder %v862_v45, 0.0  ;;  %v926_v0 = vmul.f32 0.2, %v862_v45 }
 0x167   : > { %vm895_vm10 = vcmp.gt.f32.partialorder %v863_v24, 0.0  ;;  %v927_v50 = vmul.f32 0.2, %v863_v24  ;;  %vm896_vm11 = vcmp.gt.f32.partialorder %v864_v32, 0.0  ;;  %v928_v53 = vmul.f32 0.2, %v864_v32 }
 0x168   : > { %v957_v54 = vsel %vm893_vm8, %v861_v15, %v925_v56  ;;  %v958_v57 = vsel %vm894_vm9, %v862_v45, %v926_v0  ;;  %vm897_vm12 = vcmp.gt.f32.partialorder %v865_v46, 0.0  ;;  %v929_v58 = vmul.f32 0.2, %v865_v46 }
 0x169   : > { %v989_v61 = vpack.c.bf16 %v957_v54, %v957_v54  ;;  %v990_v62 = vpack.c.bf16 %v958_v57, %v958_v57  ;;  %v959_v1 = vsel %vm895_vm10, %v863_v24, %v927_v50  ;;  %v960_v2 = vsel %vm896_vm11, %v864_v32, %v928_v53 }
 0x16a   : > { %v991_v5 = vpack.c.bf16 %v959_v1, %v959_v1  ;;  %v992_v6 = vpack.c.bf16 %v960_v2, %v960_v2  ;;  %v961_v9 = vsel %vm897_vm12, %v865_v46, %v929_v58  ;;  %vm898_vm13 = vcmp.gt.f32.partialorder %v866_v40, 0.0 }
 0x16b   : > { %1022 = vst.msk [vmem:[%s1498_s13] sm:$0xf] %vm1021_vm7, %v989_v61  ;;  %v993_v10 = vpack.c.bf16 %v961_v9, %v961_v9  ;;  %v930_v13 = vmul.f32 0.2, %v866_v40  ;;  %vm899_vm14 = vcmp.gt.f32.partialorder %v867_v48, 0.0  ;;  %vm900_vm15 = vcmp.gt.f32.partialorder %v868_v49, 0.0 }
 0x16c   : > { %1023 = vst.msk [vmem:[%s1498_s13 + $0x4] sm:$0xf] %vm1021_vm7, %v990_v62  ;;  %v931_v14 = vmul.f32 0.2, %v867_v48  ;;  %v932_v17 = vmul.f32 0.2, %v868_v49  ;;  %v869_v18 = vadd.f32 %v1833_v23, %v834_v39  ;;  %v870_v22 = vadd.f32 %v1833_v23, %v835_v47 }
 0x16d   : > { %1024 = vst.msk [vmem:[%s1498_s13 + $0x8] sm:$0xf] %vm1021_vm7, %v991_v5  ;;  %v962_v25 = vsel %vm898_vm13, %v866_v40, %v930_v13  ;;  %v871_v20 = vadd.f32 %v1833_v23, %v836_v55  ;;  %v872_v29 = vadd.f32 %v1833_v23, %v837_v63  ;;  %v873_v30 = vadd.f32 %v1833_v23, %v838_v7 }
 0x16e   : > { %1025 = vst.msk [vmem:[%s1498_s13 + $0xc] sm:$0xf] %vm1021_vm7, %v992_v6  ;;  %v994_v33 = vpack.c.bf16 %v962_v25, %v962_v25  ;;  %v963_v34 = vsel %vm899_vm14, %v867_v48, %v931_v14  ;;  %v964_v37 = vsel %vm900_vm15, %v868_v49, %v932_v17  ;;  %vm901_vm0 = vcmp.gt.f32.partialorder %v869_v18, 0.0 }
 0x16f   : > { %1026 = vst.msk [vmem:[%s1498_s13 + $0x10] sm:$0xf] %vm1021_vm7, %v993_v10  ;;  %v995_v38 = vpack.c.bf16 %v963_v34, %v963_v34  ;;  %v996_v41 = vpack.c.bf16 %v964_v37, %v964_v37  ;;  %v933_v31 = vmul.f32 0.2, %v869_v18  ;;  %vm902_vm1 = vcmp.gt.f32.partialorder %v870_v22, 0.0 }
 0x170   : > { %1027 = vst.msk [vmem:[%s1498_s13 + $0x14] sm:$0xf] %vm1021_vm7, %v994_v33  ;;  %v934_v39 = vmul.f32 0.2, %v870_v22  ;;  %vm903_vm2 = vcmp.gt.f32.partialorder %v871_v20, 0.0  ;;  %vm904_vm3 = vcmp.gt.f32.partialorder %v872_v29, 0.0  ;;  %v874_v47 = vadd.f32 %v1833_v23, %v839_v42 }
 0x171   : > { %1028 = vst.msk [vmem:[%s1498_s13 + $0x18] sm:$0xf] %vm1021_vm7, %v995_v38  ;;  %v965_v55 = vsel %vm901_vm0, %v869_v18, %v933_v31  ;;  %v935_v63 = vmul.f32 0.2, %v871_v20  ;;  %v936_v7 = vmul.f32 0.2, %v872_v29  ;;  %v840_v15 = vmul.f32 %v1817_v26, %v1627_v8 }
 0x172   : > { %1029 = vst.msk [vmem:[%s1498_s13 + $0x1c] sm:$0xf] %vm1021_vm7, %v996_v41  ;;  %v997_v45 = vpack.c.bf16 %v965_v55, %v965_v55  ;;  %v966_v24 = vsel %vm902_vm1, %v870_v22, %v934_v39  ;;  %vm905_vm4 = vcmp.gt.f32.partialorder %v873_v30, 0.0  ;;  %v937_v32 = vmul.f32 0.2, %v873_v30 }
 0x173   : > { %v998_v46 = vpack.c.bf16 %v966_v24, %v966_v24  ;;  %v967_v40 = vsel %vm903_vm2, %v871_v20, %v935_v63  ;;  %v968_v48 = vsel %vm904_vm3, %v872_v29, %v936_v7  ;;  %vm906_vm5 = vcmp.gt.f32.partialorder %v874_v47, 0.0 }
 0x174   : > { %1030 = vst.msk [vmem:[%s1498_s13 + $0x20] sm:$0xf] %vm1021_vm7, %v997_v45  ;;  %v999_v42 = vpack.c.bf16 %v967_v40, %v967_v40  ;;  %v1000_v49 = vpack.c.bf16 %v968_v48, %v968_v48  ;;  %v969_v56 = vsel %vm905_vm4, %v873_v30, %v937_v32  ;;  %v938_v0 = vmul.f32 0.2, %v874_v47 }
 0x175   : > { %1031 = vst.msk [vmem:[%s1498_s13 + $0x24] sm:$0xf] %vm1021_vm7, %v998_v46  ;;  %v1001_v8 = vpack.c.bf16 %v969_v56, %v969_v56  ;;  %v875_v50 = vadd.f32 %v1833_v23, %v840_v15  ;;  %v841_v53 = vmul.f32 %v1817_v26, %v1639_v16  ;;  %v842_v54 = vmul.f32 %v1817_v26, %v1558_v27 }
 0x176   : > { %1032 = vst.msk [vmem:[%s1498_s13 + $0x28] sm:$0xf] %vm1021_vm7, %v999_v42  ;;  %v970_v57 = vsel %vm906_vm5, %v874_v47, %v938_v0  ;;  %v843_v58 = vmul.f32 %v1817_v26, %v1570_v35  ;;  %v844_v61 = vmul.f32 %v1817_v26, %v1582_v43  ;;  %v845_v62 = vmul.f32 %v1817_v26, %v1594_v51 }
 0x177   : > { %1033 = vst.msk [vmem:[%s1498_s13 + $0x2c] sm:$0xf] %vm1021_vm7, %v1000_v49  ;;  %v1002_v1 = vpack.c.bf16 %v970_v57, %v970_v57  ;;  %vm907_vm6 = vcmp.gt.f32.partialorder %v875_v50, 0.0  ;;  %v939_v16 = vmul.f32 0.2, %v875_v50  ;;  %v876_v27 = vadd.f32 %v1833_v23, %v841_v53 }
 0x178   : > { %1034 = vst.msk [vmem:[%s1498_s13 + $0x30] sm:$0xf] %vm1021_vm7, %v1001_v8  ;;  %v877_v2 = vadd.f32 %v1833_v23, %v842_v54  ;;  %v878_v5 = vadd.f32 %v1833_v23, %v843_v58  ;;  %v879_v35 = vadd.f32 %v1833_v23, %v844_v61  ;;  %v880_v43 = vadd.f32 %v1833_v23, %v845_v62 }
 0x179   : > { %1035 = vst.msk [vmem:[%s1498_s13 + $0x34] sm:$0xf] %vm1021_vm7, %v1002_v1  ;;  %v971_v51 = vsel %vm907_vm6, %v875_v50, %v939_v16  ;;  %vm908_vm8 = vcmp.gt.f32.partialorder %v876_v27, 0.0  ;;  %v940_v6 = vmul.f32 0.2, %v876_v27  ;;  %v846_v9 = vmul.f32 %v1817_v26, %v1606_v59 }
 0x17a   : > { %v1003_v10 = vpack.c.bf16 %v971_v51, %v971_v51  ;;  %vm909_vm9 = vcmp.gt.f32.partialorder %v877_v2, 0.0  ;;  %v941_v13 = vmul.f32 0.2, %v877_v2  ;;  %vm910_vm10 = vcmp.gt.f32.partialorder %v878_v5, 0.0 }
 0x17b   : > { %v972_v14 = vsel %vm908_vm8, %v876_v27, %v940_v6  ;;  %v942_v17 = vmul.f32 0.2, %v878_v5  ;;  %vm911_vm11 = vcmp.gt.f32.partialorder %v879_v35, 0.0  ;;  %v943_v18 = vmul.f32 0.2, %v879_v35 }
 0x17c   : > { %1036 = vst.msk [vmem:[%s1498_s13 + $0x38] sm:$0xf] %vm1021_vm7, %v1003_v10  ;;  %v1004_v22 = vpack.c.bf16 %v972_v14, %v972_v14  ;;  %v973_v25 = vsel %vm909_vm9, %v877_v2, %v941_v13  ;;  %vm912_vm12 = vcmp.gt.f32.partialorder %v880_v43, 0.0  ;;  %v944_v20 = vmul.f32 0.2, %v880_v43 }
 0x17d   : > { %v1005_v29 = vpack.c.bf16 %v973_v25, %v973_v25  ;;  %v974_v30 = vsel %vm910_vm10, %v878_v5, %v942_v17  ;;  %v975_v59 = vsel %vm911_vm11, %v879_v35, %v943_v18  ;;  %v881_v33 = vadd.f32 %v1833_v23, %v846_v9 }
 0x17e   : > { %1037 = vst.msk [vmem:[%s1498_s13 + $0x3c] sm:$0xf] %vm1021_vm7, %v1004_v22  ;;  %v1006_v34 = vpack.c.bf16 %v974_v30, %v974_v30  ;;  %v1007_v37 = vpack.c.bf16 %v975_v59, %v975_v59  ;;  %v976_v38 = vsel %vm912_vm12, %v880_v43, %v944_v20  ;;  %v847_v41 = vmul.f32 %v1817_v26, %v1618_v3 }
 0x17f   : > { %1038 = vst.msk [vmem:[%s1498_s13 + $0x40] sm:$0xf] %vm1021_vm7, %v1005_v29  ;;  %v1008_v31 = vpack.c.bf16 %v976_v38, %v976_v38  ;;  %vm913_vm13 = vcmp.gt.f32.partialorder %v881_v33, 0.0  ;;  %v945_v39 = vmul.f32 0.2, %v881_v33  ;;  %v848_v47 = vmul.f32 %v1817_v26, %v1630_v11 }
 0x180   : > { %1039 = vst.msk [vmem:[%s1498_s13 + $0x44] sm:$0xf] %vm1021_vm7, %v1006_v34  ;;  %v882_v55 = vadd.f32 %v1833_v23, %v847_v41  ;;  %v849_v63 = vmul.f32 %v1817_v26, %v1642_v19  ;;  %v850_v7 = vmul.f32 %v1817_v26, %v1561_v28  ;;  %v851_v3 = vmul.f32 %v1817_v26, %v1573_v36 }
 0x181   : > { %1040 = vst.msk [vmem:[%s1498_s13 + $0x48] sm:$0xf] %vm1021_vm7, %v1007_v37  ;;  %v977_v15 = vsel %vm913_vm13, %v881_v33, %v945_v39  ;;  %v883_v45 = vadd.f32 %v1833_v23, %v848_v47  ;;  %v852_v11 = vmul.f32 %v1817_v26, %v1585_v44  ;;  %v853_v24 = vmul.f32 %v1817_v26, %v1597_v52 }
 0x182   : > { %1041 = vst.msk [vmem:[%s1498_s13 + $0x4c] sm:$0xf] %vm1021_vm7, %v1008_v31  ;;  %v1009_v19 = vpack.c.bf16 %v977_v15, %v977_v15  ;;  %vm914_vm14 = vcmp.gt.f32.partialorder %v882_v55, 0.0  ;;  %v946_v28 = vmul.f32 0.2, %v882_v55  ;;  %v884_v32 = vadd.f32 %v1833_v23, %v849_v63 }
 0x183   : > { %vm915_vm15 = vcmp.gt.f32.partialorder %v883_v45, 0.0  ;;  %v947_v36 = vmul.f32 0.2, %v883_v45  ;;  %v885_v46 = vadd.f32 %v1833_v23, %v850_v7  ;;  %v886_v40 = vadd.f32 %v1833_v23, %v851_v3 }
 0x184   : > { %1042 = vst.msk [vmem:[%s1498_s13 + $0x50] sm:$0xf] %vm1021_vm7, %v1009_v19  ;;  %v978_v44 = vsel %vm914_vm14, %v882_v55, %v946_v28  ;;  %vm916_vm0 = vcmp.gt.f32.partialorder %v884_v32, 0.0  ;;  %v948_v52 = vmul.f32 0.2, %v884_v32  ;;  %v887_v48 = vadd.f32 %v1833_v23, %v852_v11 }
 0x185   : > { %v1010_v42 = vpack.c.bf16 %v978_v44, %v978_v44  ;;  %v979_v49 = vsel %vm915_vm15, %v883_v45, %v947_v36  ;;  %vm917_vm1 = vcmp.gt.f32.partialorder %v885_v46, 0.0  ;;  %v949_v56 = vmul.f32 0.2, %v885_v46 }
 0x186   : > { %v1011_v0 = vpack.c.bf16 %v979_v49, %v979_v49  ;;  %v980_v8 = vsel %vm916_vm0, %v884_v32, %v948_v52  ;;  %vm918_vm2 = vcmp.gt.f32.partialorder %v886_v40, 0.0  ;;  %v950_v50 = vmul.f32 0.2, %v886_v40 }
 0x187   : > { %1043 = vst.msk [vmem:[%s1498_s13 + $0x54] sm:$0xf] %vm1021_vm7, %v1010_v42  ;;  %v1012_v53 = vpack.c.bf16 %v980_v8, %v980_v8  ;;  %v981_v54 = vsel %vm917_vm1, %v885_v46, %v949_v56  ;;  %vm919_vm3 = vcmp.gt.f32.partialorder %v887_v48, 0.0  ;;  %v951_v57 = vmul.f32 0.2, %v887_v48 }
 0x188   : > { %1044 = vst.msk [vmem:[%s1498_s13 + $0x58] sm:$0xf] %vm1021_vm7, %v1011_v0  ;;  %v1013_v58 = vpack.c.bf16 %v981_v54, %v981_v54  ;;  %v982_v61 = vsel %vm918_vm2, %v886_v40, %v950_v50  ;;  %v888_v62 = vadd.f32 %v1833_v23, %v853_v24  ;;  %v854_v1 = vmul.f32 %v1817_v26, %v1609_v60 }
 0x189   : > { %1045 = vst.msk [vmem:[%s1498_s13 + $0x5c] sm:$0xf] %vm1021_vm7, %v1012_v53  ;;  %v1014_v16 = vpack.c.bf16 %v982_v61, %v982_v61  ;;  %v983_v27 = vsel %vm919_vm3, %v887_v48, %v951_v57  ;;  %v855_v2 = vmul.f32 %v1817_v26, %v1621_v4  ;;  %v856_v5 = vmul.f32 %v1817_v26, %v1633_v12 }
 0x18a   : > { %1046 = vst.msk [vmem:[%s1498_s13 + $0x60] sm:$0xf] %vm1021_vm7, %v1013_v58  ;;  %v1015_v35 = vpack.c.bf16 %v983_v27, %v983_v27  ;;  %vm920_vm4 = vcmp.gt.f32.partialorder %v888_v62, 0.0  ;;  %v952_v43 = vmul.f32 0.2, %v888_v62  ;;  %v889_v51 = vadd.f32 %v1833_v23, %v854_v1 }
 0x18b   : > { %1047 = vst.msk [vmem:[%s1498_s13 + $0x64] sm:$0xf] %vm1021_vm7, %v1014_v16  ;;  %v890_v60 = vadd.f32 %v1833_v23, %v855_v2  ;;  %v891_v6 = vadd.f32 %v1833_v23, %v856_v5  ;;  %v857_v4 = vmul.f32 %v1817_v26, %v1645_v21 }
 0x18c   : > { %1048 = vst.msk [vmem:[%s1498_s13 + $0x68] sm:$0xf] %vm1021_vm7, %v1015_v35  ;;  %v984_v12 = vsel %vm920_vm4, %v888_v62, %v952_v43  ;;  %vm921_vm5 = vcmp.gt.f32.partialorder %v889_v51, 0.0  ;;  %v953_v9 = vmul.f32 0.2, %v889_v51 }
 0x18d   : > { %v1016_v10 = vpack.c.bf16 %v984_v12, %v984_v12  ;;  %vm922_vm6 = vcmp.gt.f32.partialorder %v890_v60, 0.0  ;;  %v954_v13 = vmul.f32 0.2, %v890_v60  ;;  %vm923_vm8 = vcmp.gt.f32.partialorder %v891_v6, 0.0 }
 0x18e   : > { %v985_v14 = vsel %vm921_vm5, %v889_v51, %v953_v9  ;;  %v955_v17 = vmul.f32 0.2, %v891_v6  ;;  %v892_v18 = vadd.f32 %v1833_v23, %v857_v4 }
 0x18f   : > { %1049 = vst.msk [vmem:[%s1498_s13 + $0x6c] sm:$0xf] %vm1021_vm7, %v1016_v10  ;;  %v1017_v21 = vpack.c.bf16 %v985_v14, %v985_v14  ;;  %v986_v26 = vsel %vm922_vm6, %v890_v60, %v954_v13 }
 0x190   : > { %v1018_v22 = vpack.c.bf16 %v986_v26, %v986_v26  ;;  %v987_v25 = vsel %vm923_vm8, %v891_v6, %v955_v17  ;;  %vm924_vm9 = vcmp.gt.f32.partialorder %v892_v18, 0.0  ;;  %v956_v20 = vmul.f32 0.2, %v892_v18 }
 0x191   : > { %1050 = vst.msk [vmem:[%s1498_s13 + $0x70] sm:$0xf] %vm1021_vm7, %v1017_v21  ;;  %v1019_v29 = vpack.c.bf16 %v987_v25, %v987_v25 }
 0x192   : > { %1051 = vst.msk [vmem:[%s1498_s13 + $0x74] sm:$0xf] %vm1021_vm7, %v1018_v22  ;;  %v988_v30 = vsel %vm924_vm9, %v892_v18, %v956_v20 }
 0x193   : > { %1052 = vst.msk [vmem:[%s1498_s13 + $0x78] sm:$0xf] %vm1021_vm7, %v1019_v29  ;;  %v1020_v59 = vpack.c.bf16 %v988_v30, %v988_v30 }
 0x195   : > { %1053 = vst.msk [vmem:[%s1498_s13 + $0x7c] sm:$0xf] %vm1021_vm7, %v1020_v59 }
 0x196 PF: > { %s15_s22 = sadd.s32 1, %s1416_s22   ;;  %s2003_s18 = smov %s1408_s20 }
 0x197   : > { %p12_p12 = scmp.ge.s32.totalorder %s15_s22, 6   ;;  %s2004_s19 = smov %s1412_s21 }
 0x198   : > { %s2005_s20 = smov %s2008_s23  ;;  %s2006_s21 = smov %s2012_s24 }
 0x199   :  { %14 = sbr.rel (!%p12_p12) target bundleno = 3 (0x3), region = 94 }

// kernel: discriminator_forward.7
= control target key start
LH: loop header
LB: loop body
LE: loop exit
PB: predicated region body
PF: predicated region fallthrough
CT: control target
= control target key end

     0   :  { %s1095_s18 = smov 0   ;;  %s1097_s19 = smov 0   ;;  %s1414_s0 = inlined_call_operand.vmem [shape: bf16[128,128], index: 0, kind: input, shape index: {}]   ;;  %s1415_s1 = inlined_call_operand.vmem [shape: bf16[128,16], index: 1, kind: input, shape index: {}]   ;;  %s1416_s2 = inlined_call_operand.vmem [shape: f32[1,16], index: 2, kind: input, shape index: {}]   ;;  %s1417_s3 = inlined_call_operand.vmem [shape: f32[1,16], index: 3, kind: input, shape index: {}]   ;;  %s1418_s4 = inlined_call_operand.vmem [shape: f32[1,16], index: 4, kind: input, shape index: {}]   ;;  %s1419_s5 = inlined_call_operand.vmem [shape: bf16[128,16], index: 5, kind: output, shape index: {}]  }
   0x1   :  { %s1099_s20 = smov 0  }
   0x2 LB: > { %s30_s21 = sadd.s32 1, %s1058_s19  ;;  %p899_p0 = scmp.ge.s32.totalorder %s1062_s20, 1  ;;  %s1062_s20 = sphi %s1099_s20, %s15_s20   ;;  %s1058_s19 = sphi %s1097_s19, %s1421_s19   ;;  %s1054_s18 = sphi %s1095_s18, %s1420_s18  }
   0x3   : > { %p32_p1 = scmp.ge.s32.totalorder %s30_s21, 2  ;;  %p244_p2 = scmp.lt.s32.totalorder %s1062_s20, 3 }
   0x5   : > { %s1423_s21 = smov (%p32_p1, %s30_s21), 0  ;;  %p245_p3 = pnand %p899_p0, %p244_p2 }
   0x6   : > { %p500_p4 = scmp.eq.s32.totalorder (!%p245_p3), %s1054_s18, 0 }
   0x7   : > { %248 = sbr.rel (%p245_p3) target bundleno = 329 (0x149), region = 40 }
   0xc   : > { %v986_v0 = vld [vmem:[%s1415_s1 + $0x38] sm:$0xff]  ;;  %v985_v1 = vld [vmem:[%s1415_s1 + $0x30] sm:$0xff]  ;;  %v984_v2 = vld [vmem:[%s1415_s1 + $0x28] sm:$0xff]  ;;  %vm506_vm0 = vcmask (%p500_p4), 122880   ;;  %v1064_v49 = vmov (%p500_p4), 0.0  }
   0xd   : > { %451 = vmatpush.bf16.msra.mxu0 %v986_v0  ;;  %988 = vmatpush.bf16.msra.mxu1 %v986_v0  ;;  %v983_v3 = vld [vmem:[%s1415_s1 + $0x20] sm:$0xff]  ;;  %v982_v4 = vld [vmem:[%s1415_s1 + $0x18] sm:$0xff]  ;;  %v981_v5 = vld [vmem:[%s1415_s1 + $0x10] sm:$0xff]  ;;  %507 = vst.msk [vmem:[#allocation2] sm:$0x1] (%p500_p4), %vm506_vm0, %v1064_v49 }
   0xe   : > { %989 = vmatpush.bf16.msra.mxu2 %v986_v0  ;;  %990 = vmatpush.bf16.msra.mxu3 %v986_v0  ;;  %v980_v6 = vld [vmem:[%s1415_s1 + $0x8] sm:$0xff]  ;;  %v979_v7 = vld [vmem:[%s1415_s1] sm:$0xff]  ;;  %v973_v9 = vld [vmem:[%s1414_s0 + $0x10] sm:$0xff]  ;;  %508 = vst.msk [vmem:[#allocation3] sm:$0x1] (%p500_p4), %vm506_vm0, %v1064_v49 }
   0xf   : > { %v971_v8 = vld [vmem:[%s1414_s0] sm:$0xff]  ;;  %v977_v11 = vld [vmem:[%s1414_s0 + $0x30] sm:$0xff]  ;;  %v972_v12 = vld [vmem:[%s1414_s0 + $0x8] sm:$0xff] }
  0x10   : > { %v975_v10 = vld [vmem:[%s1414_s0 + $0x20] sm:$0xff]  ;;  %v974_v13 = vld [vmem:[%s1414_s0 + $0x18] sm:$0xff]  ;;  %v976_v14 = vld [vmem:[%s1414_s0 + $0x28] sm:$0xff] }
  0x11   : > { %452 = vmatpush.bf16.msra.mxu0 %v985_v1  ;;  %991 = vmatpush.bf16.msra.mxu1 %v985_v1  ;;  %v978_v15 = vld [vmem:[%s1414_s0 + $0x38] sm:$0xff]  ;;  %v1037_v16 = vld [vmem:[%s1416_s2] ss:$0 sm:$0xff] }
  0x12   : > { %992 = vmatpush.bf16.msra.mxu2 %v985_v1  ;;  %993 = vmatpush.bf16.msra.mxu3 %v985_v1 }
  0x15   : > { %453 = vmatpush.bf16.msra.mxu0 %v984_v2  ;;  %994 = vmatpush.bf16.msra.mxu1 %v984_v2 }
  0x16   : > { %995 = vmatpush.bf16.msra.mxu2 %v984_v2  ;;  %996 = vmatpush.bf16.msra.mxu3 %v984_v2 }
  0x19   : > { %454 = vmatpush.bf16.msra.mxu0 %v983_v3  ;;  %997 = vmatpush.bf16.msra.mxu1 %v983_v3 }
  0x1a   : > { %998 = vmatpush.bf16.msra.mxu2 %v983_v3  ;;  %999 = vmatpush.bf16.msra.mxu3 %v983_v3 }
  0x1d   : > { %455 = vmatpush.bf16.msra.mxu0 %v982_v4  ;;  %1000 = vmatpush.bf16.msra.mxu1 %v982_v4 }
  0x1e   : > { %1001 = vmatpush.bf16.msra.mxu2 %v982_v4  ;;  %1002 = vmatpush.bf16.msra.mxu3 %v982_v4 }
  0x21   : > { %456 = vmatpush.bf16.msra.mxu0 %v981_v5  ;;  %1003 = vmatpush.bf16.msra.mxu1 %v981_v5 }
  0x22   : > { %1004 = vmatpush.bf16.msra.mxu2 %v981_v5  ;;  %1005 = vmatpush.bf16.msra.mxu3 %v981_v5 }
  0x25   : > { %457 = vmatpush.bf16.msra.mxu0 %v980_v6  ;;  %1006 = vmatpush.bf16.msra.mxu1 %v980_v6 }
  0x26   : > { %1007 = vmatpush.bf16.msra.mxu2 %v980_v6  ;;  %1008 = vmatpush.bf16.msra.mxu3 %v980_v6 }
  0x29   : > { %458 = vmatpush.bf16.msra.mxu0 %v979_v7  ;;  %1009 = vmatpush.bf16.msra.mxu1 %v979_v7 }
  0x2a   : > { %1010 = vmatpush.bf16.msra.mxu2 %v979_v7  ;;  %1011 = vmatpush.bf16.msra.mxu3 %v979_v7 }
  0x2c   : > { %459 = vmatmul.bf16.vlgmr.msra.gmra.mxu0 %v971_v8  ;;  %469 = vmatmul.bf16.vlgmr.msra.gmra.mxu1 %v973_v9 }
  0x2d   : > { %479 = vmatmul.bf16.vlgmr.msra.gmra.mxu2 %v975_v10  ;;  %489 = vmatmul.bf16.vlgmr.msra.gmra.mxu3 %v977_v11 }
  0x3c   : > { %464 = vmatmul.bf16.gmra.mxu0 %v972_v12  ;;  %474 = vmatmul.bf16.gmra.mxu1 %v974_v13 }
  0x3d   : > { %484 = vmatmul.bf16.gmra.mxu2 %v976_v14  ;;  %494 = vmatmul.bf16.gmra.mxu3 %v978_v15 }
  0xa9   : > { %v460_v17 = vpop.f32.mrf.mxu0  ;;  %v470_v18 = vpop.f32.mrf.mxu1 }
  0xaa   : > { %v1167_v19 = vadd.f32 %v1037_v16, %v460_v17  ;;  %v1169_v20 = vadd.f32 %v1037_v16, %v470_v18 }
  0xb0   : > { %v480_v21 = vpop.f32.mrf.mxu2  ;;  %v490_v22 = vpop.f32.mrf.mxu3 }
  0xb1   : > { %v1171_v23 = vadd.f32 %v1037_v16, %v480_v21  ;;  %v1173_v24 = vadd.f32 %v1037_v16, %v490_v22  ;;  %v462_v25 = vpop.f32.mrf.mxu0  ;;  %v472_v26 = vpop.f32.mrf.mxu1 }
  0xb2   : > { %v1175_v27 = vadd.f32 %v1037_v16, %v462_v25  ;;  %v1177_v28 = vadd.f32 %v1037_v16, %v472_v26 }
  0xb8   : > { %v482_v29 = vpop.f32.mrf.mxu2  ;;  %v492_v30 = vpop.f32.mrf.mxu3 }
  0xb9   : > { %v1179_v31 = vadd.f32 %v1037_v16, %v482_v29  ;;  %v1181_v32 = vadd.f32 %v1037_v16, %v492_v30  ;;  %v465_v33 = vpop.f32.mrf.mxu0  ;;  %v475_v34 = vpop.f32.mrf.mxu1 }
  0xba   : > { %v1183_v35 = vadd.f32 %v1037_v16, %v465_v33  ;;  %v1185_v36 = vadd.f32 %v1037_v16, %v475_v34 }
  0xc0   : > { %v485_v37 = vpop.f32.mrf.mxu2  ;;  %v495_v38 = vpop.f32.mrf.mxu3 }
  0xc1   : > { %v1187_v39 = vadd.f32 %v1037_v16, %v485_v37  ;;  %v1189_v40 = vadd.f32 %v1037_v16, %v495_v38  ;;  %v467_v41 = vpop.f32.mrf.mxu0  ;;  %v477_v42 = vpop.f32.mrf.mxu1 }
  0xc2   : > { %v1191_v43 = vadd.f32 %v1037_v16, %v467_v41  ;;  %v1193_v44 = vadd.f32 %v1037_v16, %v477_v42 }
  0xc5   : > { %505 = sbr.rel (!%p500_p4) target bundleno = 202 (0xca), region = 44 }
  0xc8   : > { %v487_v45 = vpop.f32.mrf.mxu2  ;;  %v497_v46 = vpop.f32.mrf.mxu3 }
  0xc9   : > { %v1195_v47 = vadd.f32 %v1037_v16, %v487_v45  ;;  %v1197_v48 = vadd.f32 %v1037_v16, %v497_v46 }
  0xca PF: > { %p965_p5 = scmp.ne.s32.totalorder %s1054_s18, 0 }
  0xcc   : > { %511 = sbr.rel (%p965_p5) target bundleno = 258 (0x102), region = 48 }
  0xd1   : > { %vm513_vm1 = vcmask 130048   ;;  %v555_v57 = vmul.f32 %v1167_v19, %v1167_v19  ;;  %v556_v58 = vmul.f32 %v1175_v27, %v1175_v27  ;;  %v557_v59 = vmul.f32 %v1183_v35, %v1183_v35 }
  0xd2   : > { %v514_v50 = vsel %vm513_vm1, %v1167_v19, 0.0  ;;  %v515_v51 = vsel %vm513_vm1, %v1175_v27, 0.0  ;;  %v517_v52 = vsel %vm513_vm1, %v1183_v35, 0.0  ;;  %v519_v54 = vsel %vm513_vm1, %v1191_v43, 0.0 }
  0xd3   : > { %v516_v53 = vadd.f32 %v515_v51, %v514_v50  ;;  %v521_v56 = vsel %vm513_vm1, %v1169_v20, 0.0  ;;  %v523_v61 = vsel %vm513_vm1, %v1177_v28, 0.0  ;;  %v558_v62 = vmul.f32 %v1191_v43, %v1191_v43 }
  0xd4   : > { %v525_v0 = vsel %vm513_vm1, %v1185_v36, 0.0  ;;  %v559_v1 = vmul.f32 %v1169_v20, %v1169_v20  ;;  %v571_v2 = vsel %vm513_vm1, %v555_v57, 0.0  ;;  %v572_v3 = vsel %vm513_vm1, %v556_v58, 0.0 }
  0xd5   : > { %v518_v55 = vadd.f32 %v517_v52, %v516_v53  ;;  %v574_v4 = vsel %vm513_vm1, %v557_v59, 0.0  ;;  %v573_v6 = vadd.f32 %v572_v3, %v571_v2  ;;  %v527_v7 = vsel %vm513_vm1, %v1193_v44, 0.0 }
  0xd6   : > { %v560_v8 = vmul.f32 %v1177_v28, %v1177_v28  ;;  %v576_v9 = vsel %vm513_vm1, %v558_v62, 0.0  ;;  %v529_v12 = vsel %vm513_vm1, %v1171_v23, 0.0  ;;  %v561_v13 = vmul.f32 %v1185_v36, %v1185_v36 }
  0xd7   : > { %v520_v60 = vadd.f32 %v519_v54, %v518_v55  ;;  %v575_v11 = vadd.f32 %v574_v4, %v573_v6  ;;  %v578_v14 = vsel %vm513_vm1, %v559_v1, 0.0  ;;  %v531_v17 = vsel %vm513_vm1, %v1179_v31, 0.0 }
  0xd8   : > { %v562_v18 = vmul.f32 %v1193_v44, %v1193_v44  ;;  %v580_v21 = vsel %vm513_vm1, %v560_v8, 0.0  ;;  %v533_v26 = vsel %vm513_vm1, %v1187_v39, 0.0  ;;  %v563_v29 = vmul.f32 %v1171_v23, %v1171_v23 }
  0xd9   : > { %v522_v63 = vadd.f32 %v521_v56, %v520_v60  ;;  %v577_v16 = vadd.f32 %v576_v9, %v575_v11  ;;  %v582_v30 = vsel %vm513_vm1, %v561_v13, 0.0  ;;  %v535_v37 = vsel %vm513_vm1, %v1195_v47, 0.0 }
  0xda   : > { %v564_v38 = vmul.f32 %v1179_v31, %v1179_v31  ;;  %v584_v41 = vsel %vm513_vm1, %v562_v18, 0.0  ;;  %v537_v46 = vsel %vm513_vm1, %v1173_v24, 0.0  ;;  %v565_v49 = vmul.f32 %v1187_v39, %v1187_v39 }
  0xdb   : > { %v524_v5 = vadd.f32 %v523_v61, %v522_v63  ;;  %v579_v25 = vadd.f32 %v578_v14, %v577_v16  ;;  %v586_v50 = vsel %vm513_vm1, %v563_v29, 0.0  ;;  %v539_v53 = vsel %vm513_vm1, %v1181_v32, 0.0 }
  0xdc   : > { %v566_v54 = vmul.f32 %v1195_v47, %v1195_v47  ;;  %v588_v55 = vsel %vm513_vm1, %v564_v38, 0.0  ;;  %v541_v58 = vsel %vm513_vm1, %v1189_v40, 0.0  ;;  %v567_v59 = vmul.f32 %v1173_v24, %v1173_v24 }
  0xdd   : > { %v526_v10 = vadd.f32 %v525_v0, %v524_v5  ;;  %v581_v34 = vadd.f32 %v580_v21, %v579_v25  ;;  %v590_v60 = vsel %vm513_vm1, %v565_v49, 0.0  ;;  %v543_v63 = vsel %vm513_vm1, %v1197_v48, 0.0 }
  0xde   : > { %v568_v0 = vmul.f32 %v1181_v32, %v1181_v32  ;;  %v592_v1 = vsel %vm513_vm1, %v566_v54, 0.0  ;;  %v569_v4 = vmul.f32 %v1189_v40, %v1189_v40  ;;  %v594_v5 = vsel %vm513_vm1, %v567_v59, 0.0 }
  0xdf   : > { %v528_v15 = vadd.f32 %v527_v7, %v526_v10  ;;  %v583_v45 = vadd.f32 %v582_v30, %v581_v34  ;;  %v570_v8 = vmul.f32 %v1197_v48, %v1197_v48  ;;  %vm552_vm2 = vcmask 122880  }
  0xe0   : > { %v596_v9 = vsel %vm513_vm1, %v568_v0, 0.0 }
  0xe1   : > { %v530_v22 = vadd.f32 %v529_v12, %v528_v15  ;;  %v585_v52 = vadd.f32 %v584_v41, %v583_v45  ;;  %v598_v12 = vsel %vm513_vm1, %v569_v4, 0.0  ;;  %v600_v15 = vsel %vm513_vm1, %v570_v8, 0.0  ;;  %v554_v41 = vld [vmem:[#allocation3] sm:$0x1] }
  0xe3   : > { %v532_v33 = vadd.f32 %v531_v17, %v530_v22  ;;  %v587_v57 = vadd.f32 %v586_v50, %v585_v52 }
  0xe5   : > { %v534_v42 = vadd.f32 %v533_v26, %v532_v33  ;;  %v589_v62 = vadd.f32 %v588_v55, %v587_v57  ;;  %v512_v26 = vld [vmem:[#allocation2] sm:$0x1] }
  0xe7   : > { %v536_v51 = vadd.f32 %v535_v37, %v534_v42  ;;  %v591_v3 = vadd.f32 %v590_v60, %v589_v62 }
  0xe9   : > { %v538_v56 = vadd.f32 %v537_v46, %v536_v51  ;;  %v593_v7 = vadd.f32 %v592_v1, %v591_v3 }
  0xeb   : > { %v540_v61 = vadd.f32 %v539_v53, %v538_v56  ;;  %v595_v11 = vadd.f32 %v594_v5, %v593_v7 }
  0xed   : > { %v542_v2 = vadd.f32 %v541_v58, %v540_v61  ;;  %v597_v14 = vadd.f32 %v596_v9, %v595_v11 }
  0xef   : > { %v544_v6 = vadd.f32 %v543_v63, %v542_v2  ;;  %v599_v17 = vadd.f32 %v598_v12, %v597_v14 }
  0xf1   : > { %v545_v10 = vrot.slane %v544_v6, 4  ;;  %v601_v21 = vadd.f32 %v600_v15, %v599_v17 }
  0xf3   : > { %v546_v13 = vadd.f32 %v545_v10, %v544_v6  ;;  %v602_v25 = vrot.slane %v601_v21, 4 }
  0xf5   : > { %v547_v16 = vrot.slane %v546_v13, 2  ;;  %v603_v30 = vadd.f32 %v602_v25, %v601_v21 }
  0xf7   : > { %v548_v18 = vadd.f32 %v547_v16, %v546_v13  ;;  %v604_v34 = vrot.slane %v603_v30, 2 }
  0xf9   : > { %v549_v22 = vrot.slane %v548_v18, 1  ;;  %v605_v37 = vadd.f32 %v604_v34, %v603_v30 }
  0xfb   : > { %v550_v29 = vadd.f32 %v549_v22, %v548_v18  ;;  %v606_v38 = vrot.slane %v605_v37, 1 }
  0xfd   : > { %v551_v33 = vadd.f32 %v550_v29, %v512_v26  ;;  %v607_v42 = vadd.f32 %v606_v38, %v605_v37 }
  0xff   : > { %553 = vst.msk [vmem:[#allocation2] sm:$0x1] %vm552_vm2, %v551_v33  ;;  %v608_v45 = vadd.f32 %v607_v42, %v554_v41 }
 0x101   : > { %609 = vst.msk [vmem:[#allocation3] sm:$0x1] %vm552_vm2, %v608_v45 }
 0x102 PF: > { %p966_p6 = scmp.ne.s32.totalorder %s1054_s18, 1 }
 0x104   : > { %613 = sbr.rel (%p966_p6) target bundleno = 329 (0x149), region = 52 }
 0x109   : > { %v614_v46 = vld [vmem:[#allocation2] sm:$0x1]  ;;  %v616_v49 = vld [vmem:[#allocation3] sm:$0x1]  ;;  %vm739_vm6 = vcmask 125952  }
 0x10a   : > { %v615_v50 = vmul.f32 0.0078125, %v614_v46  ;;  %v617_v51 = vmul.f32 0.0078125, %v616_v49  ;;  %v632_v62 = vld [vmem:[%s1417_s3] sm:$0x1] }
 0x10b   : > { %v634_v1 = vld [vmem:[%s1418_s4] sm:$0x1] }
 0x10c   : > { %v618_v52 = vmul.f32 %v615_v50, %v615_v50 }
 0x10e   : > { %v619_v53 = vsub.f32 %v617_v51, %v618_v52 }
 0x110   : > { %v620_v54 = vmax.f32 %v619_v53, 0.0 }
 0x112   : > { %v621_v55 = vadd.f32 1e-05, %v620_v54 }
 0x114   : > { %1038 = vrsqrt.f32 %v621_v55  ;;  %vm628_vm3 = vweird.f32 %v621_v55 }
 0x11a   : > { %v1039_v56 = vpop.eup %1038 }
 0x11b   : > { %v623_v57 = vmul.f32 %v1039_v56, %v621_v55  ;;  %vm629_vm4 = vweird.f32 %v1039_v56 }
 0x11c   : > { %vm630_vm5 = vmor %vm628_vm3, %vm629_vm4 }
 0x11d   : > { %v624_v58 = vmul.f32 %v1039_v56, %v623_v57 }
 0x11f   : > { %v625_v59 = vmul.f32 0.5, %v624_v58 }
 0x121   : > { %v626_v60 = vsub.f32 1.5, %v625_v59 }
 0x123   : > { %v627_v61 = vmul.f32 %v1039_v56, %v626_v60 }
 0x125   : > { %v631_v63 = vsel %vm630_vm5, %v1039_v56, %v627_v61 }
 0x126   : > { %v633_v0 = vmul.f32 %v632_v62, %v631_v63 }
 0x128   : > { %v635_v2 = vmul.f32 %v633_v0, %v615_v50  ;;  %v1289_v3 = vperm.slane %v633_v0, 0 }
 0x12a   : > { %v636_v4 = vsub.f32 %v634_v1, %v635_v2  ;;  %v640_v5 = vmul.f32 %v1289_v3, %v1167_v19  ;;  %v641_v6 = vmul.f32 %v1289_v3, %v1175_v27  ;;  %v642_v7 = vmul.f32 %v1289_v3, %v1183_v35 }
 0x12b   : > { %v643_v8 = vmul.f32 %v1289_v3, %v1191_v43  ;;  %v644_v9 = vmul.f32 %v1289_v3, %v1169_v20  ;;  %v645_v10 = vmul.f32 %v1289_v3, %v1177_v28  ;;  %v646_v11 = vmul.f32 %v1289_v3, %v1185_v36 }
 0x12c   : > { %v1305_v19 = vperm.slane %v636_v4, 0  ;;  %v647_v27 = vmul.f32 %v1289_v3, %v1193_v44  ;;  %v648_v35 = vmul.f32 %v1289_v3, %v1171_v23  ;;  %v649_v43 = vmul.f32 %v1289_v3, %v1179_v31 }
 0x12d   : > { %v650_v20 = vmul.f32 %v1289_v3, %v1187_v39  ;;  %v651_v28 = vmul.f32 %v1289_v3, %v1195_v47  ;;  %v652_v36 = vmul.f32 %v1289_v3, %v1173_v24  ;;  %v653_v12 = vmul.f32 %v1289_v3, %v1181_v32 }
 0x12e   : > { %v659_v44 = vadd.f32 %v1305_v19, %v640_v5  ;;  %v660_v13 = vadd.f32 %v1305_v19, %v641_v6  ;;  %v661_v23 = vadd.f32 %v1305_v19, %v642_v7  ;;  %v662_v31 = vadd.f32 %v1305_v19, %v643_v8 }
 0x12f   : > { %v663_v14 = vadd.f32 %v1305_v19, %v644_v9  ;;  %v664_v39 = vadd.f32 %v1305_v19, %v645_v10  ;;  %v665_v47 = vadd.f32 %v1305_v19, %v646_v11  ;;  %v666_v15 = vadd.f32 %v1305_v19, %v647_v27 }
 0x130   : > { %vm675_vm7 = vcmp.gt.f32.partialorder %v659_v44, 0.0  ;;  %v691_v24 = vmul.f32 0.2, %v659_v44  ;;  %vm676_vm8 = vcmp.gt.f32.partialorder %v660_v13, 0.0  ;;  %v692_v32 = vmul.f32 0.2, %v660_v13 }
 0x131   : > { %vm677_vm9 = vcmp.gt.f32.partialorder %v661_v23, 0.0  ;;  %v693_v16 = vmul.f32 0.2, %v661_v23  ;;  %vm678_vm10 = vcmp.gt.f32.partialorder %v662_v31, 0.0  ;;  %v694_v17 = vmul.f32 0.2, %v662_v31 }
 0x132   : > { %v707_v18 = vsel %vm675_vm7, %v659_v44, %v691_v24  ;;  %v708_v21 = vsel %vm676_vm8, %v660_v13, %v692_v32  ;;  %vm679_vm11 = vcmp.gt.f32.partialorder %v663_v14, 0.0  ;;  %v695_v22 = vmul.f32 0.2, %v663_v14 }
 0x133   : > { %v723_v25 = vpack.c.bf16 %v707_v18, %v707_v18  ;;  %v724_v26 = vpack.c.bf16 %v708_v21, %v708_v21  ;;  %v709_v29 = vsel %vm677_vm9, %v661_v23, %v693_v16  ;;  %v710_v30 = vsel %vm678_vm10, %v662_v31, %v694_v17 }
 0x134   : > { %v725_v33 = vpack.c.bf16 %v709_v29, %v709_v29  ;;  %v726_v34 = vpack.c.bf16 %v710_v30, %v710_v30  ;;  %v711_v37 = vsel %vm679_vm11, %v663_v14, %v695_v22  ;;  %vm680_vm12 = vcmp.gt.f32.partialorder %v664_v39, 0.0 }
 0x135   : > { %740 = vst.msk [vmem:[%s1419_s5] sm:$0xf] %vm739_vm6, %v723_v25  ;;  %v727_v38 = vpack.c.bf16 %v711_v37, %v711_v37  ;;  %v696_v41 = vmul.f32 0.2, %v664_v39  ;;  %vm681_vm13 = vcmp.gt.f32.partialorder %v665_v47, 0.0  ;;  %vm682_vm14 = vcmp.gt.f32.partialorder %v666_v15, 0.0 }
 0x136   : > { %741 = vst.msk [vmem:[%s1419_s5 + $0x4] sm:$0xf] %vm739_vm6, %v724_v26  ;;  %v697_v42 = vmul.f32 0.2, %v665_v47  ;;  %v698_v45 = vmul.f32 0.2, %v666_v15  ;;  %v667_v46 = vadd.f32 %v1305_v19, %v648_v35  ;;  %v668_v49 = vadd.f32 %v1305_v19, %v649_v43 }
 0x137   : > { %742 = vst.msk [vmem:[%s1419_s5 + $0x8] sm:$0xf] %vm739_vm6, %v725_v33  ;;  %v712_v50 = vsel %vm680_vm12, %v664_v39, %v696_v41  ;;  %v669_v51 = vadd.f32 %v1305_v19, %v650_v20  ;;  %v670_v52 = vadd.f32 %v1305_v19, %v651_v28  ;;  %v671_v53 = vadd.f32 %v1305_v19, %v652_v36 }
 0x138   : > { %743 = vst.msk [vmem:[%s1419_s5 + $0xc] sm:$0xf] %vm739_vm6, %v726_v34  ;;  %v728_v54 = vpack.c.bf16 %v712_v50, %v712_v50  ;;  %v713_v55 = vsel %vm681_vm13, %v665_v47, %v697_v42  ;;  %v714_v56 = vsel %vm682_vm14, %v666_v15, %v698_v45  ;;  %vm683_vm15 = vcmp.gt.f32.partialorder %v667_v46, 0.0 }
 0x139   : > { %744 = vst.msk [vmem:[%s1419_s5 + $0x10] sm:$0xf] %vm739_vm6, %v727_v38  ;;  %v729_v57 = vpack.c.bf16 %v713_v55, %v713_v55  ;;  %v730_v58 = vpack.c.bf16 %v714_v56, %v714_v56  ;;  %v699_v59 = vmul.f32 0.2, %v667_v46  ;;  %vm684_vm0 = vcmp.gt.f32.partialorder %v668_v49, 0.0 }
 0x13a   : > { %745 = vst.msk [vmem:[%s1419_s5 + $0x14] sm:$0xf] %vm739_vm6, %v728_v54  ;;  %v700_v60 = vmul.f32 0.2, %v668_v49  ;;  %vm685_vm1 = vcmp.gt.f32.partialorder %v669_v51, 0.0  ;;  %vm686_vm2 = vcmp.gt.f32.partialorder %v670_v52, 0.0  ;;  %v672_v61 = vadd.f32 %v1305_v19, %v653_v12 }
 0x13b   : > { %746 = vst.msk [vmem:[%s1419_s5 + $0x18] sm:$0xf] %vm739_vm6, %v729_v57  ;;  %v715_v62 = vsel %vm683_vm15, %v667_v46, %v699_v59  ;;  %v701_v63 = vmul.f32 0.2, %v669_v51  ;;  %v702_v0 = vmul.f32 0.2, %v670_v52  ;;  %v654_v1 = vmul.f32 %v1289_v3, %v1189_v40 }
 0x13c   : > { %747 = vst.msk [vmem:[%s1419_s5 + $0x1c] sm:$0xf] %vm739_vm6, %v730_v58  ;;  %v731_v2 = vpack.c.bf16 %v715_v62, %v715_v62  ;;  %v716_v4 = vsel %vm684_vm0, %v668_v49, %v700_v60  ;;  %vm687_vm3 = vcmp.gt.f32.partialorder %v671_v53, 0.0  ;;  %v703_v5 = vmul.f32 0.2, %v671_v53 }
 0x13d   : > { %v732_v6 = vpack.c.bf16 %v716_v4, %v716_v4  ;;  %v717_v7 = vsel %vm685_vm1, %v669_v51, %v701_v63  ;;  %v718_v8 = vsel %vm686_vm2, %v670_v52, %v702_v0  ;;  %vm688_vm4 = vcmp.gt.f32.partialorder %v672_v61, 0.0 }
 0x13e   : > { %748 = vst.msk [vmem:[%s1419_s5 + $0x20] sm:$0xf] %vm739_vm6, %v731_v2  ;;  %v733_v9 = vpack.c.bf16 %v717_v7, %v717_v7  ;;  %v734_v40 = vpack.c.bf16 %v718_v8, %v718_v8  ;;  %v719_v10 = vsel %vm687_vm3, %v671_v53, %v703_v5  ;;  %v704_v11 = vmul.f32 0.2, %v672_v61 }
 0x13f   : > { %749 = vst.msk [vmem:[%s1419_s5 + $0x24] sm:$0xf] %vm739_vm6, %v732_v6  ;;  %v735_v27 = vpack.c.bf16 %v719_v10, %v719_v10  ;;  %v673_v35 = vadd.f32 %v1305_v19, %v654_v1  ;;  %v655_v43 = vmul.f32 %v1289_v3, %v1197_v48 }
 0x140   : > { %750 = vst.msk [vmem:[%s1419_s5 + $0x28] sm:$0xf] %vm739_vm6, %v733_v9  ;;  %v720_v20 = vsel %vm688_vm4, %v672_v61, %v704_v11 }
 0x141   : > { %751 = vst.msk [vmem:[%s1419_s5 + $0x2c] sm:$0xf] %vm739_vm6, %v734_v40  ;;  %v736_v28 = vpack.c.bf16 %v720_v20, %v720_v20  ;;  %vm689_vm5 = vcmp.gt.f32.partialorder %v673_v35, 0.0  ;;  %v705_v36 = vmul.f32 0.2, %v673_v35  ;;  %v674_v12 = vadd.f32 %v1305_v19, %v655_v43 }
 0x142   : > { %752 = vst.msk [vmem:[%s1419_s5 + $0x30] sm:$0xf] %vm739_vm6, %v735_v27 }
 0x143   : > { %753 = vst.msk [vmem:[%s1419_s5 + $0x34] sm:$0xf] %vm739_vm6, %v736_v28  ;;  %v721_v48 = vsel %vm689_vm5, %v673_v35, %v705_v36  ;;  %vm690_vm7 = vcmp.gt.f32.partialorder %v674_v12, 0.0  ;;  %v706_v3 = vmul.f32 0.2, %v674_v12 }
 0x144   : > { %v737_v44 = vpack.c.bf16 %v721_v48, %v721_v48 }
 0x145   : > { %v722_v13 = vsel %vm690_vm7, %v674_v12, %v706_v3 }
 0x146   : > { %754 = vst.msk [vmem:[%s1419_s5 + $0x38] sm:$0xf] %vm739_vm6, %v737_v44  ;;  %v738_v19 = vpack.c.bf16 %v722_v13, %v722_v13 }
 0x148   : > { %755 = vst.msk [vmem:[%s1419_s5 + $0x3c] sm:$0xf] %vm739_vm6, %v738_v19 }
 0x149 PF: > { %s15_s20 = sadd.s32 1, %s1062_s20   ;;  %s1420_s18 = smov %s1058_s19 }
 0x14a   : > { %p12_p7 = scmp.ge.s32.totalorder %s15_s20, 4   ;;  %s1421_s19 = smov %s1423_s21 }
 0x14c   :  { %14 = sbr.rel (!%p12_p7) target bundleno = 2 (0x2), region = 94 }

// kernel: discriminator_forward.8
= control target key start
LH: loop header
LB: loop body
LE: loop exit
PB: predicated region body
PF: predicated region fallthrough
CT: control target
= control target key end

     0   :  { %s979_s18 = smov 0   ;;  %s981_s19 = smov 0   ;;  %s1130_s0 = inlined_call_operand.vmem [shape: bf16[32,256], index: 0, kind: input, shape index: {}]   ;;  %s1131_s1 = inlined_call_operand.vmem [shape: bf16[256,32], index: 1, kind: input, shape index: {}]   ;;  %s1132_s2 = inlined_call_operand.vmem [shape: f32[1,32], index: 2, kind: input, shape index: {}]   ;;  %s1133_s3 = inlined_call_operand.vmem [shape: f32[1,32], index: 3, kind: input, shape index: {}]   ;;  %s1134_s4 = inlined_call_operand.vmem [shape: f32[1,32], index: 4, kind: input, shape index: {}]   ;;  %s1135_s5 = inlined_call_operand.vmem [shape: bf16[32,32], index: 5, kind: output, shape index: {}]  }
   0x1   :  { %s983_s20 = smov 0  }
   0x2 LB: > { %s30_s21 = sadd.s32 1, %s942_s19  ;;  %p771_p0 = scmp.ge.s32.totalorder %s946_s20, 1  ;;  %s946_s20 = sphi %s983_s20, %s15_s20   ;;  %s942_s19 = sphi %s981_s19, %s1137_s19   ;;  %s938_s18 = sphi %s979_s18, %s1136_s18  }
   0x3   : > { %p32_p1 = scmp.ge.s32.totalorder %s30_s21, 2  ;;  %p245_p2 = scmp.lt.s32.totalorder %s946_s20, 3 }
   0x5   : > { %s1139_s21 = smov (%p32_p1, %s30_s21), 0  ;;  %p246_p3 = pnand %p771_p0, %p245_p2 }
   0x6   : > { %p516_p4 = scmp.eq.s32.totalorder (!%p246_p3), %s938_s18, 0 }
   0x7   : > { %249 = sbr.rel (%p246_p3) target bundleno = 273 (0x111), region = 40 }
   0xc   : > { %v870_v0 = vld [vmem:[%s1131_s1 + $0x38] sm:$0xff]  ;;  %v869_v2 = vld [vmem:[%s1131_s1 + $0x30] sm:$0xff]  ;;  %v868_v4 = vld [vmem:[%s1131_s1 + $0x28] sm:$0xff]  ;;  %vm522_vm0 = vcmask (%p516_p4), 253952   ;;  %v948_v45 = vmov (%p516_p4), 0.0  }
   0xd   : > { %v878_v1 = vld [vmem:[%s1131_s1 + $0x78] sm:$0xff]  ;;  %478 = vmatpush.bf16.msra.mxu0 %v870_v0  ;;  %880 = vmatpush.bf16.msra.mxu2 %v870_v0  ;;  %v877_v3 = vld [vmem:[%s1131_s1 + $0x70] sm:$0xff]  ;;  %v876_v5 = vld [vmem:[%s1131_s1 + $0x68] sm:$0xff]  ;;  %523 = vst.msk [vmem:[#allocation2] sm:$0x1] (%p516_p4), %vm522_vm0, %v948_v45 }
   0xe   : > { %497 = vmatpush.bf16.msra.mxu1 %v878_v1  ;;  %888 = vmatpush.bf16.msra.mxu3 %v878_v1  ;;  %v867_v6 = vld [vmem:[%s1131_s1 + $0x20] sm:$0xff]  ;;  %v866_v8 = vld [vmem:[%s1131_s1 + $0x18] sm:$0xff]  ;;  %v865_v10 = vld [vmem:[%s1131_s1 + $0x10] sm:$0xff]  ;;  %524 = vst.msk [vmem:[#allocation3] sm:$0x1] (%p516_p4), %vm522_vm0, %v948_v45 }
   0xf   : > { %v875_v7 = vld [vmem:[%s1131_s1 + $0x60] sm:$0xff]  ;;  %v874_v9 = vld [vmem:[%s1131_s1 + $0x58] sm:$0xff]  ;;  %v873_v11 = vld [vmem:[%s1131_s1 + $0x50] sm:$0xff] }
  0x10   : > { %v864_v12 = vld [vmem:[%s1131_s1 + $0x8] sm:$0xff]  ;;  %v863_v14 = vld [vmem:[%s1131_s1] sm:$0xff]  ;;  %v782_v18 = vld [vmem:[%s1130_s0 + $0x10] sm:$0xf] }
  0x11   : > { %479 = vmatpush.bf16.msra.mxu0 %v869_v2  ;;  %881 = vmatpush.bf16.msra.mxu2 %v869_v2  ;;  %v872_v13 = vld [vmem:[%s1131_s1 + $0x48] sm:$0xff]  ;;  %v871_v15 = vld [vmem:[%s1131_s1 + $0x40] sm:$0xff]  ;;  %v862_v19 = vld [vmem:[%s1130_s0 + $0x14] sm:$0xf0] }
  0x12   : > { %498 = vmatpush.bf16.msra.mxu1 %v877_v3  ;;  %889 = vmatpush.bf16.msra.mxu3 %v877_v3  ;;  %v774_v16 = vld [vmem:[%s1130_s0] sm:$0xf]  ;;  %v860_v17 = vld [vmem:[%s1130_s0 + $0x4] sm:$0xf0]  ;;  %v859_v20 = vld [vmem:[%s1130_s0 + $0x4] sm:$0xf]  ;;  %v783_v25 = vor.u32 %v862_v19, %v782_v18 }
  0x13   : > { %v776_v21 = vld [vmem:[%s1130_s0 + $0x8] sm:$0xf0]  ;;  %v861_v22 = vld [vmem:[%s1130_s0 + $0x14] sm:$0xf]  ;;  %v784_v23 = vld [vmem:[%s1130_s0 + $0x18] sm:$0xf0]  ;;  %v775_v24 = vor.u32 %v860_v17, %v774_v16 }
  0x14   : > { %v779_v26 = vor.u32 %v859_v20, %v776_v21  ;;  %v787_v27 = vor.u32 %v861_v22, %v784_v23  ;;  %v921_v28 = vld [vmem:[%s1132_s2] ss:$0 sm:$0xff] }
  0x15   : > { %480 = vmatpush.bf16.msra.mxu0 %v868_v4  ;;  %882 = vmatpush.bf16.msra.mxu2 %v868_v4 }
  0x16   : > { %499 = vmatpush.bf16.msra.mxu1 %v876_v5  ;;  %890 = vmatpush.bf16.msra.mxu3 %v876_v5 }
  0x19   : > { %481 = vmatpush.bf16.msra.mxu0 %v867_v6  ;;  %883 = vmatpush.bf16.msra.mxu2 %v867_v6 }
  0x1a   : > { %500 = vmatpush.bf16.msra.mxu1 %v875_v7  ;;  %891 = vmatpush.bf16.msra.mxu3 %v875_v7 }
  0x1d   : > { %482 = vmatpush.bf16.msra.mxu0 %v866_v8  ;;  %884 = vmatpush.bf16.msra.mxu2 %v866_v8 }
  0x1e   : > { %501 = vmatpush.bf16.msra.mxu1 %v874_v9  ;;  %892 = vmatpush.bf16.msra.mxu3 %v874_v9 }
  0x21   : > { %483 = vmatpush.bf16.msra.mxu0 %v865_v10  ;;  %885 = vmatpush.bf16.msra.mxu2 %v865_v10 }
  0x22   : > { %502 = vmatpush.bf16.msra.mxu1 %v873_v11  ;;  %893 = vmatpush.bf16.msra.mxu3 %v873_v11 }
  0x25   : > { %484 = vmatpush.bf16.msra.mxu0 %v864_v12  ;;  %886 = vmatpush.bf16.msra.mxu2 %v864_v12 }
  0x26   : > { %503 = vmatpush.bf16.msra.mxu1 %v872_v13  ;;  %894 = vmatpush.bf16.msra.mxu3 %v872_v13 }
  0x29   : > { %485 = vmatpush.bf16.msra.mxu0 %v863_v14  ;;  %887 = vmatpush.bf16.msra.mxu2 %v863_v14 }
  0x2a   : > { %504 = vmatpush.bf16.msra.mxu1 %v871_v15  ;;  %895 = vmatpush.bf16.msra.mxu3 %v871_v15 }
  0x2c   : > { %486 = vmatmul.bf16.vlgmr.msra.gmra.mxu0 %v775_v24  ;;  %491 = vmatmul.bf16.vlgmr.msra.gmra.mxu2 %v783_v25 }
  0x2d   : > { %505 = vmatmul.bf16.vlgmr.msra.gmra.mxu1 %v779_v26  ;;  %510 = vmatmul.bf16.vlgmr.msra.gmra.mxu3 %v787_v27 }
  0xa9   : > { %v487_v29 = vpop.f32.mrf.mxu0 }
  0xaa   : > { %v488_v30 = vadd.f32 %v921_v28, %v487_v29  ;;  %v506_v31 = vpop.f32.mrf.mxu1 }
  0xac   : > { %v1075_v32 = vadd.f32 %v506_v31, %v488_v30 }
  0xaf   : > { %v492_v33 = vpop.f32.mrf.mxu2 }
  0xb0   : > { %v493_v34 = vadd.f32 %v921_v28, %v492_v33  ;;  %v511_v35 = vpop.f32.mrf.mxu3 }
  0xb1   : > { %v489_v36 = vpop.f32.mrf.mxu0 }
  0xb2   : > { %v1077_v37 = vadd.f32 %v511_v35, %v493_v34  ;;  %v490_v38 = vadd.f32 %v921_v28, %v489_v36  ;;  %v508_v39 = vpop.f32.mrf.mxu1 }
  0xb4   : > { %v1079_v40 = vadd.f32 %v508_v39, %v490_v38 }
  0xb6   : > { %521 = sbr.rel (!%p516_p4) target bundleno = 187 (0xbb), region = 44 }
  0xb7   : > { %v494_v41 = vpop.f32.mrf.mxu2 }
  0xb8   : > { %v495_v42 = vadd.f32 %v921_v28, %v494_v41  ;;  %v513_v43 = vpop.f32.mrf.mxu3 }
  0xba   : > { %v1081_v44 = vadd.f32 %v513_v43, %v495_v42 }
  0xbb PF: > { %p853_p5 = scmp.ne.s32.totalorder %s938_s18, 0 }
  0xbd   : > { %527 = sbr.rel (%p853_p5) target bundleno = 218 (0xda), region = 48 }
  0xc2   : > { %vm529_vm1 = vcmask 261120   ;;  %v547_v46 = vmul.f32 %v1075_v32, %v1075_v32  ;;  %v548_v47 = vmul.f32 %v1079_v40, %v1079_v40  ;;  %v549_v52 = vmul.f32 %v1077_v37, %v1077_v37  ;;  %v528_v9 = vld [vmem:[#allocation2] sm:$0x1]  ;;  %v546_v12 = vld [vmem:[#allocation3] sm:$0x1] }
  0xc3   : > { %v530_v48 = vsel %vm529_vm1, %v1075_v32, 0.0  ;;  %v531_v49 = vsel %vm529_vm1, %v1079_v40, 0.0  ;;  %v533_v50 = vsel %vm529_vm1, %v1077_v37, 0.0  ;;  %v550_v53 = vmul.f32 %v1081_v44, %v1081_v44 }
  0xc4   : > { %v532_v51 = vadd.f32 %v531_v49, %v530_v48  ;;  %v551_v54 = vsel %vm529_vm1, %v547_v46, 0.0  ;;  %v535_v55 = vsel %vm529_vm1, %v1081_v44, 0.0  ;;  %v552_v56 = vsel %vm529_vm1, %v548_v47, 0.0 }
  0xc5   : > { %v553_v58 = vadd.f32 %v552_v56, %v551_v54  ;;  %v554_v59 = vsel %vm529_vm1, %v549_v52, 0.0  ;;  %v556_v60 = vsel %vm529_vm1, %v550_v53, 0.0  ;;  %vm544_vm2 = vcmask 253952  }
  0xc6   : > { %v534_v57 = vadd.f32 %v533_v50, %v532_v51 }
  0xc7   : > { %v555_v62 = vadd.f32 %v554_v59, %v553_v58 }
  0xc8   : > { %v536_v61 = vadd.f32 %v535_v55, %v534_v57 }
  0xc9   : > { %v557_v0 = vadd.f32 %v556_v60, %v555_v62 }
  0xca   : > { %v537_v63 = vrot.slane %v536_v61, 4 }
  0xcb   : > { %v558_v2 = vrot.slane %v557_v0, 4 }
  0xcc   : > { %v538_v1 = vadd.f32 %v537_v63, %v536_v61 }
  0xcd   : > { %v559_v4 = vadd.f32 %v558_v2, %v557_v0 }
  0xce   : > { %v539_v3 = vrot.slane %v538_v1, 2 }
  0xcf   : > { %v560_v6 = vrot.slane %v559_v4, 2 }
  0xd0   : > { %v540_v5 = vadd.f32 %v539_v3, %v538_v1 }
  0xd1   : > { %v561_v8 = vadd.f32 %v560_v6, %v559_v4 }
  0xd2   : > { %v541_v7 = vrot.slane %v540_v5, 1 }
  0xd3   : > { %v562_v11 = vrot.slane %v561_v8, 1 }
  0xd4   : > { %v542_v10 = vadd.f32 %v541_v7, %v540_v5 }
  0xd5   : > { %v563_v14 = vadd.f32 %v562_v11, %v561_v8 }
  0xd6   : > { %v543_v13 = vadd.f32 %v542_v10, %v528_v9 }
  0xd7   : > { %v564_v15 = vadd.f32 %v563_v14, %v546_v12 }
  0xd8   : > { %545 = vst.msk [vmem:[#allocation2] sm:$0x1] %vm544_vm2, %v543_v13 }
  0xd9   : > { %565 = vst.msk [vmem:[#allocation3] sm:$0x1] %vm544_vm2, %v564_v15 }
  0xda PF: > { %p854_p6 = scmp.ne.s32.totalorder %s938_s18, 1 }
  0xdc   : > { %569 = sbr.rel (%p854_p6) target bundleno = 273 (0x111), region = 52 }
  0xe1   : > { %v570_v16 = vld [vmem:[#allocation2] sm:$0x1]  ;;  %v572_v17 = vld [vmem:[#allocation3] sm:$0x1]  ;;  %vm623_vm10 = vcmask 257024  }
  0xe2   : > { %v571_v18 = vmul.f32 0.03125, %v570_v16  ;;  %v573_v19 = vmul.f32 0.03125, %v572_v17  ;;  %v588_v30 = vld [vmem:[%s1133_s3] sm:$0x1] }
  0xe3   : > { %v590_v34 = vld [vmem:[%s1134_s4] sm:$0x1] }
  0xe4   : > { %v574_v20 = vmul.f32 %v571_v18, %v571_v18 }
  0xe6   : > { %v575_v21 = vsub.f32 %v573_v19, %v574_v20 }
  0xe8   : > { %v576_v22 = vmax.f32 %v575_v21, 0.0 }
  0xea   : > { %v577_v23 = vadd.f32 1e-05, %v576_v22 }
  0xec   : > { %922 = vrsqrt.f32 %v577_v23  ;;  %vm584_vm3 = vweird.f32 %v577_v23 }
  0xf2   : > { %v923_v24 = vpop.eup %922 }
  0xf3   : > { %v579_v25 = vmul.f32 %v923_v24, %v577_v23  ;;  %vm585_vm4 = vweird.f32 %v923_v24 }
  0xf4   : > { %vm586_vm5 = vmor %vm584_vm3, %vm585_vm4 }
  0xf5   : > { %v580_v26 = vmul.f32 %v923_v24, %v579_v25 }
  0xf7   : > { %v581_v27 = vmul.f32 0.5, %v580_v26 }
  0xf9   : > { %v582_v28 = vsub.f32 1.5, %v581_v27 }
  0xfb   : > { %v583_v29 = vmul.f32 %v923_v24, %v582_v28 }
  0xfd   : > { %v587_v31 = vsel %vm586_vm5, %v923_v24, %v583_v29 }
  0xfe   : > { %v589_v33 = vmul.f32 %v588_v30, %v587_v31 }
 0x100   : > { %v591_v35 = vmul.f32 %v589_v33, %v571_v18  ;;  %v594_v36 = vperm.slane %v589_v33, 0 }
 0x102   : > { %v592_v38 = vsub.f32 %v590_v34, %v591_v35  ;;  %v596_v39 = vmul.f32 %v594_v36, %v1075_v32  ;;  %v597_v41 = vmul.f32 %v594_v36, %v1079_v40  ;;  %v598_v42 = vmul.f32 %v594_v36, %v1077_v37 }
 0x103   : > { %v599_v43 = vmul.f32 %v594_v36, %v1081_v44 }
 0x104   : > { %v601_v45 = vperm.slane %v592_v38, 0 }
 0x106   : > { %v603_v46 = vadd.f32 %v601_v45, %v596_v39  ;;  %v604_v47 = vadd.f32 %v601_v45, %v597_v41  ;;  %v605_v48 = vadd.f32 %v601_v45, %v598_v42  ;;  %v606_v49 = vadd.f32 %v601_v45, %v599_v43 }
 0x108   : > { %vm607_vm6 = vcmp.gt.f32.partialorder %v603_v46, 0.0  ;;  %v611_v50 = vmul.f32 0.2, %v603_v46  ;;  %vm608_vm7 = vcmp.gt.f32.partialorder %v604_v47, 0.0  ;;  %v612_v51 = vmul.f32 0.2, %v604_v47 }
 0x109   : > { %vm609_vm8 = vcmp.gt.f32.partialorder %v605_v48, 0.0  ;;  %v613_v52 = vmul.f32 0.2, %v605_v48  ;;  %vm610_vm9 = vcmp.gt.f32.partialorder %v606_v49, 0.0  ;;  %v614_v53 = vmul.f32 0.2, %v606_v49 }
 0x10a   : > { %v615_v32 = vsel %vm607_vm6, %v603_v46, %v611_v50  ;;  %v616_v40 = vsel %vm608_vm7, %v604_v47, %v612_v51 }
 0x10b   : > { %v619_v54 = vpack.c.bf16 %v615_v32, %v615_v32  ;;  %v620_v37 = vpack.c.bf16 %v616_v40, %v616_v40  ;;  %v617_v55 = vsel %vm609_vm8, %v605_v48, %v613_v52  ;;  %v618_v44 = vsel %vm610_vm9, %v606_v49, %v614_v53 }
 0x10c   : > { %v621_v56 = vpack.c.bf16 %v617_v55, %v617_v55  ;;  %v622_v57 = vpack.c.bf16 %v618_v44, %v618_v44 }
 0x10d   : > { %624 = vst.msk [vmem:[%s1135_s5] sm:$0xf] %vm623_vm10, %v619_v54 }
 0x10e   : > { %625 = vst.msk [vmem:[%s1135_s5 + $0x4] sm:$0xf] %vm623_vm10, %v620_v37 }
 0x10f   : > { %626 = vst.msk [vmem:[%s1135_s5 + $0x8] sm:$0xf] %vm623_vm10, %v621_v56 }
 0x110   : > { %627 = vst.msk [vmem:[%s1135_s5 + $0xc] sm:$0xf] %vm623_vm10, %v622_v57 }
 0x111 PF: > { %s15_s20 = sadd.s32 1, %s946_s20   ;;  %s1136_s18 = smov %s942_s19 }
 0x112   : > { %p12_p7 = scmp.ge.s32.totalorder %s15_s20, 4   ;;  %s1137_s19 = smov %s1139_s21 }
 0x114   :  { %14 = sbr.rel (!%p12_p7) target bundleno = 2 (0x2), region = 94 }

// kernel: discriminator_forward.9
= control target key start
LH: loop header
LB: loop body
LE: loop exit
PB: predicated region body
PF: predicated region fallthrough
CT: control target
= control target key end

     0   :  { %vm365_vm4 = vcmask 64512   ;;  %s664_s1 = inlined_call_operand.vmem [shape: bf16[512,8], index: 1, kind: input, shape index: {}]   ;;  %s665_s2 = inlined_call_operand.vmem [shape: f32[1,8], index: 2, kind: input, shape index: {}]   ;;  %s666_s0 = inlined_call_operand.vmem [shape: bf16[8,512], index: 0, kind: input, shape index: {}]   ;;  %s667_s3 = inlined_call_operand.vmem [shape: f32[8,8], index: 3, kind: output, shape index: {}]  }
   0x1   :  { %v506_v0 = vld [vmem:[%s664_s1 + $0x38] sm:$0xff]  ;;  %v505_v4 = vld [vmem:[%s664_s1 + $0x30] sm:$0xff]  ;;  %v504_v8 = vld [vmem:[%s664_s1 + $0x28] sm:$0xff] }
   0x2   :  { %v514_v1 = vld [vmem:[%s664_s1 + $0x78] sm:$0xff]  ;;  %290 = vmatpush.bf16.msra.mxu0 %v506_v0  ;;  %v513_v5 = vld [vmem:[%s664_s1 + $0x70] sm:$0xff]  ;;  %v512_v9 = vld [vmem:[%s664_s1 + $0x68] sm:$0xff] }
   0x3   :  { %v522_v2 = vld [vmem:[%s664_s1 + $0xb8] sm:$0xff]  ;;  %303 = vmatpush.bf16.msra.mxu1 %v514_v1  ;;  %v521_v6 = vld [vmem:[%s664_s1 + $0xb0] sm:$0xff]  ;;  %v520_v10 = vld [vmem:[%s664_s1 + $0xa8] sm:$0xff] }
   0x4   :  { %v530_v3 = vld [vmem:[%s664_s1 + $0xf8] sm:$0xff]  ;;  %316 = vmatpush.bf16.msra.mxu2 %v522_v2  ;;  %v529_v7 = vld [vmem:[%s664_s1 + $0xf0] sm:$0xff]  ;;  %v528_v11 = vld [vmem:[%s664_s1 + $0xe8] sm:$0xff] }
   0x5   :  { %329 = vmatpush.bf16.msra.mxu3 %v530_v3  ;;  %v503_v12 = vld [vmem:[%s664_s1 + $0x20] sm:$0xff]  ;;  %v502_v16 = vld [vmem:[%s664_s1 + $0x18] sm:$0xff]  ;;  %v501_v20 = vld [vmem:[%s664_s1 + $0x10] sm:$0xff] }
   0x6   :  { %291 = vmatpush.bf16.msra.mxu0 %v505_v4  ;;  %v511_v13 = vld [vmem:[%s664_s1 + $0x60] sm:$0xff]  ;;  %v510_v17 = vld [vmem:[%s664_s1 + $0x58] sm:$0xff]  ;;  %v509_v21 = vld [vmem:[%s664_s1 + $0x50] sm:$0xff] }
   0x7   :  { %304 = vmatpush.bf16.msra.mxu1 %v513_v5  ;;  %v519_v14 = vld [vmem:[%s664_s1 + $0xa0] sm:$0xff]  ;;  %v518_v18 = vld [vmem:[%s664_s1 + $0x98] sm:$0xff]  ;;  %v517_v22 = vld [vmem:[%s664_s1 + $0x90] sm:$0xff] }
   0x8   :  { %317 = vmatpush.bf16.msra.mxu2 %v521_v6  ;;  %v527_v15 = vld [vmem:[%s664_s1 + $0xe0] sm:$0xff]  ;;  %v526_v19 = vld [vmem:[%s664_s1 + $0xd8] sm:$0xff]  ;;  %v525_v23 = vld [vmem:[%s664_s1 + $0xd0] sm:$0xff] }
   0x9   :  { %330 = vmatpush.bf16.msra.mxu3 %v529_v7  ;;  %v500_v24 = vld [vmem:[%s664_s1 + $0x8] sm:$0xff]  ;;  %v14_v26 = vld [vmem:[%s666_s0] sm:$0xff] }
   0xa   :  { %292 = vmatpush.bf16.msra.mxu0 %v504_v8  ;;  %v508_v25 = vld [vmem:[%s664_s1 + $0x48] sm:$0xff]  ;;  %v86_v30 = vunpack.c.l.b16 %v14_v26  ;;  %v87_v31 = vunpack.c.h.b16 %v14_v26  ;;  %v499_v32 = vld [vmem:[%s664_s1] sm:$0xff] }
   0xb   :  { %305 = vmatpush.bf16.msra.mxu1 %v512_v9  ;;  %v516_v27 = vld [vmem:[%s664_s1 + $0x88] sm:$0xff]  ;;  %v507_v33 = vld [vmem:[%s664_s1 + $0x40] sm:$0xff] }
   0xc   :  { %318 = vmatpush.bf16.msra.mxu2 %v520_v10  ;;  %v524_v28 = vld [vmem:[%s664_s1 + $0xc8] sm:$0xff]  ;;  %v515_v36 = vld [vmem:[%s664_s1 + $0x80] sm:$0xff]  ;;  %v90_v38 = vpack.c.b16 %v86_v30, %v86_v30  ;;  %v91_v39 = vpack.c.b16 %v87_v31, %v87_v31 }
   0xd   :  { %331 = vmatpush.bf16.msra.mxu3 %v528_v11  ;;  %v15_v29 = vld [vmem:[%s666_s0 + $0x8] sm:$0xff]  ;;  %v523_v37 = vld [vmem:[%s664_s1 + $0xc0] sm:$0xff] }
   0xe   :  { %293 = vmatpush.bf16.msra.mxu0 %v503_v12  ;;  %v88_v34 = vunpack.c.l.b16 %v15_v29  ;;  %v89_v35 = vunpack.c.h.b16 %v15_v29  ;;  %v531_v42 = vld [vmem:[%s665_s2] ss:$0 sm:$0xff] }
   0xf   :  { %306 = vmatpush.bf16.msra.mxu1 %v511_v13 }
  0x10   :  { %319 = vmatpush.bf16.msra.mxu2 %v519_v14  ;;  %v92_v40 = vpack.c.b16 %v88_v34, %v88_v34  ;;  %v93_v41 = vpack.c.b16 %v89_v35, %v89_v35 }
  0x11   :  { %332 = vmatpush.bf16.msra.mxu3 %v527_v15 }
  0x12   :  { %294 = vmatpush.bf16.msra.mxu0 %v502_v16 }
  0x13   :  { %307 = vmatpush.bf16.msra.mxu1 %v510_v17 }
  0x14   :  { %320 = vmatpush.bf16.msra.mxu2 %v518_v18 }
  0x15   :  { %333 = vmatpush.bf16.msra.mxu3 %v526_v19 }
  0x16   :  { %295 = vmatpush.bf16.msra.mxu0 %v501_v20 }
  0x17   :  { %308 = vmatpush.bf16.msra.mxu1 %v509_v21 }
  0x18   :  { %321 = vmatpush.bf16.msra.mxu2 %v517_v22 }
  0x19   :  { %334 = vmatpush.bf16.msra.mxu3 %v525_v23 }
  0x1a   :  { %296 = vmatpush.bf16.msra.mxu0 %v500_v24 }
  0x1b   :  { %309 = vmatpush.bf16.msra.mxu1 %v508_v25 }
  0x1c   :  { %322 = vmatpush.bf16.msra.mxu2 %v516_v27 }
  0x1d   :  { %335 = vmatpush.bf16.msra.mxu3 %v524_v28 }
  0x1e   :  { %297 = vmatpush.bf16.msra.mxu0 %v499_v32 }
  0x1f   :  { %310 = vmatpush.bf16.msra.mxu1 %v507_v33 }
  0x20   :  { %323 = vmatpush.bf16.msra.mxu2 %v515_v36 }
  0x21   :  { %336 = vmatpush.bf16.msra.mxu3 %v523_v37  ;;  %298 = vmatmul.bf16.vlgmr.msra.gmra.mxu0 %v90_v38 }
  0x22   :  { %311 = vmatmul.bf16.vlgmr.msra.gmra.mxu1 %v91_v39 }
  0x23   :  { %324 = vmatmul.bf16.vlgmr.msra.gmra.mxu2 %v92_v40 }
  0x24   :  { %337 = vmatmul.bf16.vlgmr.msra.gmra.mxu3 %v93_v41 }
  0x9e   :  { %v299_v43 = vpop.f32.mrf.mxu0 }
  0x9f   :  { %v312_v44 = vpop.f32.mrf.mxu1  ;;  %v300_v45 = vadd.f32 %v531_v42, %v299_v43 }
  0xa1   :  { %v313_v46 = vadd.f32 %v312_v44, %v300_v45 }
  0xa6   :  { %v325_v47 = vpop.f32.mrf.mxu2  ;;  %v301_v50 = vpop.f32.mrf.mxu0 }
  0xa7   :  { %v338_v48 = vpop.f32.mrf.mxu3  ;;  %v326_v49 = vadd.f32 %v325_v47, %v313_v46  ;;  %v314_v51 = vpop.f32.mrf.mxu1 }
  0xa9   :  { %v339_v52 = vadd.f32 %v338_v48, %v326_v49 }
  0xab   :  { %v342_v53 = vand.u32 2147483647, %v339_v52  ;;  %vm346_vm5 = vcmp.ge.f32.partialorder %v339_v52, 0.0 }
  0xad   :  { %v343_v54 = vsub.f32 0.0, %v342_v53 }
  0xae   :  { %v327_v55 = vpop.f32.mrf.mxu2 }
  0xaf   :  { %v340_v56 = vpop.f32.mrf.mxu3  ;;  %v344_v57 = vmul.f32 1.442695, %v343_v54 }
  0xb1   :  { %532 = vpow2.f32 %v344_v57 }
  0xb7   :  { %v533_v58 = vpop.eup %532 }
  0xb8   :  { %v347_v59 = vadd.f32 1.0, %v533_v58 }
  0xba   :  { %534 = vrcp.f32 %v347_v59  ;;  %v359_v63 = vand.u32 2147483648, %v347_v59  ;;  %v357_v1 = vand.u32 2147483647, %v347_v59  ;;  %vm353_vm1 = vweird.f32 %v347_v59 }
  0xbc   :  { %v360_v3 = vor.u32 1.1754944e-38, %v359_v63  ;;  %vm358_vm3 = vcmp.eq.f32.partialorder %v357_v1, 8.507059e+37 }
  0xc0   :  { %v535_v60 = vpop.eup %534 }
  0xc1   :  { %v349_v61 = vmul.f32 %v535_v60, %v347_v59  ;;  %vm354_vm0 = vweird.f32 %v535_v60 }
  0xc2   :  { %vm355_vm2 = vmor %vm353_vm1, %vm354_vm0 }
  0xc3   :  { %v350_v62 = vsub.f32 1.0, %v349_v61 }
  0xc5   :  { %v351_v0 = vmul.f32 %v535_v60, %v350_v62 }
  0xc7   :  { %v352_v2 = vadd.f32 %v535_v60, %v351_v0 }
  0xc9   :  { %v356_v4 = vsel %vm355_vm2, %v535_v60, %v352_v2 }
  0xca   :  { %v361_v5 = vsel %vm358_vm3, %v360_v3, %v356_v4 }
  0xcb   :  { %v363_v6 = vmul.f32 %v533_v58, %v361_v5 }
  0xcd   :  { %v364_v7 = vsel %vm346_vm5, %v361_v5, %v363_v6 }
  0xce   :  { %366 = vst.msk [vmem:[%s667_s3] sm:$0xff] %vm365_vm4, %v364_v7 }

</bundles_post_ra>
